<compile_context>
chip_gen: v5e
topology: v5e:2x2
jax: 0.10.0
libtpu: 0.0.40
codegen_flags: <defaults>
</compile_context>

<pallas_src>
import jax
import jax.numpy as jnp
from jax import lax
from jax.experimental import pallas as pl
from jax.experimental.pallas import tpu as pltpu


def _rup(x, m):
    return ((x + m - 1) // m) * m


# ----------------------------------------------------------------------------
# Fused decoder kernel: multi-layer LSTM + Linear epilogue
# ----------------------------------------------------------------------------
def _decoder_kernel(z_ref, gx0_ref, wz0_ref, wih_ref, whh_ref, b_ref,
                    fcw_ref, fcb_ref, dec_ref, gx_scr, hseq_scr):
    """
    z_ref   : [BB, H]            latent Z, one batch tile (f32)
    gx0_ref : [T, BB, Gp]        per-token layer-0 gate pre-activations
                                 (embedding folded into W_x0), f32
    wz0_ref : [H, Gp]            layer-0 input weight, Z rows (gate-packed)
    wih_ref : [max(NL-1,1),H,Gp] input weights, layers 1..NL-1
    whh_ref : [NL, H, Gp]        hidden weights, all layers
    b_ref   : [NL, 1, Gp]        b_ih + b_hh (f32)
    fcw_ref : [H, Fp]            Linear weight (transposed, lane-padded)
    fcb_ref : [1, Fp]            Linear bias (f32)
    dec_ref : [T, BB, Fp]        output (lane-dense store)
    gx_scr  : VMEM [T, BB, Gp]   hoisted input-gate pre-activations (f32)
    hseq_scr: VMEM [T, BB, H]    current layer's hidden sequence (f32)
    Gate order follows PyTorch: i, f, g, o packed contiguously with stride H.
    """
    T, BB, Gp = gx0_ref.shape
    NL, H, _ = whh_ref.shape
    Fp = fcw_ref.shape[1]
    wdt = whh_ref.dtype                      # MXU operand dtype (f32 or bf16)
    unroll = min(T, 8)                       # cap unroll for long sequences
    aligned = (H % 128 == 0)

    def run_layer(l):
        # Serial recurrence: only h @ W_hh remains inside the time loop.
        def step(t, carry):
            h, c = carry                                     # [BB, H] f32
            g = gx_scr[t] + jnp.dot(h.astype(wdt), whh_ref[l],
                                    preferred_element_type=jnp.float32)
            if aligned:
                # Gates sit on 128-aligned lane blocks: direct slices.
                i_g = jax.nn.sigmoid(g[:, 0 * H:1 * H])
                f_g = jax.nn.sigmoid(g[:, 1 * H:2 * H])
                g_g = jnp.tanh(g[:, 2 * H:3 * H])
                o_g = jax.nn.sigmoid(g[:, 3 * H:4 * H])
            else:
                # Tight packing (4H <= Gp within few vregs): activate whole
                # vregs on the EUP, re-align each gate onto lanes [0,H) with
                # XLU rolls, then take the aligned H-wide prefix.
                sig = jax.nn.sigmoid(g)
                tnh = jnp.tanh(g)
                i_g = sig[:, :H]
                f_g = pltpu.roll(sig, Gp - 1 * H, axis=1)[:, :H]
                g_g = pltpu.roll(tnh, Gp - 2 * H, axis=1)[:, :H]
                o_g = pltpu.roll(sig, Gp - 3 * H, axis=1)[:, :H]
            c_new = f_g * c + i_g * g_g
            h_new = o_g * jnp.tanh(c_new)
            hseq_scr[t] = h_new
            return h_new, c_new

        zeros = jnp.zeros((BB, H), jnp.float32)
        lax.fori_loop(0, T, step, (zeros, zeros), unroll=unroll)

    # ---- Layer 0: Z contribution computed once (constant along time); the
    # X contribution was folded into the gathered gx0 table outside. ----
    zg = jnp.dot(z_ref[...].astype(wdt), wz0_ref[...],
                 preferred_element_type=jnp.float32)          # [BB, Gp]
    gx_scr[...] = gx0_ref[...] + (zg + b_ref[0])[None]
    run_layer(0)

    # ---- Layers 1..NL-1: inter-layer activations stay VMEM-resident;
    # the whole-sequence input projection is one hoisted MXU matmul. ----
    for l in range(1, NL):
        h_flat = hseq_scr[...].reshape(T * BB, H).astype(wdt)
        gx = jnp.dot(h_flat, wih_ref[l - 1],
                     preferred_element_type=jnp.float32)
        gx_scr[...] = gx.reshape(T, BB, Gp) + b_ref[l][None]
        run_layer(l)

    # ---- Fused Linear epilogue: one batched matmul, lane-dense store ----
    h_all = hseq_scr[...].reshape(T * BB, H).astype(wdt)
    dec = (jnp.dot(h_all, fcw_ref[...], preferred_element_type=jnp.float32)
           + fcb_ref[...])
    dec_ref[...] = dec.reshape(T, BB, Fp)


# ----------------------------------------------------------------------------
# Batch-tile / VMEM heuristics
# ----------------------------------------------------------------------------
def _tile_vmem_bytes(bb, T, Gp, H, Fp, w_bytes):
    scratch = 4 * (T * bb * Gp + T * bb * H)                 # gx + hseq
    io = 2 * 4 * (T * bb * Gp + T * bb * Fp + bb * H)        # double-buffered tiles
    return scratch + io + w_bytes


def _choose_bb(B, T, Gp, H, Fp, w_bytes):
    # Fill the MXU M dimension (up to 256) when the batch allows it.
    bb = min(256, _rup(max(B, 1), 8))
    # Keep per-tile VMEM well inside v7x's 64 MiB (32 MiB default scoped).
    while bb > 8 and _tile_vmem_bytes(bb, T, Gp, H, Fp, w_bytes) > (24 << 20):
        bb = _rup(max(8, bb // 2), 8)
    # Prefer >=2 batch tiles so the "parallel" grid axis can feed both
    # TensorCores on v7x (no-op on single-core v5e/v6e).
    if bb >= 16 and B <= bb:
        bb = _rup(max(8, bb // 2), 8)
    return bb


# ----------------------------------------------------------------------------
# Wrapper
# ----------------------------------------------------------------------------
def decoder_forward(params, Z, X0, L0=None):
    """Replicates Decoder.forward.  Z: [B, H] f32, X0: [B, Nseq] int32."""
    del L0  # unused in the PyTorch forward as well
    B = Z.shape[0]
    T = params["Nseq"]
    H = params["hidden_dim"]
    Nfea = params["Nfea"]
    NL = params["NLSTM_layer"]
    Gp = params["Gp"]
    Fp = params["Fp"]

    w_bytes = 2 * sum(int(params[k].size) * params[k].dtype.itemsize
                      for k in ("wz0", "wih", "whh", "bias", "fcw", "fcb"))
    BB = params.get("BB") or _choose_bb(B, T, Gp, H, Fp, w_bytes)
    Bp = _rup(B, BB)
    NLm1 = max(NL - 1, 1)

    # Glue: gather the folded embedding->gate table time-major (no padded-X
    # tensor, no transpose of a large activation), pad batch to the tile size.
    gx_x = jnp.take(params["xg_table"], X0.T, axis=0)        # [T, B, Gp] f32
    gx_x = jnp.pad(gx_x, ((0, 0), (0, Bp - B), (0, 0)))
    z = jnp.pad(Z.astype(jnp.float32), ((0, Bp - B), (0, 0)))

    cp_kwargs = dict(dimension_semantics=("parallel",))
    total_vmem = _tile_vmem_bytes(BB, T, Gp, H, Fp, w_bytes)
    if total_vmem > (30 << 20):
        # Only raise the scoped-VMEM limit when the tile actually needs it.
        cp_kwargs["vmem_limit_bytes"] = int(min(total_vmem + (8 << 20),
                                                112 << 20))

    dec_pad = pl.pallas_call(
        _decoder_kernel,
        out_shape=jax.ShapeDtypeStruct((T, Bp, Fp), jnp.float32),
        grid=(Bp // BB,),
        in_specs=[
            pl.BlockSpec((BB, H), lambda b: (b, 0)),             # Z
            pl.BlockSpec((T, BB, Gp), lambda b: (0, b, 0)),      # gathered gx0
            pl.BlockSpec((H, Gp), lambda b: (0, 0)),             # wz0
            pl.BlockSpec((NLm1, H, Gp), lambda b: (0, 0, 0)),    # wih[1:]
            pl.BlockSpec((NL, H, Gp), lambda b: (0, 0, 0)),      # whh
            pl.BlockSpec((NL, 1, Gp), lambda b: (0, 0, 0)),      # biases
            pl.BlockSpec((H, Fp), lambda b: (0, 0)),             # fc weight
            pl.BlockSpec((1, Fp), lambda b: (0, 0)),             # fc bias
        ],
        out_specs=pl.BlockSpec((T, BB, Fp), lambda b: (0, b, 0)),
        scratch_shapes=[
            pltpu.VMEM((T, BB, Gp), jnp.float32),   # hoisted input gates
            pltpu.VMEM((T, BB, H), jnp.float32),    # per-layer hidden sequence
        ],
        compiler_params=pltpu.CompilerParams(**cp_kwargs),
    )(z, gx_x, params["wz0"], params["wih"], params["whh"], params["bias"],
      params["fcw"], params["fcb"])

    dec = dec_pad[:, :B, :Nfea]                              # [T, B, Nfea]
    return jnp.transpose(dec, (1, 0, 2))                     # [B, T, Nfea]


# ----------------------------------------------------------------------------
# Parameter construction (shapes per Decoder.__init__) + packed layouts
# ----------------------------------------------------------------------------
def _pad_gates(a, Gp):
    # PyTorch already stores the 4 gates contiguously along the last axis
    # (i,f,g,o with stride H), so tight gate packing is just a lane pad.
    return jnp.pad(a, [(0, 0)] * (a.ndim - 1) + [(0, Gp - a.shape[-1])])


def make_params(key, Nseq, Nfea, hidden_dim, NLSTM_layer,
                mxu_dtype=jnp.float32, BB=None):
    H = hidden_dim
    Gp = _rup(4 * H, 128)                  # tight gate-packed lane width
    Fp = _rup(Nfea, 128)                   # lane-padded output feature dim
    scale = 0.1

    keys = jax.random.split(key, 4 + 4 * NLSTM_layer)
    embed = scale * jax.random.normal(keys[0], (Nfea, Nfea), jnp.float32)

    raw_layers = []
    wih_pk, whh_pk, b_pk = [], [], []
    wz0 = xg_table = None
    for l in range(NLSTM_layer):
        d_in = (Nfea + H) if l == 0 else H
        kw = keys[4 + 4 * l: 4 + 4 * (l + 1)]
        w_ih = scale * jax.random.normal(kw[0], (4 * H, d_in), jnp.float32)
        w_hh = scale * jax.random.normal(kw[1], (4 * H, H), jnp.float32)
        b_ih = scale * jax.random.normal(kw[2], (4 * H,), jnp.float32)
        b_hh = scale * jax.random.normal(kw[3], (4 * H,), jnp.float32)

        raw_layers.append({"wih_t": w_ih.T, "whh_t": w_hh.T,
                           "b": (b_ih + b_hh).reshape(1, 4 * H)})

        wih_t = w_ih.T                                       # [d_in, 4H]
        if l == 0:
            # PyTorch concat order is (Zm, X): first H input rows are Z.
            wz0 = _pad_gates(wih_t[:H], Gp)                  # [H, Gp]
            # Fold the embedding into the layer-0 X projection: per-token
            # gate pre-activations become a row gather of this table.
            xg_table = _pad_gates(embed @ wih_t[H:], Gp)     # [Nfea, Gp] f32
        else:
            wih_pk.append(_pad_gates(wih_t, Gp))
        whh_pk.append(_pad_gates(w_hh.T, Gp))
        b_pk.append(_pad_gates((b_ih + b_hh).reshape(1, 4 * H), Gp))

    if not wih_pk:  # NLSTM_layer == 1: dummy slab, never indexed in-kernel
        wih_pk.append(jnp.zeros((H, Gp), jnp.float32))

    fc_w = scale * jax.random.normal(keys[1], (Nfea, H), jnp.float32)
    fc_b = scale * jax.random.normal(keys[2], (Nfea,), jnp.float32)
    fcw = jnp.zeros((H, Fp), jnp.float32).at[:, :Nfea].set(fc_w.T)
    fcb = jnp.zeros((1, Fp), jnp.float32).at[0, :Nfea].set(fc_b)

    mx = lambda a: a.astype(mxu_dtype)     # MXU operand dtype (f32 or bf16)
    return {
        "Nseq": Nseq, "Nfea": Nfea, "hidden_dim": H,
        "NLSTM_layer": NLSTM_layer, "Gp": Gp, "Fp": Fp, "BB": BB,
        "embed": embed,
        "lstm_raw": raw_layers,
        "xg_table": xg_table,                      # f32 (added, not matmul'd)
        "wz0": mx(wz0),
        "wih": mx(jnp.stack(wih_pk, axis=0)),      # [max(NL-1,1), H, Gp]
        "whh": mx(jnp.stack(whh_pk, axis=0)),      # [NL, H, Gp]
        "bias": jnp.stack(b_pk, axis=0),           # [NL, 1, Gp] f32
        "fcw": mx(fcw), "fcb": fcb,
        "fc_w_t": fc_w.T, "fc_b": fc_b.reshape(1, Nfea),
    }


# ----------------------------------------------------------------------------
# Pure-JAX reference (for correctness check)
# ----------------------------------------------------------------------------
def decoder_forward_ref(params, Z, X0):
    B = Z.shape[0]
    Nseq = params["Nseq"]
    H = params["hidden_dim"]
    Nfea = params["Nfea"]

    X = jnp.take(params["embed"], X0, axis=0)
    Zm = jnp.broadcast_to(Z[:, None, :], (B, Nseq, H))
    x = jnp.concatenate([Zm, X], axis=2)                   # [B, T, H+Nfea]

    for layer in params["lstm_raw"]:
        wih_t, whh_t, b = layer["wih_t"], layer["whh_t"], layer["b"]
        h = jnp.zeros((B, H), jnp.float32)
        c = jnp.zeros((B, H), jnp.float32)
        outs = []
        for t in range(Nseq):
            gates = x[:, t, :] @ wih_t + h @ whh_t + b
            i_g = jax.nn.sigmoid(gates[:, 0 * H:1 * H])
            f_g = jax.nn.sigmoid(gates[:, 1 * H:2 * H])
            g_g = jnp.tanh(gates[:, 2 * H:3 * H])
            o_g = jax.nn.sigmoid(gates[:, 3 * H:4 * H])
            c = f_g * c + i_g * g_g
            h = o_g * jnp.tanh(c)
            outs.append(h)
        x = jnp.stack(outs, axis=1)                        # [B, T, H]

    dec = x.reshape(B * Nseq, H) @ params["fc_w_t"] + params["fc_b"]
    return dec.reshape(B, Nseq, Nfea)


if __name__ == "__main__":
    # Small shapes consistent with the module's para dict.
    Nseq, Nfea, hidden_dim, NLSTM_layer = 8, 16, 32, 2

    key = jax.random.PRNGKey(0)
    kp, kz, kx = jax.random.split(key, 3)

    # Config 1: f32 MXU operands, B=20 -> exercises batch padding and a
    # multi-tile (grid >= 2) "parallel" batch axis.
    B1 = 20
    params = make_params(kp, Nseq, Nfea, hidden_dim, NLSTM_layer)
    Z1 = jax.random.normal(kz, (B1, hidden_dim), jnp.float32)
    X1 = jax.random.randint(kx, (B1, Nseq), 0, Nfea, dtype=jnp.int32)
    L1 = jnp.full((B1,), Nseq, jnp.int32)   # unused (matches forward signature)

    dec1 = jax.block_until_ready(decoder_forward(params, Z1, X1, L1))
    ref1 = decoder_forward_ref(params, Z1, X1)
    assert dec1.shape == (B1, Nseq, Nfea)
    err1 = float(jnp.max(jnp.abs(dec1 - ref1)))
    assert err1 < 2e-4, f"f32 mismatch vs reference: max abs err = {err1}"

    # Config 2: bf16 MXU operands (weights + matmul-side activations),
    # f32 accumulation and f32 gate/cell math; B=2 single-tile path.
    B2 = 2
    params_bf16 = make_params(kp, Nseq, Nfea, hidden_dim, NLSTM_layer,
                              mxu_dtype=jnp.bfloat16)
    dec2 = jax.block_until_ready(decoder_forward(params_bf16, Z1[:B2], X1[:B2]))
    err2 = float(jnp.max(jnp.abs(dec2 - ref1[:B2])))
    assert dec2.shape == (B2, Nseq, Nfea)
    assert err2 < 5e-2, f"bf16 mismatch vs reference: max abs err = {err2}"

    print("KERNEL_OK")
</pallas_src>

<mosaic_0001>
module attributes {stable_mosaic.version = 11 : i64} {
  func.func @_decoder_kernel(%arg0: i32, %arg1: memref<16x32xf32, #tpu.memory_space<vmem>>, %arg2: memref<8x16x128xf32, #tpu.memory_space<vmem>>, %arg3: memref<32x128xf32, #tpu.memory_space<vmem>>, %arg4: memref<1x32x128xf32, #tpu.memory_space<vmem>>, %arg5: memref<2x32x128xf32, #tpu.memory_space<vmem>>, %arg6: memref<2x1x128xf32, #tpu.memory_space<vmem>>, %arg7: memref<32x128xf32, #tpu.memory_space<vmem>>, %arg8: memref<1x128xf32, #tpu.memory_space<vmem>>, %arg9: memref<8x16x128xf32, #tpu.memory_space<vmem>>, %arg10: memref<8x16x128xf32, #tpu.memory_space<vmem>>, %arg11: memref<8x16x32xf32, #tpu.memory_space<vmem>>) attributes {dimension_semantics = [#tpu.dimension_semantics<parallel>], iteration_bounds = array<i64: 2>, scalar_prefetch = 0 : i64, scratch_operands = 2 : i64, tpu.core_type = #tpu.core_type<tc>, window_params = [{transform_indices = @transform_0, window_bounds = array<i64: 16, 32>}, {transform_indices = @transform_1, window_bounds = array<i64: 8, 16, 128>}, {pipeline_mode = #tpu.pipeline_mode<synchronous>, transform_indices = @transform_2, window_bounds = array<i64: 32, 128>}, {pipeline_mode = #tpu.pipeline_mode<synchronous>, transform_indices = @transform_3, window_bounds = array<i64: 1, 32, 128>}, {pipeline_mode = #tpu.pipeline_mode<synchronous>, transform_indices = @transform_4, window_bounds = array<i64: 2, 32, 128>}, {pipeline_mode = #tpu.pipeline_mode<synchronous>, transform_indices = @transform_5, window_bounds = array<i64: 2, 1, 128>}, {pipeline_mode = #tpu.pipeline_mode<synchronous>, transform_indices = @transform_6, window_bounds = array<i64: 32, 128>}, {pipeline_mode = #tpu.pipeline_mode<synchronous>, transform_indices = @transform_7, window_bounds = array<i64: 1, 128>}, {transform_indices = @transform_8, window_bounds = array<i64: 8, 16, 128>}]} {
    %c0 = arith.constant 0 : index
    %c0_0 = arith.constant 0 : index
    %0 = vector.load %arg1[%c0, %c0_0] : memref<16x32xf32, #tpu.memory_space<vmem>>, vector<16x32xf32>
    %c0_1 = arith.constant 0 : index
    %c0_2 = arith.constant 0 : index
    %1 = vector.load %arg3[%c0_1, %c0_2] : memref<32x128xf32, #tpu.memory_space<vmem>>, vector<32x128xf32>
    %cst = arith.constant dense<0.000000e+00> : vector<16x128xf32>
    %2 = tpu.matmul %0, %1, %cst {dimension_numbers = #tpu.dot_dimension_numbers<[1], [0], [0], [1], [0, 0, 1, 1], [], []>} : vector<16x32xf32>, vector<32x128xf32>, vector<16x128xf32> -> vector<16x128xf32>
    %c0_3 = arith.constant 0 : index
    %c0_4 = arith.constant 0 : index
    %c0_5 = arith.constant 0 : index
    %3 = vector.load %arg2[%c0_3, %c0_4, %c0_5] : memref<8x16x128xf32, #tpu.memory_space<vmem>>, vector<8x16x128xf32>
    %c0_6 = arith.constant 0 : index
    %c0_7 = arith.constant 0 : index
    %c0_8 = arith.constant 0 : index
    %4 = vector.load %arg6[%c0_6, %c0_7, %c0_8] : memref<2x1x128xf32, #tpu.memory_space<vmem>>, vector<1x1x128xf32>
    %5 = vector.shape_cast %4 : vector<1x1x128xf32> to vector<1x128xf32>
    %6 = vector.broadcast %5 : vector<1x128xf32> to vector<16x128xf32>
    %7 = arith.addf %2, %6 : vector<16x128xf32>
    %8 = vector.shape_cast %7 : vector<16x128xf32> to vector<1x16x128xf32>
    %9 = vector.broadcast %8 : vector<1x16x128xf32> to vector<8x16x128xf32>
    %10 = arith.addf %3, %9 : vector<8x16x128xf32>
    %c0_9 = arith.constant 0 : index
    %c0_10 = arith.constant 0 : index
    %c0_11 = arith.constant 0 : index
    %11 = vector.load %arg10[%c0_9, %c0_10, %c0_11] : memref<8x16x128xf32, #tpu.memory_space<vmem>>, vector<8x16x128xf32>
    tpu.vector_store %arg10[%c0_9, %c0_10, %c0_11], %10 {strides = array<i32>} : memref<8x16x128xf32, #tpu.memory_space<vmem>>, vector<8x16x128xf32>,
    %cst_12 = arith.constant 0.000000e+00 : f32
    %12 = vector.broadcast %cst_12 : f32 to vector<16x32xf32>
    %c0_i32 = arith.constant 0 : i32
    %13 = arith.index_cast %c0_i32 : i32 to index
    %c0_13 = arith.constant 0 : index
    %c0_14 = arith.constant 0 : index
    %14 = vector.load %arg10[%13, %c0_13, %c0_14] : memref<8x16x128xf32, #tpu.memory_space<vmem>>, vector<1x16x128xf32>
    %15 = vector.shape_cast %14 : vector<1x16x128xf32> to vector<16x128xf32>
    %c0_15 = arith.constant 0 : index
    %c0_16 = arith.constant 0 : index
    %c0_17 = arith.constant 0 : index
    %16 = vector.load %arg5[%c0_15, %c0_16, %c0_17] : memref<2x32x128xf32, #tpu.memory_space<vmem>>, vector<1x32x128xf32>
    %17 = vector.shape_cast %16 : vector<1x32x128xf32> to vector<32x128xf32>
    %cst_18 = arith.constant dense<0.000000e+00> : vector<16x128xf32>
    %18 = tpu.matmul %12, %17, %cst_18 {dimension_numbers = #tpu.dot_dimension_numbers<[1], [0], [0], [1], [0, 0, 1, 1], [], []>} : vector<16x32xf32>, vector<32x128xf32>, vector<16x128xf32> -> vector<16x128xf32>
    %19 = arith.addf %15, %18 : vector<16x128xf32>
    %20 = arith.negf %19 : vector<16x128xf32>
    %21 = math.exp %20 : vector<16x128xf32>
    %cst_19 = arith.constant 1.000000e+00 : f32
    %22 = vector.broadcast %cst_19 : f32 to vector<16x128xf32>
    %23 = arith.addf %22, %21 : vector<16x128xf32>
    %24 = arith.divf %22, %23 : vector<16x128xf32>
    %25 = math.tanh %19 : vector<16x128xf32>
    %26 = vector.extract_strided_slice %24 {offsets = [0, 0], sizes = [16, 32], strides = [1, 1]} : vector<16x128xf32> to vector<16x32xf32>
    %c96_i32 = arith.constant 96 : i32
    %27 = tpu.dynamic_rotate %24 by %c96_i32 dim 1 : vector<16x128xf32>, i32 -> vector<16x128xf32>
    %28 = vector.extract_strided_slice %27 {offsets = [0, 0], sizes = [16, 32], strides = [1, 1]} : vector<16x128xf32> to vector<16x32xf32>
    %c64_i32 = arith.constant 64 : i32
    %29 = tpu.dynamic_rotate %25 by %c64_i32 dim 1 : vector<16x128xf32>, i32 -> vector<16x128xf32>
    %30 = vector.extract_strided_slice %29 {offsets = [0, 0], sizes = [16, 32], strides = [1, 1]} : vector<16x128xf32> to vector<16x32xf32>
    %c32_i32 = arith.constant 32 : i32
    %31 = tpu.dynamic_rotate %24 by %c32_i32 dim 1 : vector<16x128xf32>, i32 -> vector<16x128xf32>
    %32 = vector.extract_strided_slice %31 {offsets = [0, 0], sizes = [16, 32], strides = [1, 1]} : vector<16x128xf32> to vector<16x32xf32>
    %33 = arith.mulf %28, %12 : vector<16x32xf32>
    %34 = arith.mulf %26, %30 : vector<16x32xf32>
    %35 = arith.addf %33, %34 : vector<16x32xf32>
    %36 = math.tanh %35 : vector<16x32xf32>
    %37 = arith.mulf %32, %36 : vector<16x32xf32>
    %38 = arith.index_cast %c0_i32 : i32 to index
    %c0_20 = arith.constant 0 : index
    %c0_21 = arith.constant 0 : index
    %39 = vector.load %arg11[%38, %c0_20, %c0_21] : memref<8x16x32xf32, #tpu.memory_space<vmem>>, vector<1x16x32xf32>
    %40 = vector.shape_cast %39 : vector<1x16x32xf32> to vector<16x32xf32>
    %41 = vector.shape_cast %37 : vector<16x32xf32> to vector<1x16x32xf32>
    tpu.vector_store %arg11[%38, %c0_20, %c0_21], %41 {strides = array<i32>} : memref<8x16x32xf32, #tpu.memory_space<vmem>>, vector<1x16x32xf32>,
    %c1_i32 = arith.constant 1 : i32
    %42 = arith.index_cast %c1_i32 : i32 to index
    %c0_22 = arith.constant 0 : index
    %c0_23 = arith.constant 0 : index
    %43 = vector.load %arg10[%42, %c0_22, %c0_23] : memref<8x16x128xf32, #tpu.memory_space<vmem>>, vector<1x16x128xf32>
    %44 = vector.shape_cast %43 : vector<1x16x128xf32> to vector<16x128xf32>
    %c0_24 = arith.constant 0 : index
    %c0_25 = arith.constant 0 : index
    %c0_26 = arith.constant 0 : index
    %45 = vector.load %arg5[%c0_24, %c0_25, %c0_26] : memref<2x32x128xf32, #tpu.memory_space<vmem>>, vector<1x32x128xf32>
    %46 = vector.shape_cast %45 : vector<1x32x128xf32> to vector<32x128xf32>
    %cst_27 = arith.constant dense<0.000000e+00> : vector<16x128xf32>
    %47 = tpu.matmul %37, %46, %cst_27 {dimension_numbers = #tpu.dot_dimension_numbers<[1], [0], [0], [1], [0, 0, 1, 1], [], []>} : vector<16x32xf32>, vector<32x128xf32>, vector<16x128xf32> -> vector<16x128xf32>
    %48 = arith.addf %44, %47 : vector<16x128xf32>
    %49 = arith.negf %48 : vector<16x128xf32>
    %50 = math.exp %49 : vector<16x128xf32>
    %cst_28 = arith.constant 1.000000e+00 : f32
    %51 = vector.broadcast %cst_28 : f32 to vector<16x128xf32>
    %52 = arith.addf %51, %50 : vector<16x128xf32>
    %53 = arith.divf %51, %52 : vector<16x128xf32>
    %54 = math.tanh %48 : vector<16x128xf32>
    %55 = vector.extract_strided_slice %53 {offsets = [0, 0], sizes = [16, 32], strides = [1, 1]} : vector<16x128xf32> to vector<16x32xf32>
    %c96_i32_29 = arith.constant 96 : i32
    %56 = tpu.dynamic_rotate %53 by %c96_i32_29 dim 1 : vector<16x128xf32>, i32 -> vector<16x128xf32>
    %57 = vector.extract_strided_slice %56 {offsets = [0, 0], sizes = [16, 32], strides = [1, 1]} : vector<16x128xf32> to vector<16x32xf32>
    %c64_i32_30 = arith.constant 64 : i32
    %58 = tpu.dynamic_rotate %54 by %c64_i32_30 dim 1 : vector<16x128xf32>, i32 -> vector<16x128xf32>
    %59 = vector.extract_strided_slice %58 {offsets = [0, 0], sizes = [16, 32], strides = [1, 1]} : vector<16x128xf32> to vector<16x32xf32>
    %c32_i32_31 = arith.constant 32 : i32
    %60 = tpu.dynamic_rotate %53 by %c32_i32_31 dim 1 : vector<16x128xf32>, i32 -> vector<16x128xf32>
    %61 = vector.extract_strided_slice %60 {offsets = [0, 0], sizes = [16, 32], strides = [1, 1]} : vector<16x128xf32> to vector<16x32xf32>
    %62 = arith.mulf %57, %35 : vector<16x32xf32>
    %63 = arith.mulf %55, %59 : vector<16x32xf32>
    %64 = arith.addf %62, %63 : vector<16x32xf32>
    %65 = math.tanh %64 : vector<16x32xf32>
    %66 = arith.mulf %61, %65 : vector<16x32xf32>
    %67 = arith.index_cast %c1_i32 : i32 to index
    %c0_32 = arith.constant 0 : index
    %c0_33 = arith.constant 0 : index
    %68 = vector.load %arg11[%67, %c0_32, %c0_33] : memref<8x16x32xf32, #tpu.memory_space<vmem>>, vector<1x16x32xf32>
    %69 = vector.shape_cast %68 : vector<1x16x32xf32> to vector<16x32xf32>
    %70 = vector.shape_cast %66 : vector<16x32xf32> to vector<1x16x32xf32>
    tpu.vector_store %arg11[%67, %c0_32, %c0_33], %70 {strides = array<i32>} : memref<8x16x32xf32, #tpu.memory_space<vmem>>, vector<1x16x32xf32>,
    %c2_i32 = arith.constant 2 : i32
    %71 = arith.index_cast %c2_i32 : i32 to index
    %c0_34 = arith.constant 0 : index
    %c0_35 = arith.constant 0 : index
    %72 = vector.load %arg10[%71, %c0_34, %c0_35] : memref<8x16x128xf32, #tpu.memory_space<vmem>>, vector<1x16x128xf32>
    %73 = vector.shape_cast %72 : vector<1x16x128xf32> to vector<16x128xf32>
    %c0_36 = arith.constant 0 : index
    %c0_37 = arith.constant 0 : index
    %c0_38 = arith.constant 0 : index
    %74 = vector.load %arg5[%c0_36, %c0_37, %c0_38] : memref<2x32x128xf32, #tpu.memory_space<vmem>>, vector<1x32x128xf32>
    %75 = vector.shape_cast %74 : vector<1x32x128xf32> to vector<32x128xf32>
    %cst_39 = arith.constant dense<0.000000e+00> : vector<16x128xf32>
    %76 = tpu.matmul %66, %75, %cst_39 {dimension_numbers = #tpu.dot_dimension_numbers<[1], [0], [0], [1], [0, 0, 1, 1], [], []>} : vector<16x32xf32>, vector<32x128xf32>, vector<16x128xf32> -> vector<16x128xf32>
    %77 = arith.addf %73, %76 : vector<16x128xf32>
    %78 = arith.negf %77 : vector<16x128xf32>
    %79 = math.exp %78 : vector<16x128xf32>
    %cst_40 = arith.constant 1.000000e+00 : f32
    %80 = vector.broadcast %cst_40 : f32 to vector<16x128xf32>
    %81 = arith.addf %80, %79 : vector<16x128xf32>
    %82 = arith.divf %80, %81 : vector<16x128xf32>
    %83 = math.tanh %77 : vector<16x128xf32>
    %84 = vector.extract_strided_slice %82 {offsets = [0, 0], sizes = [16, 32], strides = [1, 1]} : vector<16x128xf32> to vector<16x32xf32>
    %c96_i32_41 = arith.constant 96 : i32
    %85 = tpu.dynamic_rotate %82 by %c96_i32_41 dim 1 : vector<16x128xf32>, i32 -> vector<16x128xf32>
    %86 = vector.extract_strided_slice %85 {offsets = [0, 0], sizes = [16, 32], strides = [1, 1]} : vector<16x128xf32> to vector<16x32xf32>
    %c64_i32_42 = arith.constant 64 : i32
    %87 = tpu.dynamic_rotate %83 by %c64_i32_42 dim 1 : vector<16x128xf32>, i32 -> vector<16x128xf32>
    %88 = vector.extract_strided_slice %87 {offsets = [0, 0], sizes = [16, 32], strides = [1, 1]} : vector<16x128xf32> to vector<16x32xf32>
    %c32_i32_43 = arith.constant 32 : i32
    %89 = tpu.dynamic_rotate %82 by %c32_i32_43 dim 1 : vector<16x128xf32>, i32 -> vector<16x128xf32>
    %90 = vector.extract_strided_slice %89 {offsets = [0, 0], sizes = [16, 32], strides = [1, 1]} : vector<16x128xf32> to vector<16x32xf32>
    %91 = arith.mulf %86, %64 : vector<16x32xf32>
    %92 = arith.mulf %84, %88 : vector<16x32xf32>
    %93 = arith.addf %91, %92 : vector<16x32xf32>
    %94 = math.tanh %93 : vector<16x32xf32>
    %95 = arith.mulf %90, %94 : vector<16x32xf32>
    %96 = arith.index_cast %c2_i32 : i32 to index
    %c0_44 = arith.constant 0 : index
    %c0_45 = arith.constant 0 : index
    %97 = vector.load %arg11[%96, %c0_44, %c0_45] : memref<8x16x32xf32, #tpu.memory_space<vmem>>, vector<1x16x32xf32>
    %98 = vector.shape_cast %97 : vector<1x16x32xf32> to vector<16x32xf32>
    %99 = vector.shape_cast %95 : vector<16x32xf32> to vector<1x16x32xf32>
    tpu.vector_store %arg11[%96, %c0_44, %c0_45], %99 {strides = array<i32>} : memref<8x16x32xf32, #tpu.memory_space<vmem>>, vector<1x16x32xf32>,
    %c3_i32 = arith.constant 3 : i32
    %100 = arith.index_cast %c3_i32 : i32 to index
    %c0_46 = arith.constant 0 : index
    %c0_47 = arith.constant 0 : index
    %101 = vector.load %arg10[%100, %c0_46, %c0_47] : memref<8x16x128xf32, #tpu.memory_space<vmem>>, vector<1x16x128xf32>
    %102 = vector.shape_cast %101 : vector<1x16x128xf32> to vector<16x128xf32>
    %c0_48 = arith.constant 0 : index
    %c0_49 = arith.constant 0 : index
    %c0_50 = arith.constant 0 : index
    %103 = vector.load %arg5[%c0_48, %c0_49, %c0_50] : memref<2x32x128xf32, #tpu.memory_space<vmem>>, vector<1x32x128xf32>
    %104 = vector.shape_cast %103 : vector<1x32x128xf32> to vector<32x128xf32>
    %cst_51 = arith.constant dense<0.000000e+00> : vector<16x128xf32>
    %105 = tpu.matmul %95, %104, %cst_51 {dimension_numbers = #tpu.dot_dimension_numbers<[1], [0], [0], [1], [0, 0, 1, 1], [], []>} : vector<16x32xf32>, vector<32x128xf32>, vector<16x128xf32> -> vector<16x128xf32>
    %106 = arith.addf %102, %105 : vector<16x128xf32>
    %107 = arith.negf %106 : vector<16x128xf32>
    %108 = math.exp %107 : vector<16x128xf32>
    %cst_52 = arith.constant 1.000000e+00 : f32
    %109 = vector.broadcast %cst_52 : f32 to vector<16x128xf32>
    %110 = arith.addf %109, %108 : vector<16x128xf32>
    %111 = arith.divf %109, %110 : vector<16x128xf32>
    %112 = math.tanh %106 : vector<16x128xf32>
    %113 = vector.extract_strided_slice %111 {offsets = [0, 0], sizes = [16, 32], strides = [1, 1]} : vector<16x128xf32> to vector<16x32xf32>
    %c96_i32_53 = arith.constant 96 : i32
    %114 = tpu.dynamic_rotate %111 by %c96_i32_53 dim 1 : vector<16x128xf32>, i32 -> vector<16x128xf32>
    %115 = vector.extract_strided_slice %114 {offsets = [0, 0], sizes = [16, 32], strides = [1, 1]} : vector<16x128xf32> to vector<16x32xf32>
    %c64_i32_54 = arith.constant 64 : i32
    %116 = tpu.dynamic_rotate %112 by %c64_i32_54 dim 1 : vector<16x128xf32>, i32 -> vector<16x128xf32>
    %117 = vector.extract_strided_slice %116 {offsets = [0, 0], sizes = [16, 32], strides = [1, 1]} : vector<16x128xf32> to vector<16x32xf32>
    %c32_i32_55 = arith.constant 32 : i32
    %118 = tpu.dynamic_rotate %111 by %c32_i32_55 dim 1 : vector<16x128xf32>, i32 -> vector<16x128xf32>
    %119 = vector.extract_strided_slice %118 {offsets = [0, 0], sizes = [16, 32], strides = [1, 1]} : vector<16x128xf32> to vector<16x32xf32>
    %120 = arith.mulf %115, %93 : vector<16x32xf32>
    %121 = arith.mulf %113, %117 : vector<16x32xf32>
    %122 = arith.addf %120, %121 : vector<16x32xf32>
    %123 = math.tanh %122 : vector<16x32xf32>
    %124 = arith.mulf %119, %123 : vector<16x32xf32>
    %125 = arith.index_cast %c3_i32 : i32 to index
    %c0_56 = arith.constant 0 : index
    %c0_57 = arith.constant 0 : index
    %126 = vector.load %arg11[%125, %c0_56, %c0_57] : memref<8x16x32xf32, #tpu.memory_space<vmem>>, vector<1x16x32xf32>
    %127 = vector.shape_cast %126 : vector<1x16x32xf32> to vector<16x32xf32>
    %128 = vector.shape_cast %124 : vector<16x32xf32> to vector<1x16x32xf32>
    tpu.vector_store %arg11[%125, %c0_56, %c0_57], %128 {strides = array<i32>} : memref<8x16x32xf32, #tpu.memory_space<vmem>>, vector<1x16x32xf32>,
    %c4_i32 = arith.constant 4 : i32
    %129 = arith.index_cast %c4_i32 : i32 to index
    %c0_58 = arith.constant 0 : index
    %c0_59 = arith.constant 0 : index
    %130 = vector.load %arg10[%129, %c0_58, %c0_59] : memref<8x16x128xf32, #tpu.memory_space<vmem>>, vector<1x16x128xf32>
    %131 = vector.shape_cast %130 : vector<1x16x128xf32> to vector<16x128xf32>
    %c0_60 = arith.constant 0 : index
    %c0_61 = arith.constant 0 : index
    %c0_62 = arith.constant 0 : index
    %132 = vector.load %arg5[%c0_60, %c0_61, %c0_62] : memref<2x32x128xf32, #tpu.memory_space<vmem>>, vector<1x32x128xf32>
    %133 = vector.shape_cast %132 : vector<1x32x128xf32> to vector<32x128xf32>
    %cst_63 = arith.constant dense<0.000000e+00> : vector<16x128xf32>
    %134 = tpu.matmul %124, %133, %cst_63 {dimension_numbers = #tpu.dot_dimension_numbers<[1], [0], [0], [1], [0, 0, 1, 1], [], []>} : vector<16x32xf32>, vector<32x128xf32>, vector<16x128xf32> -> vector<16x128xf32>
    %135 = arith.addf %131, %134 : vector<16x128xf32>
    %136 = arith.negf %135 : vector<16x128xf32>
    %137 = math.exp %136 : vector<16x128xf32>
    %cst_64 = arith.constant 1.000000e+00 : f32
    %138 = vector.broadcast %cst_64 : f32 to vector<16x128xf32>
    %139 = arith.addf %138, %137 : vector<16x128xf32>
    %140 = arith.divf %138, %139 : vector<16x128xf32>
    %141 = math.tanh %135 : vector<16x128xf32>
    %142 = vector.extract_strided_slice %140 {offsets = [0, 0], sizes = [16, 32], strides = [1, 1]} : vector<16x128xf32> to vector<16x32xf32>
    %c96_i32_65 = arith.constant 96 : i32
    %143 = tpu.dynamic_rotate %140 by %c96_i32_65 dim 1 : vector<16x128xf32>, i32 -> vector<16x128xf32>
    %144 = vector.extract_strided_slice %143 {offsets = [0, 0], sizes = [16, 32], strides = [1, 1]} : vector<16x128xf32> to vector<16x32xf32>
    %c64_i32_66 = arith.constant 64 : i32
    %145 = tpu.dynamic_rotate %141 by %c64_i32_66 dim 1 : vector<16x128xf32>, i32 -> vector<16x128xf32>
    %146 = vector.extract_strided_slice %145 {offsets = [0, 0], sizes = [16, 32], strides = [1, 1]} : vector<16x128xf32> to vector<16x32xf32>
    %c32_i32_67 = arith.constant 32 : i32
    %147 = tpu.dynamic_rotate %140 by %c32_i32_67 dim 1 : vector<16x128xf32>, i32 -> vector<16x128xf32>
    %148 = vector.extract_strided_slice %147 {offsets = [0, 0], sizes = [16, 32], strides = [1, 1]} : vector<16x128xf32> to vector<16x32xf32>
    %149 = arith.mulf %144, %122 : vector<16x32xf32>
    %150 = arith.mulf %142, %146 : vector<16x32xf32>
    %151 = arith.addf %149, %150 : vector<16x32xf32>
    %152 = math.tanh %151 : vector<16x32xf32>
    %153 = arith.mulf %148, %152 : vector<16x32xf32>
    %154 = arith.index_cast %c4_i32 : i32 to index
    %c0_68 = arith.constant 0 : index
    %c0_69 = arith.constant 0 : index
    %155 = vector.load %arg11[%154, %c0_68, %c0_69] : memref<8x16x32xf32, #tpu.memory_space<vmem>>, vector<1x16x32xf32>
    %156 = vector.shape_cast %155 : vector<1x16x32xf32> to vector<16x32xf32>
    %157 = vector.shape_cast %153 : vector<16x32xf32> to vector<1x16x32xf32>
    tpu.vector_store %arg11[%154, %c0_68, %c0_69], %157 {strides = array<i32>} : memref<8x16x32xf32, #tpu.memory_space<vmem>>, vector<1x16x32xf32>,
    %c5_i32 = arith.constant 5 : i32
    %158 = arith.index_cast %c5_i32 : i32 to index
    %c0_70 = arith.constant 0 : index
    %c0_71 = arith.constant 0 : index
    %159 = vector.load %arg10[%158, %c0_70, %c0_71] : memref<8x16x128xf32, #tpu.memory_space<vmem>>, vector<1x16x128xf32>
    %160 = vector.shape_cast %159 : vector<1x16x128xf32> to vector<16x128xf32>
    %c0_72 = arith.constant 0 : index
    %c0_73 = arith.constant 0 : index
    %c0_74 = arith.constant 0 : index
    %161 = vector.load %arg5[%c0_72, %c0_73, %c0_74] : memref<2x32x128xf32, #tpu.memory_space<vmem>>, vector<1x32x128xf32>
    %162 = vector.shape_cast %161 : vector<1x32x128xf32> to vector<32x128xf32>
    %cst_75 = arith.constant dense<0.000000e+00> : vector<16x128xf32>
    %163 = tpu.matmul %153, %162, %cst_75 {dimension_numbers = #tpu.dot_dimension_numbers<[1], [0], [0], [1], [0, 0, 1, 1], [], []>} : vector<16x32xf32>, vector<32x128xf32>, vector<16x128xf32> -> vector<16x128xf32>
    %164 = arith.addf %160, %163 : vector<16x128xf32>
    %165 = arith.negf %164 : vector<16x128xf32>
    %166 = math.exp %165 : vector<16x128xf32>
    %cst_76 = arith.constant 1.000000e+00 : f32
    %167 = vector.broadcast %cst_76 : f32 to vector<16x128xf32>
    %168 = arith.addf %167, %166 : vector<16x128xf32>
    %169 = arith.divf %167, %168 : vector<16x128xf32>
    %170 = math.tanh %164 : vector<16x128xf32>
    %171 = vector.extract_strided_slice %169 {offsets = [0, 0], sizes = [16, 32], strides = [1, 1]} : vector<16x128xf32> to vector<16x32xf32>
    %c96_i32_77 = arith.constant 96 : i32
    %172 = tpu.dynamic_rotate %169 by %c96_i32_77 dim 1 : vector<16x128xf32>, i32 -> vector<16x128xf32>
    %173 = vector.extract_strided_slice %172 {offsets = [0, 0], sizes = [16, 32], strides = [1, 1]} : vector<16x128xf32> to vector<16x32xf32>
    %c64_i32_78 = arith.constant 64 : i32
    %174 = tpu.dynamic_rotate %170 by %c64_i32_78 dim 1 : vector<16x128xf32>, i32 -> vector<16x128xf32>
    %175 = vector.extract_strided_slice %174 {offsets = [0, 0], sizes = [16, 32], strides = [1, 1]} : vector<16x128xf32> to vector<16x32xf32>
    %c32_i32_79 = arith.constant 32 : i32
    %176 = tpu.dynamic_rotate %169 by %c32_i32_79 dim 1 : vector<16x128xf32>, i32 -> vector<16x128xf32>
    %177 = vector.extract_strided_slice %176 {offsets = [0, 0], sizes = [16, 32], strides = [1, 1]} : vector<16x128xf32> to vector<16x32xf32>
    %178 = arith.mulf %173, %151 : vector<16x32xf32>
    %179 = arith.mulf %171, %175 : vector<16x32xf32>
    %180 = arith.addf %178, %179 : vector<16x32xf32>
    %181 = math.tanh %180 : vector<16x32xf32>
    %182 = arith.mulf %177, %181 : vector<16x32xf32>
    %183 = arith.index_cast %c5_i32 : i32 to index
    %c0_80 = arith.constant 0 : index
    %c0_81 = arith.constant 0 : index
    %184 = vector.load %arg11[%183, %c0_80, %c0_81] : memref<8x16x32xf32, #tpu.memory_space<vmem>>, vector<1x16x32xf32>
    %185 = vector.shape_cast %184 : vector<1x16x32xf32> to vector<16x32xf32>
    %186 = vector.shape_cast %182 : vector<16x32xf32> to vector<1x16x32xf32>
    tpu.vector_store %arg11[%183, %c0_80, %c0_81], %186 {strides = array<i32>} : memref<8x16x32xf32, #tpu.memory_space<vmem>>, vector<1x16x32xf32>,
    %c6_i32 = arith.constant 6 : i32
    %187 = arith.index_cast %c6_i32 : i32 to index
    %c0_82 = arith.constant 0 : index
    %c0_83 = arith.constant 0 : index
    %188 = vector.load %arg10[%187, %c0_82, %c0_83] : memref<8x16x128xf32, #tpu.memory_space<vmem>>, vector<1x16x128xf32>
    %189 = vector.shape_cast %188 : vector<1x16x128xf32> to vector<16x128xf32>
    %c0_84 = arith.constant 0 : index
    %c0_85 = arith.constant 0 : index
    %c0_86 = arith.constant 0 : index
    %190 = vector.load %arg5[%c0_84, %c0_85, %c0_86] : memref<2x32x128xf32, #tpu.memory_space<vmem>>, vector<1x32x128xf32>
    %191 = vector.shape_cast %190 : vector<1x32x128xf32> to vector<32x128xf32>
    %cst_87 = arith.constant dense<0.000000e+00> : vector<16x128xf32>
    %192 = tpu.matmul %182, %191, %cst_87 {dimension_numbers = #tpu.dot_dimension_numbers<[1], [0], [0], [1], [0, 0, 1, 1], [], []>} : vector<16x32xf32>, vector<32x128xf32>, vector<16x128xf32> -> vector<16x128xf32>
    %193 = arith.addf %189, %192 : vector<16x128xf32>
    %194 = arith.negf %193 : vector<16x128xf32>
    %195 = math.exp %194 : vector<16x128xf32>
    %cst_88 = arith.constant 1.000000e+00 : f32
    %196 = vector.broadcast %cst_88 : f32 to vector<16x128xf32>
    %197 = arith.addf %196, %195 : vector<16x128xf32>
    %198 = arith.divf %196, %197 : vector<16x128xf32>
    %199 = math.tanh %193 : vector<16x128xf32>
    %200 = vector.extract_strided_slice %198 {offsets = [0, 0], sizes = [16, 32], strides = [1, 1]} : vector<16x128xf32> to vector<16x32xf32>
    %c96_i32_89 = arith.constant 96 : i32
    %201 = tpu.dynamic_rotate %198 by %c96_i32_89 dim 1 : vector<16x128xf32>, i32 -> vector<16x128xf32>
    %202 = vector.extract_strided_slice %201 {offsets = [0, 0], sizes = [16, 32], strides = [1, 1]} : vector<16x128xf32> to vector<16x32xf32>
    %c64_i32_90 = arith.constant 64 : i32
    %203 = tpu.dynamic_rotate %199 by %c64_i32_90 dim 1 : vector<16x128xf32>, i32 -> vector<16x128xf32>
    %204 = vector.extract_strided_slice %203 {offsets = [0, 0], sizes = [16, 32], strides = [1, 1]} : vector<16x128xf32> to vector<16x32xf32>
    %c32_i32_91 = arith.constant 32 : i32
    %205 = tpu.dynamic_rotate %198 by %c32_i32_91 dim 1 : vector<16x128xf32>, i32 -> vector<16x128xf32>
    %206 = vector.extract_strided_slice %205 {offsets = [0, 0], sizes = [16, 32], strides = [1, 1]} : vector<16x128xf32> to vector<16x32xf32>
    %207 = arith.mulf %202, %180 : vector<16x32xf32>
    %208 = arith.mulf %200, %204 : vector<16x32xf32>
    %209 = arith.addf %207, %208 : vector<16x32xf32>
    %210 = math.tanh %209 : vector<16x32xf32>
    %211 = arith.mulf %206, %210 : vector<16x32xf32>
    %212 = arith.index_cast %c6_i32 : i32 to index
    %c0_92 = arith.constant 0 : index
    %c0_93 = arith.constant 0 : index
    %213 = vector.load %arg11[%212, %c0_92, %c0_93] : memref<8x16x32xf32, #tpu.memory_space<vmem>>, vector<1x16x32xf32>
    %214 = vector.shape_cast %213 : vector<1x16x32xf32> to vector<16x32xf32>
    %215 = vector.shape_cast %211 : vector<16x32xf32> to vector<1x16x32xf32>
    tpu.vector_store %arg11[%212, %c0_92, %c0_93], %215 {strides = array<i32>} : memref<8x16x32xf32, #tpu.memory_space<vmem>>, vector<1x16x32xf32>,
    %c7_i32 = arith.constant 7 : i32
    %216 = arith.index_cast %c7_i32 : i32 to index
    %c0_94 = arith.constant 0 : index
    %c0_95 = arith.constant 0 : index
    %217 = vector.load %arg10[%216, %c0_94, %c0_95] : memref<8x16x128xf32, #tpu.memory_space<vmem>>, vector<1x16x128xf32>
    %218 = vector.shape_cast %217 : vector<1x16x128xf32> to vector<16x128xf32>
    %c0_96 = arith.constant 0 : index
    %c0_97 = arith.constant 0 : index
    %c0_98 = arith.constant 0 : index
    %219 = vector.load %arg5[%c0_96, %c0_97, %c0_98] : memref<2x32x128xf32, #tpu.memory_space<vmem>>, vector<1x32x128xf32>
    %220 = vector.shape_cast %219 : vector<1x32x128xf32> to vector<32x128xf32>
    %cst_99 = arith.constant dense<0.000000e+00> : vector<16x128xf32>
    %221 = tpu.matmul %211, %220, %cst_99 {dimension_numbers = #tpu.dot_dimension_numbers<[1], [0], [0], [1], [0, 0, 1, 1], [], []>} : vector<16x32xf32>, vector<32x128xf32>, vector<16x128xf32> -> vector<16x128xf32>
    %222 = arith.addf %218, %221 : vector<16x128xf32>
    %223 = arith.negf %222 : vector<16x128xf32>
    %224 = math.exp %223 : vector<16x128xf32>
    %cst_100 = arith.constant 1.000000e+00 : f32
    %225 = vector.broadcast %cst_100 : f32 to vector<16x128xf32>
    %226 = arith.addf %225, %224 : vector<16x128xf32>
    %227 = arith.divf %225, %226 : vector<16x128xf32>
    %228 = math.tanh %222 : vector<16x128xf32>
    %229 = vector.extract_strided_slice %227 {offsets = [0, 0], sizes = [16, 32], strides = [1, 1]} : vector<16x128xf32> to vector<16x32xf32>
    %c96_i32_101 = arith.constant 96 : i32
    %230 = tpu.dynamic_rotate %227 by %c96_i32_101 dim 1 : vector<16x128xf32>, i32 -> vector<16x128xf32>
    %231 = vector.extract_strided_slice %230 {offsets = [0, 0], sizes = [16, 32], strides = [1, 1]} : vector<16x128xf32> to vector<16x32xf32>
    %c64_i32_102 = arith.constant 64 : i32
    %232 = tpu.dynamic_rotate %228 by %c64_i32_102 dim 1 : vector<16x128xf32>, i32 -> vector<16x128xf32>
    %233 = vector.extract_strided_slice %232 {offsets = [0, 0], sizes = [16, 32], strides = [1, 1]} : vector<16x128xf32> to vector<16x32xf32>
    %c32_i32_103 = arith.constant 32 : i32
    %234 = tpu.dynamic_rotate %227 by %c32_i32_103 dim 1 : vector<16x128xf32>, i32 -> vector<16x128xf32>
    %235 = vector.extract_strided_slice %234 {offsets = [0, 0], sizes = [16, 32], strides = [1, 1]} : vector<16x128xf32> to vector<16x32xf32>
    %236 = arith.mulf %231, %209 : vector<16x32xf32>
    %237 = arith.mulf %229, %233 : vector<16x32xf32>
    %238 = arith.addf %236, %237 : vector<16x32xf32>
    %239 = math.tanh %238 : vector<16x32xf32>
    %240 = arith.mulf %235, %239 : vector<16x32xf32>
    %241 = arith.index_cast %c7_i32 : i32 to index
    %c0_104 = arith.constant 0 : index
    %c0_105 = arith.constant 0 : index
    %242 = vector.load %arg11[%241, %c0_104, %c0_105] : memref<8x16x32xf32, #tpu.memory_space<vmem>>, vector<1x16x32xf32>
    %243 = vector.shape_cast %242 : vector<1x16x32xf32> to vector<16x32xf32>
    %244 = vector.shape_cast %240 : vector<16x32xf32> to vector<1x16x32xf32>
    tpu.vector_store %arg11[%241, %c0_104, %c0_105], %244 {strides = array<i32>} : memref<8x16x32xf32, #tpu.memory_space<vmem>>, vector<1x16x32xf32>,
    %c8_i32 = arith.constant 8 : i32
    %c0_106 = arith.constant 0 : index
    %c0_107 = arith.constant 0 : index
    %c0_108 = arith.constant 0 : index
    %245 = vector.load %arg11[%c0_106, %c0_107, %c0_108] : memref<8x16x32xf32, #tpu.memory_space<vmem>>, vector<8x16x32xf32>
    %246 = vector.shape_cast %245 : vector<8x16x32xf32> to vector<128x32xf32>
    %c0_109 = arith.constant 0 : index
    %c0_110 = arith.constant 0 : index
    %c0_111 = arith.constant 0 : index
    %247 = vector.load %arg4[%c0_109, %c0_110, %c0_111] : memref<1x32x128xf32, #tpu.memory_space<vmem>>, vector<1x32x128xf32>
    %248 = vector.shape_cast %247 : vector<1x32x128xf32> to vector<32x128xf32>
    %cst_112 = arith.constant dense<0.000000e+00> : vector<128x128xf32>
    %249 = tpu.matmul %246, %248, %cst_112 {dimension_numbers = #tpu.dot_dimension_numbers<[1], [0], [0], [1], [0, 0, 1, 1], [], []>} : vector<128x32xf32>, vector<32x128xf32>, vector<128x128xf32> -> vector<128x128xf32>
    %250 = vector.shape_cast %249 : vector<128x128xf32> to vector<8x16x128xf32>
    %c1 = arith.constant 1 : index
    %c0_113 = arith.constant 0 : index
    %c0_114 = arith.constant 0 : index
    %251 = vector.load %arg6[%c1, %c0_113, %c0_114] : memref<2x1x128xf32, #tpu.memory_space<vmem>>, vector<1x1x128xf32>
    %252 = vector.shape_cast %251 : vector<1x1x128xf32> to vector<1x128xf32>
    %253 = vector.shape_cast %252 : vector<1x128xf32> to vector<1x1x128xf32>
    %254 = vector.broadcast %253 : vector<1x1x128xf32> to vector<8x16x128xf32>
    %255 = arith.addf %250, %254 : vector<8x16x128xf32>
    %c0_115 = arith.constant 0 : index
    %c0_116 = arith.constant 0 : index
    %c0_117 = arith.constant 0 : index
    %256 = vector.load %arg10[%c0_115, %c0_116, %c0_117] : memref<8x16x128xf32, #tpu.memory_space<vmem>>, vector<8x16x128xf32>
    tpu.vector_store %arg10[%c0_115, %c0_116, %c0_117], %255 {strides = array<i32>} : memref<8x16x128xf32, #tpu.memory_space<vmem>>, vector<8x16x128xf32>,
    %cst_118 = arith.constant 0.000000e+00 : f32
    %257 = vector.broadcast %cst_118 : f32 to vector<16x32xf32>
    %c0_i32_119 = arith.constant 0 : i32
    %258 = arith.index_cast %c0_i32_119 : i32 to index
    %c0_120 = arith.constant 0 : index
    %c0_121 = arith.constant 0 : index
    %259 = vector.load %arg10[%258, %c0_120, %c0_121] : memref<8x16x128xf32, #tpu.memory_space<vmem>>, vector<1x16x128xf32>
    %260 = vector.shape_cast %259 : vector<1x16x128xf32> to vector<16x128xf32>
    %c1_122 = arith.constant 1 : index
    %c0_123 = arith.constant 0 : index
    %c0_124 = arith.constant 0 : index
    %261 = vector.load %arg5[%c1_122, %c0_123, %c0_124] : memref<2x32x128xf32, #tpu.memory_space<vmem>>, vector<1x32x128xf32>
    %262 = vector.shape_cast %261 : vector<1x32x128xf32> to vector<32x128xf32>
    %cst_125 = arith.constant dense<0.000000e+00> : vector<16x128xf32>
    %263 = tpu.matmul %257, %262, %cst_125 {dimension_numbers = #tpu.dot_dimension_numbers<[1], [0], [0], [1], [0, 0, 1, 1], [], []>} : vector<16x32xf32>, vector<32x128xf32>, vector<16x128xf32> -> vector<16x128xf32>
    %264 = arith.addf %260, %263 : vector<16x128xf32>
    %265 = arith.negf %264 : vector<16x128xf32>
    %266 = math.exp %265 : vector<16x128xf32>
    %cst_126 = arith.constant 1.000000e+00 : f32
    %267 = vector.broadcast %cst_126 : f32 to vector<16x128xf32>
    %268 = arith.addf %267, %266 : vector<16x128xf32>
    %269 = arith.divf %267, %268 : vector<16x128xf32>
    %270 = math.tanh %264 : vector<16x128xf32>
    %271 = vector.extract_strided_slice %269 {offsets = [0, 0], sizes = [16, 32], strides = [1, 1]} : vector<16x128xf32> to vector<16x32xf32>
    %c96_i32_127 = arith.constant 96 : i32
    %272 = tpu.dynamic_rotate %269 by %c96_i32_127 dim 1 : vector<16x128xf32>, i32 -> vector<16x128xf32>
    %273 = vector.extract_strided_slice %272 {offsets = [0, 0], sizes = [16, 32], strides = [1, 1]} : vector<16x128xf32> to vector<16x32xf32>
    %c64_i32_128 = arith.constant 64 : i32
    %274 = tpu.dynamic_rotate %270 by %c64_i32_128 dim 1 : vector<16x128xf32>, i32 -> vector<16x128xf32>
    %275 = vector.extract_strided_slice %274 {offsets = [0, 0], sizes = [16, 32], strides = [1, 1]} : vector<16x128xf32> to vector<16x32xf32>
    %c32_i32_129 = arith.constant 32 : i32
    %276 = tpu.dynamic_rotate %269 by %c32_i32_129 dim 1 : vector<16x128xf32>, i32 -> vector<16x128xf32>
    %277 = vector.extract_strided_slice %276 {offsets = [0, 0], sizes = [16, 32], strides = [1, 1]} : vector<16x128xf32> to vector<16x32xf32>
    %278 = arith.mulf %273, %257 : vector<16x32xf32>
    %279 = arith.mulf %271, %275 : vector<16x32xf32>
    %280 = arith.addf %278, %279 : vector<16x32xf32>
    %281 = math.tanh %280 : vector<16x32xf32>
    %282 = arith.mulf %277, %281 : vector<16x32xf32>
    %283 = arith.index_cast %c0_i32_119 : i32 to index
    %c0_130 = arith.constant 0 : index
    %c0_131 = arith.constant 0 : index
    %284 = vector.load %arg11[%283, %c0_130, %c0_131] : memref<8x16x32xf32, #tpu.memory_space<vmem>>, vector<1x16x32xf32>
    %285 = vector.shape_cast %284 : vector<1x16x32xf32> to vector<16x32xf32>
    %286 = vector.shape_cast %282 : vector<16x32xf32> to vector<1x16x32xf32>
    tpu.vector_store %arg11[%283, %c0_130, %c0_131], %286 {strides = array<i32>} : memref<8x16x32xf32, #tpu.memory_space<vmem>>, vector<1x16x32xf32>,
    %c1_i32_132 = arith.constant 1 : i32
    %287 = arith.index_cast %c1_i32_132 : i32 to index
    %c0_133 = arith.constant 0 : index
    %c0_134 = arith.constant 0 : index
    %288 = vector.load %arg10[%287, %c0_133, %c0_134] : memref<8x16x128xf32, #tpu.memory_space<vmem>>, vector<1x16x128xf32>
    %289 = vector.shape_cast %288 : vector<1x16x128xf32> to vector<16x128xf32>
    %c1_135 = arith.constant 1 : index
    %c0_136 = arith.constant 0 : index
    %c0_137 = arith.constant 0 : index
    %290 = vector.load %arg5[%c1_135, %c0_136, %c0_137] : memref<2x32x128xf32, #tpu.memory_space<vmem>>, vector<1x32x128xf32>
    %291 = vector.shape_cast %290 : vector<1x32x128xf32> to vector<32x128xf32>
    %cst_138 = arith.constant dense<0.000000e+00> : vector<16x128xf32>
    %292 = tpu.matmul %282, %291, %cst_138 {dimension_numbers = #tpu.dot_dimension_numbers<[1], [0], [0], [1], [0, 0, 1, 1], [], []>} : vector<16x32xf32>, vector<32x128xf32>, vector<16x128xf32> -> vector<16x128xf32>
    %293 = arith.addf %289, %292 : vector<16x128xf32>
    %294 = arith.negf %293 : vector<16x128xf32>
    %295 = math.exp %294 : vector<16x128xf32>
    %cst_139 = arith.constant 1.000000e+00 : f32
    %296 = vector.broadcast %cst_139 : f32 to vector<16x128xf32>
    %297 = arith.addf %296, %295 : vector<16x128xf32>
    %298 = arith.divf %296, %297 : vector<16x128xf32>
    %299 = math.tanh %293 : vector<16x128xf32>
    %300 = vector.extract_strided_slice %298 {offsets = [0, 0], sizes = [16, 32], strides = [1, 1]} : vector<16x128xf32> to vector<16x32xf32>
    %c96_i32_140 = arith.constant 96 : i32
    %301 = tpu.dynamic_rotate %298 by %c96_i32_140 dim 1 : vector<16x128xf32>, i32 -> vector<16x128xf32>
    %302 = vector.extract_strided_slice %301 {offsets = [0, 0], sizes = [16, 32], strides = [1, 1]} : vector<16x128xf32> to vector<16x32xf32>
    %c64_i32_141 = arith.constant 64 : i32
    %303 = tpu.dynamic_rotate %299 by %c64_i32_141 dim 1 : vector<16x128xf32>, i32 -> vector<16x128xf32>
    %304 = vector.extract_strided_slice %303 {offsets = [0, 0], sizes = [16, 32], strides = [1, 1]} : vector<16x128xf32> to vector<16x32xf32>
    %c32_i32_142 = arith.constant 32 : i32
    %305 = tpu.dynamic_rotate %298 by %c32_i32_142 dim 1 : vector<16x128xf32>, i32 -> vector<16x128xf32>
    %306 = vector.extract_strided_slice %305 {offsets = [0, 0], sizes = [16, 32], strides = [1, 1]} : vector<16x128xf32> to vector<16x32xf32>
    %307 = arith.mulf %302, %280 : vector<16x32xf32>
    %308 = arith.mulf %300, %304 : vector<16x32xf32>
    %309 = arith.addf %307, %308 : vector<16x32xf32>
    %310 = math.tanh %309 : vector<16x32xf32>
    %311 = arith.mulf %306, %310 : vector<16x32xf32>
    %312 = arith.index_cast %c1_i32_132 : i32 to index
    %c0_143 = arith.constant 0 : index
    %c0_144 = arith.constant 0 : index
    %313 = vector.load %arg11[%312, %c0_143, %c0_144] : memref<8x16x32xf32, #tpu.memory_space<vmem>>, vector<1x16x32xf32>
    %314 = vector.shape_cast %313 : vector<1x16x32xf32> to vector<16x32xf32>
    %315 = vector.shape_cast %311 : vector<16x32xf32> to vector<1x16x32xf32>
    tpu.vector_store %arg11[%312, %c0_143, %c0_144], %315 {strides = array<i32>} : memref<8x16x32xf32, #tpu.memory_space<vmem>>, vector<1x16x32xf32>,
    %c2_i32_145 = arith.constant 2 : i32
    %316 = arith.index_cast %c2_i32_145 : i32 to index
    %c0_146 = arith.constant 0 : index
    %c0_147 = arith.constant 0 : index
    %317 = vector.load %arg10[%316, %c0_146, %c0_147] : memref<8x16x128xf32, #tpu.memory_space<vmem>>, vector<1x16x128xf32>
    %318 = vector.shape_cast %317 : vector<1x16x128xf32> to vector<16x128xf32>
    %c1_148 = arith.constant 1 : index
    %c0_149 = arith.constant 0 : index
    %c0_150 = arith.constant 0 : index
    %319 = vector.load %arg5[%c1_148, %c0_149, %c0_150] : memref<2x32x128xf32, #tpu.memory_space<vmem>>, vector<1x32x128xf32>
    %320 = vector.shape_cast %319 : vector<1x32x128xf32> to vector<32x128xf32>
    %cst_151 = arith.constant dense<0.000000e+00> : vector<16x128xf32>
    %321 = tpu.matmul %311, %320, %cst_151 {dimension_numbers = #tpu.dot_dimension_numbers<[1], [0], [0], [1], [0, 0, 1, 1], [], []>} : vector<16x32xf32>, vector<32x128xf32>, vector<16x128xf32> -> vector<16x128xf32>
    %322 = arith.addf %318, %321 : vector<16x128xf32>
    %323 = arith.negf %322 : vector<16x128xf32>
    %324 = math.exp %323 : vector<16x128xf32>
    %cst_152 = arith.constant 1.000000e+00 : f32
    %325 = vector.broadcast %cst_152 : f32 to vector<16x128xf32>
    %326 = arith.addf %325, %324 : vector<16x128xf32>
    %327 = arith.divf %325, %326 : vector<16x128xf32>
    %328 = math.tanh %322 : vector<16x128xf32>
    %329 = vector.extract_strided_slice %327 {offsets = [0, 0], sizes = [16, 32], strides = [1, 1]} : vector<16x128xf32> to vector<16x32xf32>
    %c96_i32_153 = arith.constant 96 : i32
    %330 = tpu.dynamic_rotate %327 by %c96_i32_153 dim 1 : vector<16x128xf32>, i32 -> vector<16x128xf32>
    %331 = vector.extract_strided_slice %330 {offsets = [0, 0], sizes = [16, 32], strides = [1, 1]} : vector<16x128xf32> to vector<16x32xf32>
    %c64_i32_154 = arith.constant 64 : i32
    %332 = tpu.dynamic_rotate %328 by %c64_i32_154 dim 1 : vector<16x128xf32>, i32 -> vector<16x128xf32>
    %333 = vector.extract_strided_slice %332 {offsets = [0, 0], sizes = [16, 32], strides = [1, 1]} : vector<16x128xf32> to vector<16x32xf32>
    %c32_i32_155 = arith.constant 32 : i32
    %334 = tpu.dynamic_rotate %327 by %c32_i32_155 dim 1 : vector<16x128xf32>, i32 -> vector<16x128xf32>
    %335 = vector.extract_strided_slice %334 {offsets = [0, 0], sizes = [16, 32], strides = [1, 1]} : vector<16x128xf32> to vector<16x32xf32>
    %336 = arith.mulf %331, %309 : vector<16x32xf32>
    %337 = arith.mulf %329, %333 : vector<16x32xf32>
    %338 = arith.addf %336, %337 : vector<16x32xf32>
    %339 = math.tanh %338 : vector<16x32xf32>
    %340 = arith.mulf %335, %339 : vector<16x32xf32>
    %341 = arith.index_cast %c2_i32_145 : i32 to index
    %c0_156 = arith.constant 0 : index
    %c0_157 = arith.constant 0 : index
    %342 = vector.load %arg11[%341, %c0_156, %c0_157] : memref<8x16x32xf32, #tpu.memory_space<vmem>>, vector<1x16x32xf32>
    %343 = vector.shape_cast %342 : vector<1x16x32xf32> to vector<16x32xf32>
    %344 = vector.shape_cast %340 : vector<16x32xf32> to vector<1x16x32xf32>
    tpu.vector_store %arg11[%341, %c0_156, %c0_157], %344 {strides = array<i32>} : memref<8x16x32xf32, #tpu.memory_space<vmem>>, vector<1x16x32xf32>,
    %c3_i32_158 = arith.constant 3 : i32
    %345 = arith.index_cast %c3_i32_158 : i32 to index
    %c0_159 = arith.constant 0 : index
    %c0_160 = arith.constant 0 : index
    %346 = vector.load %arg10[%345, %c0_159, %c0_160] : memref<8x16x128xf32, #tpu.memory_space<vmem>>, vector<1x16x128xf32>
    %347 = vector.shape_cast %346 : vector<1x16x128xf32> to vector<16x128xf32>
    %c1_161 = arith.constant 1 : index
    %c0_162 = arith.constant 0 : index
    %c0_163 = arith.constant 0 : index
    %348 = vector.load %arg5[%c1_161, %c0_162, %c0_163] : memref<2x32x128xf32, #tpu.memory_space<vmem>>, vector<1x32x128xf32>
    %349 = vector.shape_cast %348 : vector<1x32x128xf32> to vector<32x128xf32>
    %cst_164 = arith.constant dense<0.000000e+00> : vector<16x128xf32>
    %350 = tpu.matmul %340, %349, %cst_164 {dimension_numbers = #tpu.dot_dimension_numbers<[1], [0], [0], [1], [0, 0, 1, 1], [], []>} : vector<16x32xf32>, vector<32x128xf32>, vector<16x128xf32> -> vector<16x128xf32>
    %351 = arith.addf %347, %350 : vector<16x128xf32>
    %352 = arith.negf %351 : vector<16x128xf32>
    %353 = math.exp %352 : vector<16x128xf32>
    %cst_165 = arith.constant 1.000000e+00 : f32
    %354 = vector.broadcast %cst_165 : f32 to vector<16x128xf32>
    %355 = arith.addf %354, %353 : vector<16x128xf32>
    %356 = arith.divf %354, %355 : vector<16x128xf32>
    %357 = math.tanh %351 : vector<16x128xf32>
    %358 = vector.extract_strided_slice %356 {offsets = [0, 0], sizes = [16, 32], strides = [1, 1]} : vector<16x128xf32> to vector<16x32xf32>
    %c96_i32_166 = arith.constant 96 : i32
    %359 = tpu.dynamic_rotate %356 by %c96_i32_166 dim 1 : vector<16x128xf32>, i32 -> vector<16x128xf32>
    %360 = vector.extract_strided_slice %359 {offsets = [0, 0], sizes = [16, 32], strides = [1, 1]} : vector<16x128xf32> to vector<16x32xf32>
    %c64_i32_167 = arith.constant 64 : i32
    %361 = tpu.dynamic_rotate %357 by %c64_i32_167 dim 1 : vector<16x128xf32>, i32 -> vector<16x128xf32>
    %362 = vector.extract_strided_slice %361 {offsets = [0, 0], sizes = [16, 32], strides = [1, 1]} : vector<16x128xf32> to vector<16x32xf32>
    %c32_i32_168 = arith.constant 32 : i32
    %363 = tpu.dynamic_rotate %356 by %c32_i32_168 dim 1 : vector<16x128xf32>, i32 -> vector<16x128xf32>
    %364 = vector.extract_strided_slice %363 {offsets = [0, 0], sizes = [16, 32], strides = [1, 1]} : vector<16x128xf32> to vector<16x32xf32>
    %365 = arith.mulf %360, %338 : vector<16x32xf32>
    %366 = arith.mulf %358, %362 : vector<16x32xf32>
    %367 = arith.addf %365, %366 : vector<16x32xf32>
    %368 = math.tanh %367 : vector<16x32xf32>
    %369 = arith.mulf %364, %368 : vector<16x32xf32>
    %370 = arith.index_cast %c3_i32_158 : i32 to index
    %c0_169 = arith.constant 0 : index
    %c0_170 = arith.constant 0 : index
    %371 = vector.load %arg11[%370, %c0_169, %c0_170] : memref<8x16x32xf32, #tpu.memory_space<vmem>>, vector<1x16x32xf32>
    %372 = vector.shape_cast %371 : vector<1x16x32xf32> to vector<16x32xf32>
    %373 = vector.shape_cast %369 : vector<16x32xf32> to vector<1x16x32xf32>
    tpu.vector_store %arg11[%370, %c0_169, %c0_170], %373 {strides = array<i32>} : memref<8x16x32xf32, #tpu.memory_space<vmem>>, vector<1x16x32xf32>,
    %c4_i32_171 = arith.constant 4 : i32
    %374 = arith.index_cast %c4_i32_171 : i32 to index
    %c0_172 = arith.constant 0 : index
    %c0_173 = arith.constant 0 : index
    %375 = vector.load %arg10[%374, %c0_172, %c0_173] : memref<8x16x128xf32, #tpu.memory_space<vmem>>, vector<1x16x128xf32>
    %376 = vector.shape_cast %375 : vector<1x16x128xf32> to vector<16x128xf32>
    %c1_174 = arith.constant 1 : index
    %c0_175 = arith.constant 0 : index
    %c0_176 = arith.constant 0 : index
    %377 = vector.load %arg5[%c1_174, %c0_175, %c0_176] : memref<2x32x128xf32, #tpu.memory_space<vmem>>, vector<1x32x128xf32>
    %378 = vector.shape_cast %377 : vector<1x32x128xf32> to vector<32x128xf32>
    %cst_177 = arith.constant dense<0.000000e+00> : vector<16x128xf32>
    %379 = tpu.matmul %369, %378, %cst_177 {dimension_numbers = #tpu.dot_dimension_numbers<[1], [0], [0], [1], [0, 0, 1, 1], [], []>} : vector<16x32xf32>, vector<32x128xf32>, vector<16x128xf32> -> vector<16x128xf32>
    %380 = arith.addf %376, %379 : vector<16x128xf32>
    %381 = arith.negf %380 : vector<16x128xf32>
    %382 = math.exp %381 : vector<16x128xf32>
    %cst_178 = arith.constant 1.000000e+00 : f32
    %383 = vector.broadcast %cst_178 : f32 to vector<16x128xf32>
    %384 = arith.addf %383, %382 : vector<16x128xf32>
    %385 = arith.divf %383, %384 : vector<16x128xf32>
    %386 = math.tanh %380 : vector<16x128xf32>
    %387 = vector.extract_strided_slice %385 {offsets = [0, 0], sizes = [16, 32], strides = [1, 1]} : vector<16x128xf32> to vector<16x32xf32>
    %c96_i32_179 = arith.constant 96 : i32
    %388 = tpu.dynamic_rotate %385 by %c96_i32_179 dim 1 : vector<16x128xf32>, i32 -> vector<16x128xf32>
    %389 = vector.extract_strided_slice %388 {offsets = [0, 0], sizes = [16, 32], strides = [1, 1]} : vector<16x128xf32> to vector<16x32xf32>
    %c64_i32_180 = arith.constant 64 : i32
    %390 = tpu.dynamic_rotate %386 by %c64_i32_180 dim 1 : vector<16x128xf32>, i32 -> vector<16x128xf32>
    %391 = vector.extract_strided_slice %390 {offsets = [0, 0], sizes = [16, 32], strides = [1, 1]} : vector<16x128xf32> to vector<16x32xf32>
    %c32_i32_181 = arith.constant 32 : i32
    %392 = tpu.dynamic_rotate %385 by %c32_i32_181 dim 1 : vector<16x128xf32>, i32 -> vector<16x128xf32>
    %393 = vector.extract_strided_slice %392 {offsets = [0, 0], sizes = [16, 32], strides = [1, 1]} : vector<16x128xf32> to vector<16x32xf32>
    %394 = arith.mulf %389, %367 : vector<16x32xf32>
    %395 = arith.mulf %387, %391 : vector<16x32xf32>
    %396 = arith.addf %394, %395 : vector<16x32xf32>
    %397 = math.tanh %396 : vector<16x32xf32>
    %398 = arith.mulf %393, %397 : vector<16x32xf32>
    %399 = arith.index_cast %c4_i32_171 : i32 to index
    %c0_182 = arith.constant 0 : index
    %c0_183 = arith.constant 0 : index
    %400 = vector.load %arg11[%399, %c0_182, %c0_183] : memref<8x16x32xf32, #tpu.memory_space<vmem>>, vector<1x16x32xf32>
    %401 = vector.shape_cast %400 : vector<1x16x32xf32> to vector<16x32xf32>
    %402 = vector.shape_cast %398 : vector<16x32xf32> to vector<1x16x32xf32>
    tpu.vector_store %arg11[%399, %c0_182, %c0_183], %402 {strides = array<i32>} : memref<8x16x32xf32, #tpu.memory_space<vmem>>, vector<1x16x32xf32>,
    %c5_i32_184 = arith.constant 5 : i32
    %403 = arith.index_cast %c5_i32_184 : i32 to index
    %c0_185 = arith.constant 0 : index
    %c0_186 = arith.constant 0 : index
    %404 = vector.load %arg10[%403, %c0_185, %c0_186] : memref<8x16x128xf32, #tpu.memory_space<vmem>>, vector<1x16x128xf32>
    %405 = vector.shape_cast %404 : vector<1x16x128xf32> to vector<16x128xf32>
    %c1_187 = arith.constant 1 : index
    %c0_188 = arith.constant 0 : index
    %c0_189 = arith.constant 0 : index
    %406 = vector.load %arg5[%c1_187, %c0_188, %c0_189] : memref<2x32x128xf32, #tpu.memory_space<vmem>>, vector<1x32x128xf32>
    %407 = vector.shape_cast %406 : vector<1x32x128xf32> to vector<32x128xf32>
    %cst_190 = arith.constant dense<0.000000e+00> : vector<16x128xf32>
    %408 = tpu.matmul %398, %407, %cst_190 {dimension_numbers = #tpu.dot_dimension_numbers<[1], [0], [0], [1], [0, 0, 1, 1], [], []>} : vector<16x32xf32>, vector<32x128xf32>, vector<16x128xf32> -> vector<16x128xf32>
    %409 = arith.addf %405, %408 : vector<16x128xf32>
    %410 = arith.negf %409 : vector<16x128xf32>
    %411 = math.exp %410 : vector<16x128xf32>
    %cst_191 = arith.constant 1.000000e+00 : f32
    %412 = vector.broadcast %cst_191 : f32 to vector<16x128xf32>
    %413 = arith.addf %412, %411 : vector<16x128xf32>
    %414 = arith.divf %412, %413 : vector<16x128xf32>
    %415 = math.tanh %409 : vector<16x128xf32>
    %416 = vector.extract_strided_slice %414 {offsets = [0, 0], sizes = [16, 32], strides = [1, 1]} : vector<16x128xf32> to vector<16x32xf32>
    %c96_i32_192 = arith.constant 96 : i32
    %417 = tpu.dynamic_rotate %414 by %c96_i32_192 dim 1 : vector<16x128xf32>, i32 -> vector<16x128xf32>
    %418 = vector.extract_strided_slice %417 {offsets = [0, 0], sizes = [16, 32], strides = [1, 1]} : vector<16x128xf32> to vector<16x32xf32>
    %c64_i32_193 = arith.constant 64 : i32
    %419 = tpu.dynamic_rotate %415 by %c64_i32_193 dim 1 : vector<16x128xf32>, i32 -> vector<16x128xf32>
    %420 = vector.extract_strided_slice %419 {offsets = [0, 0], sizes = [16, 32], strides = [1, 1]} : vector<16x128xf32> to vector<16x32xf32>
    %c32_i32_194 = arith.constant 32 : i32
    %421 = tpu.dynamic_rotate %414 by %c32_i32_194 dim 1 : vector<16x128xf32>, i32 -> vector<16x128xf32>
    %422 = vector.extract_strided_slice %421 {offsets = [0, 0], sizes = [16, 32], strides = [1, 1]} : vector<16x128xf32> to vector<16x32xf32>
    %423 = arith.mulf %418, %396 : vector<16x32xf32>
    %424 = arith.mulf %416, %420 : vector<16x32xf32>
    %425 = arith.addf %423, %424 : vector<16x32xf32>
    %426 = math.tanh %425 : vector<16x32xf32>
    %427 = arith.mulf %422, %426 : vector<16x32xf32>
    %428 = arith.index_cast %c5_i32_184 : i32 to index
    %c0_195 = arith.constant 0 : index
    %c0_196 = arith.constant 0 : index
    %429 = vector.load %arg11[%428, %c0_195, %c0_196] : memref<8x16x32xf32, #tpu.memory_space<vmem>>, vector<1x16x32xf32>
    %430 = vector.shape_cast %429 : vector<1x16x32xf32> to vector<16x32xf32>
    %431 = vector.shape_cast %427 : vector<16x32xf32> to vector<1x16x32xf32>
    tpu.vector_store %arg11[%428, %c0_195, %c0_196], %431 {strides = array<i32>} : memref<8x16x32xf32, #tpu.memory_space<vmem>>, vector<1x16x32xf32>,
    %c6_i32_197 = arith.constant 6 : i32
    %432 = arith.index_cast %c6_i32_197 : i32 to index
    %c0_198 = arith.constant 0 : index
    %c0_199 = arith.constant 0 : index
    %433 = vector.load %arg10[%432, %c0_198, %c0_199] : memref<8x16x128xf32, #tpu.memory_space<vmem>>, vector<1x16x128xf32>
    %434 = vector.shape_cast %433 : vector<1x16x128xf32> to vector<16x128xf32>
    %c1_200 = arith.constant 1 : index
    %c0_201 = arith.constant 0 : index
    %c0_202 = arith.constant 0 : index
    %435 = vector.load %arg5[%c1_200, %c0_201, %c0_202] : memref<2x32x128xf32, #tpu.memory_space<vmem>>, vector<1x32x128xf32>
    %436 = vector.shape_cast %435 : vector<1x32x128xf32> to vector<32x128xf32>
    %cst_203 = arith.constant dense<0.000000e+00> : vector<16x128xf32>
    %437 = tpu.matmul %427, %436, %cst_203 {dimension_numbers = #tpu.dot_dimension_numbers<[1], [0], [0], [1], [0, 0, 1, 1], [], []>} : vector<16x32xf32>, vector<32x128xf32>, vector<16x128xf32> -> vector<16x128xf32>
    %438 = arith.addf %434, %437 : vector<16x128xf32>
    %439 = arith.negf %438 : vector<16x128xf32>
    %440 = math.exp %439 : vector<16x128xf32>
    %cst_204 = arith.constant 1.000000e+00 : f32
    %441 = vector.broadcast %cst_204 : f32 to vector<16x128xf32>
    %442 = arith.addf %441, %440 : vector<16x128xf32>
    %443 = arith.divf %441, %442 : vector<16x128xf32>
    %444 = math.tanh %438 : vector<16x128xf32>
    %445 = vector.extract_strided_slice %443 {offsets = [0, 0], sizes = [16, 32], strides = [1, 1]} : vector<16x128xf32> to vector<16x32xf32>
    %c96_i32_205 = arith.constant 96 : i32
    %446 = tpu.dynamic_rotate %443 by %c96_i32_205 dim 1 : vector<16x128xf32>, i32 -> vector<16x128xf32>
    %447 = vector.extract_strided_slice %446 {offsets = [0, 0], sizes = [16, 32], strides = [1, 1]} : vector<16x128xf32> to vector<16x32xf32>
    %c64_i32_206 = arith.constant 64 : i32
    %448 = tpu.dynamic_rotate %444 by %c64_i32_206 dim 1 : vector<16x128xf32>, i32 -> vector<16x128xf32>
    %449 = vector.extract_strided_slice %448 {offsets = [0, 0], sizes = [16, 32], strides = [1, 1]} : vector<16x128xf32> to vector<16x32xf32>
    %c32_i32_207 = arith.constant 32 : i32
    %450 = tpu.dynamic_rotate %443 by %c32_i32_207 dim 1 : vector<16x128xf32>, i32 -> vector<16x128xf32>
    %451 = vector.extract_strided_slice %450 {offsets = [0, 0], sizes = [16, 32], strides = [1, 1]} : vector<16x128xf32> to vector<16x32xf32>
    %452 = arith.mulf %447, %425 : vector<16x32xf32>
    %453 = arith.mulf %445, %449 : vector<16x32xf32>
    %454 = arith.addf %452, %453 : vector<16x32xf32>
    %455 = math.tanh %454 : vector<16x32xf32>
    %456 = arith.mulf %451, %455 : vector<16x32xf32>
    %457 = arith.index_cast %c6_i32_197 : i32 to index
    %c0_208 = arith.constant 0 : index
    %c0_209 = arith.constant 0 : index
    %458 = vector.load %arg11[%457, %c0_208, %c0_209] : memref<8x16x32xf32, #tpu.memory_space<vmem>>, vector<1x16x32xf32>
    %459 = vector.shape_cast %458 : vector<1x16x32xf32> to vector<16x32xf32>
    %460 = vector.shape_cast %456 : vector<16x32xf32> to vector<1x16x32xf32>
    tpu.vector_store %arg11[%457, %c0_208, %c0_209], %460 {strides = array<i32>} : memref<8x16x32xf32, #tpu.memory_space<vmem>>, vector<1x16x32xf32>,
    %c7_i32_210 = arith.constant 7 : i32
    %461 = arith.index_cast %c7_i32_210 : i32 to index
    %c0_211 = arith.constant 0 : index
    %c0_212 = arith.constant 0 : index
    %462 = vector.load %arg10[%461, %c0_211, %c0_212] : memref<8x16x128xf32, #tpu.memory_space<vmem>>, vector<1x16x128xf32>
    %463 = vector.shape_cast %462 : vector<1x16x128xf32> to vector<16x128xf32>
    %c1_213 = arith.constant 1 : index
    %c0_214 = arith.constant 0 : index
    %c0_215 = arith.constant 0 : index
    %464 = vector.load %arg5[%c1_213, %c0_214, %c0_215] : memref<2x32x128xf32, #tpu.memory_space<vmem>>, vector<1x32x128xf32>
    %465 = vector.shape_cast %464 : vector<1x32x128xf32> to vector<32x128xf32>
    %cst_216 = arith.constant dense<0.000000e+00> : vector<16x128xf32>
    %466 = tpu.matmul %456, %465, %cst_216 {dimension_numbers = #tpu.dot_dimension_numbers<[1], [0], [0], [1], [0, 0, 1, 1], [], []>} : vector<16x32xf32>, vector<32x128xf32>, vector<16x128xf32> -> vector<16x128xf32>
    %467 = arith.addf %463, %466 : vector<16x128xf32>
    %468 = arith.negf %467 : vector<16x128xf32>
    %469 = math.exp %468 : vector<16x128xf32>
    %cst_217 = arith.constant 1.000000e+00 : f32
    %470 = vector.broadcast %cst_217 : f32 to vector<16x128xf32>
    %471 = arith.addf %470, %469 : vector<16x128xf32>
    %472 = arith.divf %470, %471 : vector<16x128xf32>
    %473 = math.tanh %467 : vector<16x128xf32>
    %474 = vector.extract_strided_slice %472 {offsets = [0, 0], sizes = [16, 32], strides = [1, 1]} : vector<16x128xf32> to vector<16x32xf32>
    %c96_i32_218 = arith.constant 96 : i32
    %475 = tpu.dynamic_rotate %472 by %c96_i32_218 dim 1 : vector<16x128xf32>, i32 -> vector<16x128xf32>
    %476 = vector.extract_strided_slice %475 {offsets = [0, 0], sizes = [16, 32], strides = [1, 1]} : vector<16x128xf32> to vector<16x32xf32>
    %c64_i32_219 = arith.constant 64 : i32
    %477 = tpu.dynamic_rotate %473 by %c64_i32_219 dim 1 : vector<16x128xf32>, i32 -> vector<16x128xf32>
    %478 = vector.extract_strided_slice %477 {offsets = [0, 0], sizes = [16, 32], strides = [1, 1]} : vector<16x128xf32> to vector<16x32xf32>
    %c32_i32_220 = arith.constant 32 : i32
    %479 = tpu.dynamic_rotate %472 by %c32_i32_220 dim 1 : vector<16x128xf32>, i32 -> vector<16x128xf32>
    %480 = vector.extract_strided_slice %479 {offsets = [0, 0], sizes = [16, 32], strides = [1, 1]} : vector<16x128xf32> to vector<16x32xf32>
    %481 = arith.mulf %476, %454 : vector<16x32xf32>
    %482 = arith.mulf %474, %478 : vector<16x32xf32>
    %483 = arith.addf %481, %482 : vector<16x32xf32>
    %484 = math.tanh %483 : vector<16x32xf32>
    %485 = arith.mulf %480, %484 : vector<16x32xf32>
    %486 = arith.index_cast %c7_i32_210 : i32 to index
    %c0_221 = arith.constant 0 : index
    %c0_222 = arith.constant 0 : index
    %487 = vector.load %arg11[%486, %c0_221, %c0_222] : memref<8x16x32xf32, #tpu.memory_space<vmem>>, vector<1x16x32xf32>
    %488 = vector.shape_cast %487 : vector<1x16x32xf32> to vector<16x32xf32>
    %489 = vector.shape_cast %485 : vector<16x32xf32> to vector<1x16x32xf32>
    tpu.vector_store %arg11[%486, %c0_221, %c0_222], %489 {strides = array<i32>} : memref<8x16x32xf32, #tpu.memory_space<vmem>>, vector<1x16x32xf32>,
    %c8_i32_223 = arith.constant 8 : i32
    %c0_224 = arith.constant 0 : index
    %c0_225 = arith.constant 0 : index
    %c0_226 = arith.constant 0 : index
    %490 = vector.load %arg11[%c0_224, %c0_225, %c0_226] : memref<8x16x32xf32, #tpu.memory_space<vmem>>, vector<8x16x32xf32>
    %491 = vector.shape_cast %490 : vector<8x16x32xf32> to vector<128x32xf32>
    %c0_227 = arith.constant 0 : index
    %c0_228 = arith.constant 0 : index
    %492 = vector.load %arg7[%c0_227, %c0_228] : memref<32x128xf32, #tpu.memory_space<vmem>>, vector<32x128xf32>
    %cst_229 = arith.constant dense<0.000000e+00> : vector<128x128xf32>
    %493 = tpu.matmul %491, %492, %cst_229 {dimension_numbers = #tpu.dot_dimension_numbers<[1], [0], [0], [1], [0, 0, 1, 1], [], []>} : vector<128x32xf32>, vector<32x128xf32>, vector<128x128xf32> -> vector<128x128xf32>
    %c0_230 = arith.constant 0 : index
    %c0_231 = arith.constant 0 : index
    %494 = vector.load %arg8[%c0_230, %c0_231] : memref<1x128xf32, #tpu.memory_space<vmem>>, vector<1x128xf32>
    %495 = vector.broadcast %494 : vector<1x128xf32> to vector<128x128xf32>
    %496 = arith.addf %493, %495 : vector<128x128xf32>
    %497 = vector.shape_cast %496 : vector<128x128xf32> to vector<8x16x128xf32>
    %c0_232 = arith.constant 0 : index
    %c0_233 = arith.constant 0 : index
    %c0_234 = arith.constant 0 : index
    %498 = vector.load %arg9[%c0_232, %c0_233, %c0_234] : memref<8x16x128xf32, #tpu.memory_space<vmem>>, vector<8x16x128xf32>
    tpu.vector_store %arg9[%c0_232, %c0_233, %c0_234], %497 {strides = array<i32>} : memref<8x16x128xf32, #tpu.memory_space<vmem>>, vector<8x16x128xf32>,
    return
  }
  func.func @transform_0(%arg0: i32) -> (i32, i32) {
    %c0_i32 = arith.constant 0 : i32
    %c0_i32_0 = arith.constant 0 : i32
    return %arg0, %c0_i32 : i32, i32
  }
  func.func @transform_1(%arg0: i32) -> (i32, i32, i32) {
    %c0_i32 = arith.constant 0 : i32
    %c0_i32_0 = arith.constant 0 : i32
    %c0_i32_1 = arith.constant 0 : i32
    return %c0_i32, %arg0, %c0_i32_0 : i32, i32, i32
  }
  func.func @transform_2(%arg0: i32) -> (i32, i32) {
    %c0_i32 = arith.constant 0 : i32
    %c0_i32_0 = arith.constant 0 : i32
    %c0_i32_1 = arith.constant 0 : i32
    return %c0_i32, %c0_i32_0 : i32, i32
  }
  func.func @transform_3(%arg0: i32) -> (i32, i32, i32) {
    %c0_i32 = arith.constant 0 : i32
    %c0_i32_0 = arith.constant 0 : i32
    %c0_i32_1 = arith.constant 0 : i32
    %c0_i32_2 = arith.constant 0 : i32
    return %c0_i32, %c0_i32_0, %c0_i32_1 : i32, i32, i32
  }
  func.func @transform_4(%arg0: i32) -> (i32, i32, i32) {
    %c0_i32 = arith.constant 0 : i32
    %c0_i32_0 = arith.constant 0 : i32
    %c0_i32_1 = arith.constant 0 : i32
    %c0_i32_2 = arith.constant 0 : i32
    return %c0_i32, %c0_i32_0, %c0_i32_1 : i32, i32, i32
  }
  func.func @transform_5(%arg0: i32) -> (i32, i32, i32) {
    %c0_i32 = arith.constant 0 : i32
    %c0_i32_0 = arith.constant 0 : i32
    %c0_i32_1 = arith.constant 0 : i32
    %c0_i32_2 = arith.constant 0 : i32
    return %c0_i32, %c0_i32_0, %c0_i32_1 : i32, i32, i32
  }
  func.func @transform_6(%arg0: i32) -> (i32, i32) {
    %c0_i32 = arith.constant 0 : i32
    %c0_i32_0 = arith.constant 0 : i32
    %c0_i32_1 = arith.constant 0 : i32
    return %c0_i32, %c0_i32_0 : i32, i32
  }
  func.func @transform_7(%arg0: i32) -> (i32, i32) {
    %c0_i32 = arith.constant 0 : i32
    %c0_i32_0 = arith.constant 0 : i32
    %c0_i32_1 = arith.constant 0 : i32
    return %c0_i32, %c0_i32_0 : i32, i32
  }
  func.func @transform_8(%arg0: i32) -> (i32, i32, i32) {
    %c0_i32 = arith.constant 0 : i32
    %c0_i32_0 = arith.constant 0 : i32
    %c0_i32_1 = arith.constant 0 : i32
    return %c0_i32, %arg0, %c0_i32_0 : i32, i32, i32
  }
}

</mosaic_0001>

<bundles_post_ra>
// kernel: tpu_custom_call.1
= control target key start
LH: loop header
LB: loop body
LE: loop exit
PB: predicated region body
PF: predicated region fallthrough
CT: control target
= control target key end

     0   :  { %s4140_s0 = inlined_call_operand.hbm [shape: f32[32,32], index: 0, kind: input, shape index: {}]   ;;  %s4141_s1 = inlined_call_operand.hbm [shape: f32[8,32,128], index: 1, kind: input, shape index: {}]   ;;  %s4142_s2 = inlined_call_operand.hbm [shape: f32[32,128], index: 2, kind: input, shape index: {}]   ;;  %s4143_s3 = inlined_call_operand.hbm [shape: f32[1,32,128], index: 3, kind: input, shape index: {}]   ;;  %s4144_s4 = inlined_call_operand.hbm [shape: f32[2,32,128], index: 4, kind: input, shape index: {}]   ;;  %s4145_s5 = inlined_call_operand.vmem [shape: f32[2,1,128], index: 5, kind: input, shape index: {}]   ;;  %s4146_s6 = inlined_call_operand.hbm [shape: f32[32,128], index: 6, kind: input, shape index: {}]   ;;  %s4147_s7 = inlined_call_operand.vmem [shape: f32[1,128], index: 7, kind: input, shape index: {}]   ;;  %s4148_s8 = inlined_call_operand.hbm [shape: f32[8,32,128], index: 8, kind: output, shape index: {}]  }
   0x1   :  { %4153 = sst [smem:[#allocation31_spill]] %s4142_s2 }
   0x2   :  { %4154 = sst [smem:[#allocation32_spill]] %s4143_s3 }
   0x3   :  { %13 = vsyncpa [#allocation5], 0 }
   0x4   :  { %15 = vsyncpa [#allocation5 + $0x1], 0 }
   0x5   :  { %16 = vsyncpa [#allocation8], 0 }
   0x6   :  { %18 = vsyncpa [#allocation8 + $0x1], 0 }
   0x7   :  { %19 = vsyncpa [#allocation11], 0 }
   0x8   :  { %20 = vsyncpa [#allocation14], 0 }
   0x9   :  { %21 = vsyncpa [#allocation6], 0 }
   0xa   :  { %23 = vsyncpa [#allocation6 + $0x1], 0  ;;  %s3458_s27 = smov 0   ;;  %s3460_s28 = smov 0  }
   0xb   :  { %s3462_s29 = smov 0   ;;  %s3464_s30 = smov 0  }
   0xc LB: > { %4155 = sst [smem:[#allocation27_spill]] %s3374_s27  ;;  %s3479_s9 = sadd.s32 4294967295, %s3386_s30   ;;  %s3386_s30 = sphi %s3464_s30, %s4169_s30   ;;  %s3382_s29 = sphi %s3462_s29, %s4173_s29   ;;  %s3378_s28 = sphi %s3460_s28, %s4172_s28   ;;  %s3374_s27 = sphi %s3458_s27, %s4171_s27  }
   0xd   : > { %s2668_s10 = sadd.s32 4294967294, %s3386_s30   ;;  %s3483_s11 = sadd.s32 1, %s3386_s30  }
   0xe   : > { %4156 = sst [smem:[#allocation28_spill]] %s3483_s11  ;;  %s36_s12 = sadd.s32 1, %s3382_s29 }
   0xf   : > { %s33_s13 = ssub.s32 %s3386_s30, %s3483_s11  ;;  %p43_p0 = scmp.ne.s32.totalorder %s3382_s29, %s3378_s28 }
  0x10   : > { %p34_p1 = scmp.eq.s32.totalorder %s33_s13, 0  ;;  %p44_p2 = scmp.eq.s32.totalorder %s3386_s30, 0 }
  0x11   : > { %p49_p3 = scmp.ne.s32.totalorder %s3378_s28, %s3374_s27  ;;  %p50_p4 = scmp.eq.s32.totalorder %s3479_s9, 0 }
  0x12   : > { %s3495_s14 = scalar_select %p34_p1, %s3382_s29, %s36_s12  }
  0x13   : > { %p3497_p5 = por %p44_p2, %p43_p0  ;;  %p3503_p6 = por %p50_p4, %p49_p3 }
  0x14   : > { %4157 = sst [smem:[#allocation29_spill]] %s3495_s14  ;;  %p225_p7 = scmp.eq.s32.totalorder %s3479_s9, 1 }
  0x15   : > { %p231_p8 = scmp.eq.s32.totalorder %s2668_s10, 1  ;;  %p2669_p9 = scmp.ge.s32.totalorder %s3386_s30, 1 }
  0x16   : > { %p238_p10 = scmp.lt.s32.totalorder %s3386_s30, 3  ;;  %p3510_p11 = por %p225_p7, %p43_p0 }
  0x17   : > { %p3514_p12 = por %p231_p8, %p49_p3  ;;  %s4164_s3 = sld [smem:[#allocation32_spill]] }
  0x18   : > { %p3518_p13 = pnand %p2669_p9, %p238_p10  ;;  %s3388_s24 = smov [#allocation10]  }
  0x19   : > { %s4161_s18 = scalar_select %p3514_p12, 1, 0 }
  0x1a   : > { %p2841_p1 = pneg %p3518_p13  ;;  %s265_s25 = sshll.u32 %s3388_s24, 4  ;;  %s266_s25 = int_to_ptr.vmem [resolvable:$true] %s265_s25 }
  0x1b   : > { %4162 = sst [smem:[#allocation30_spill]] %s4161_s18  ;;  %s3389_s13 = smov 128  }
  0x1c   : > { %p3529_p0 = pnand %p2841_p1, %p50_p4  ;;  %s4166_s2 = sld [smem:[#allocation31_spill]] }
  0x1d   : > { %s263_s22 = sshll.u32 %s4164_s3, 4  ;;  %s3390_s20 = smov 8   ;;  %s264_s22 = int_to_ptr.hbm [resolvable:$true] %s263_s22 }
  0x1e   : > { %2847 = dma.hbm_to_vmem [thread:$0]  (!%p3529_p0), %s264_s22, 512, %s266_s25, [#allocation11], %s3389_s13, %s3389_s13, %s3390_s20  }
  0x1f   : > { %s277_s14 = sshll.u32 %s4144_s4, 4  ;;  %s3391_s11 = smov [#allocation9]   ;;  %s278_s14 = int_to_ptr.hbm [resolvable:$true] %s277_s14 }
  0x20   : > { %s251_s18 = sshll.u32 %s3391_s11, 4  ;;  %s3392_s24 = smov [#allocation12]   ;;  %s252_s18 = int_to_ptr.vmem [resolvable:$true] %s251_s18 }
  0x21   : > { %s279_s26 = sshll.u32 %s3392_s24, 4  ;;  %s294_s27 = sshll.u32 %s4146_s6, 4  ;;  %s280_s26 = int_to_ptr.vmem [resolvable:$true] %s279_s26  ;;  %s295_s27 = int_to_ptr.hbm [resolvable:$true] %s294_s27 }
  0x22   : > { %s249_s12 = sshll.u32 %s4166_s2, 4  ;;  %s3393_s22 = smov [#allocation13]   ;;  %s250_s12 = int_to_ptr.hbm [resolvable:$true] %s249_s12 }
  0x23   : > { %2844 = dma.hbm_to_vmem [thread:$0]  (!%p3529_p0), %s250_s12, 512, %s252_s18, [#allocation8], %s3389_s13, %s3389_s13, %s3390_s20  }
  0x24   : > { %2850 = dma.hbm_to_vmem [thread:$0]  (!%p3529_p0), %s278_s14, 1024, %s280_s26, [#allocation11], %s3389_s13, %s3389_s13, %s3390_s20  }
  0x25   : > { %s296_s3 = sshll.u32 %s3393_s22, 4  ;;  %p2674_p2 = scmp.ge.s32.totalorder %s3386_s30, 2  ;;  %s297_s3 = int_to_ptr.vmem [resolvable:$true] %s296_s3 }
  0x26   : > { %2853 = dma.hbm_to_vmem [thread:$0]  (!%p3529_p0), %s295_s27, 512, %s297_s3, [#allocation14], %s3389_s13, %s3389_s13, %s3390_s20  }
  0x27   : > { %309 = sbr.rel (%p2674_p2) target bundleno = 70 (0x46), region = 40  ;;  %s3554_s11 = sand.u32 (!%p2674_p2), 1, %s3382_s29  }
  0x28   : > { %s2791_s2 = sshll.u32 (!%p2674_p2), %s3386_s30, 4  ;;  %s2675_s14 = sshll.u32 (!%p2674_p2), %s3554_s11, 4 }
  0x29   : > { %s322_s12 = scalar_lea.hbm (!%p2674_p2), %s4140_s0, %s2791_s2  ;;  %s317_s27 = scalar_lea.vmem (!%p2674_p2), [#allocation4], %s2675_s14 }
  0x2a   : > { %s323_s23 = sshll.u32 (!%p2674_p2), %s322_s12, 4  ;;  %s325_s13 = sshll.u32 (!%p2674_p2), %s317_s27, 4  ;;  %s324_s23 = int_to_ptr.hbm [resolvable:$true] %s323_s23  ;;  %s326_s13 = int_to_ptr.vmem [resolvable:$true] %s325_s13 }
  0x2b   : > { %s314_s20 = scalar_lea.sflag (!%p2674_p2), [#allocation5], %s3554_s11  ;;  %s3304_s21 = sshra.s32 (!%p2674_p2), %s324_s23, 4  ;;  %s3305_s21 = int_to_ptr.hbm [resolvable:$true] %s3304_s21 }
  0x2c   : > { %s3306_s24 = scalar_lea.hbm %s3305_s21, 16  ;;  %s3310_s22 = scalar_lea.hbm %s4140_s0, 32 }
  0x2d   : > { %p3307_p3 = scmp.ne.s32.totalorder %s3305_s21, %s3306_s24  ;;  %p3311_p9 = scmp.lt.s32.totalorder %s3305_s21, %s4140_s0 }
  0x2e   : > { %p3312_p10 = scmp.lt.s32.totalorder %s3310_s22, %s3306_s24 }
  0x2f   : > { %p3308_p7 = pnand %p3307_p3, %p3497_p5 }
  0x30   : > { %p3313_p1 = por %p3312_p10, %p3311_p9 }
  0x31   : > { %p3309_p8 = pneg %p3308_p7 }
  0x33   : > { %p3314_p0 = pnand %p3313_p1, %p3309_p8 }
  0x35   : > { %3317 = shalt.err (!%p3314_p0)
}
  0x36   : > { %s3394_s14 = smov 128   ;;  %s3395_s25 = smov 8  }
  0x37   : > { %2814 = dma.hbm_to_vmem [thread:$0]  (%p3497_p5), %s324_s23, 256, %s326_s13, %s314_s20, %s3394_s14, %s3394_s14, %s3395_s25  }
  0x38   : > { %s335_s12 = sand.u32 1, %s3386_s30   ;;  %s2678_s27 = sshll.u32 %s3554_s11, 7 }
  0x39   : > { %s344_s21 = scalar_lea.hbm %s4141_s1, %s2791_s2  ;;  %s339_s24 = scalar_lea.vmem [#allocation7], %s2678_s27 }
  0x3a   : > { %s359_s22 = sshll.u32 %s339_s24, 4  ;;  %s357_s18 = sshll.u32 %s344_s21, 4  ;;  %s360_s22 = int_to_ptr.vmem [resolvable:$true] %s359_s22  ;;  %s358_s18 = int_to_ptr.hbm [resolvable:$true] %s357_s18 }
  0x3b   : > { %s2815_s3 = scalar_select %p3497_p5, [#allocation0], [#allocation20] }
  0x3c   : > { %s3396_s13 = smov 512   ;;  %s3397_s11 = smov 256  }
  0x3d   : > { %s349_s23 = sld [smem:[%s2815_s3]]   ;;  %s3398_s20 = smov 2  }
  0x3e   : > { %2816 = sst [smem:[#allocation17]] (%p3497_p5), %s3396_s13  ;;  %s3399_s2 = smov 128  }
  0x3f   : > { %2817 = sst [smem:[#allocation17 + $0x1]] (%p3497_p5), %s3397_s11  ;;  %s3400_s27 = smov 8  }
  0x40   : > { %2818 = sst [smem:[#allocation17 + $0x2]] (%p3497_p5), %s3398_s20  ;;  %s336_s26 = scalar_lea.sflag [#allocation8], %s335_s12 }
  0x41   : > { %2819 = sst [smem:[#allocation17 + $0x3]] (%p3497_p5), %s3399_s2  ;;  %s3401_s10 = smov [#allocation16]  }
  0x42   : > { %2820 = sst [smem:[#allocation17 + $0x4]] (%p3497_p5), %s3399_s2 }
  0x43   : > { %s2681_s14 = sshll.u32 %s349_s23, 26  ;;  %2821 = sst [smem:[#allocation17 + $0x5]] (%p3497_p5), %s3400_s27 }
  0x44   : > { %s2682_s25 = sadd.s32 134217728, %s2681_s14 }
  0x45   : > { %2822 = dma.general (%p3497_p5), %s358_s18, 2048, %s360_s22, %s336_s26, %s3401_s10, [#allocation17], %s2682_s25, 0  }
  0x46 PF: > { %384 = sbr.rel (%p3518_p13) target bundleno = 4604 (0x11fc), region = 52  ;;  %s3596_s21 = sand.u32 (!%p3518_p13), 1, %s3378_s28  }
  0x47   : > { %s2684_s24 = sshll.u32 (!%p3518_p13), %s3596_s21, 4  ;;  %s387_s3 = scalar_lea.sflag (!%p3518_p13), [#allocation5], %s3596_s21 }
  0x48   : > { %s3600_s23 = scalar_lea.vmem (!%p3518_p13), [#allocation4], %s2684_s24 }
  0x4b   : > { %3349 = dma.done.wait (%p3503_p6), %s387_s3, 256  }
  0x4c   : > { %3351 = vsyncadd (%p3503_p6), %s387_s3, 4294967040  ;;  %s396_s15 = sand.u32 1, %s3479_s9   ;;  %s2685_s19 = sshll.u32 %s3596_s21, 7 }
  0x4d   : > { %s397_s12 = scalar_lea.sflag [#allocation8], %s396_s15  ;;  %s3610_s22 = scalar_lea.vmem [#allocation7], %s2685_s19 }
  0x4e   : > { %3353 = dma.done.wait (%p3503_p6), %s397_s12, 2048  }
  0x4f   : > { %3355 = vsyncadd (%p3503_p6), %s397_s12, 4294965248 }
  0x50   : > { %3357 = dma.done.wait (%p50_p4), [#allocation8], 512  }
  0x51   : > { %3359 = vsyncadd (%p50_p4), [#allocation8], 4294966784 }
  0x52   : > { %3361 = dma.done.wait (%p50_p4), [#allocation11], 1536  }
  0x53   : > { %3363 = vsyncadd (%p50_p4), [#allocation11], 4294965760 }
  0x54   : > { %3365 = dma.done.wait (%p50_p4), [#allocation14], 512  }
  0x55   : > { %3367 = vsyncadd (%p50_p4), [#allocation14], 4294966784  ;;  %v467_v0 = vld [vmem:[#allocation9 + $0x18] sm:$0xff]  ;;  %v466_v1 = vld [vmem:[#allocation9 + $0x10] sm:$0xff]  ;;  %vm488_vm0 = vcmask 261120   ;;  %v3402_v10 = vmov 0.0  }
  0x56   : > { %507 = vmatpush.msra.mxu0 %v467_v0  ;;  %2794 = vmatpush.msra.mxu3 %v467_v0  ;;  %v555_v2 = vld [vmem:[#allocation12 + $0x18] sm:$0xff]  ;;  %v554_v3 = vld [vmem:[#allocation12 + $0x10] sm:$0xff]  ;;  %v465_v4 = vld [vmem:[#allocation9 + $0x8] sm:$0xff]  ;;  %s3403_s13 = smov 32   ;;  %s3404_s11 = smov 96  }
  0x57   : > { %571 = vmatpush.msra.mxu1 %v555_v2  ;;  %1085 = vmatpush.msra.mxu2 %v555_v2  ;;  %v553_v5 = vld [vmem:[#allocation12 + $0x8] sm:$0xff]  ;;  %v464_v6 = vld [vmem:[#allocation9] sm:$0xff]  ;;  %s3405_s20 = smov 64   ;;  %s4008_s24 = scalar_lea.vmem [#allocation15], %s2685_s19 }
  0x58   : > { %508 = vmatpush.msra.mxu0 %v466_v1  ;;  %2795 = vmatpush.msra.mxu3 %v466_v1  ;;  %v462_v7 = vld [vmem:[%s3600_s23] sm:$0xff]  ;;  %v463_v8 = vld [vmem:[%s3600_s23 + $0x8] sm:$0xff]  ;;  %s2496_s3 = scalar_lea.sflag [#allocation6], %s3596_s21 }
  0x59   : > { %572 = vmatpush.msra.mxu1 %v554_v3  ;;  %1086 = vmatpush.msra.mxu2 %v554_v3  ;;  %v552_v9 = vld [vmem:[#allocation12] sm:$0xff]  ;;  %v469_v19 = vld [vmem:[%s3610_s22 + $0x8] sm:$0xff] }
  0x5a   : > { %509 = vmatpush.msra.mxu0 %v465_v4  ;;  %2796 = vmatpush.msra.mxu3 %v465_v4  ;;  %v2924_v11 = vld [vmem:[%s4145_s5] ss:$0 sm:$0xff]  ;;  %v470_v4 = vld [vmem:[%s3610_s22 + $0x10] sm:$0xff] }
  0x5b   : > { %573 = vmatpush.msra.mxu1 %v553_v5  ;;  %1087 = vmatpush.msra.mxu2 %v553_v5  ;;  %v468_v13 = vld [vmem:[%s3610_s22] sm:$0xff] }
  0x5c   : > { %510 = vmatpush.msra.mxu0 %v464_v6  ;;  %2797 = vmatpush.msra.mxu3 %v464_v6 }
  0x5d   : > { %2691 = vmatmul.msk.f32.vlgmr.msra.gmra.mxu0 %vm488_vm0, %v462_v7  ;;  %2692 = vmatmul.msk.f32.vlgmr.msra.gmra.mxu3 %vm488_vm0, %v463_v8 }
  0x5e   : > { %574 = vmatpush.msra.mxu1 %v552_v9  ;;  %673 = vmatpush.msrb.mxu3 %v555_v2 }
  0x5f   : > { %575 = vmatmul.f32.vlgmr.msra.gmra.mxu1 %v3402_v10  ;;  %879 = vmatpush.msrb.mxu0 %v555_v2 }
  0x60   : > { %674 = vmatpush.msrb.mxu3 %v554_v3  ;;  %982 = vmatpush.msrb.mxu1 %v555_v2 }
  0x61   : > { %880 = vmatpush.msrb.mxu0 %v554_v3  ;;  %1088 = vmatpush.msra.mxu2 %v552_v9 }
  0x62   : > { %675 = vmatpush.msrb.mxu3 %v553_v5  ;;  %983 = vmatpush.msrb.mxu1 %v554_v3 }
  0x63   : > { %881 = vmatpush.msrb.mxu0 %v553_v5 }
  0x64   : > { %676 = vmatpush.msrb.mxu3 %v552_v9  ;;  %984 = vmatpush.msrb.mxu1 %v553_v5 }
  0x65   : > { %882 = vmatpush.msrb.mxu0 %v552_v9 }
  0x66   : > { %776 = vmatpush.msra.mxu3 %v555_v2  ;;  %985 = vmatpush.msrb.mxu1 %v552_v9 }
  0x67   : > { %578 = vmatmul.f32.gmra.mxu1 %v3402_v10 }
  0x68   : > { %777 = vmatpush.msra.mxu3 %v554_v3 }
  0x6a   : > { %778 = vmatpush.msra.mxu3 %v553_v5 }
  0x6c   : > { %779 = vmatpush.msra.mxu3 %v552_v9  ;;  %v471_v9 = vld [vmem:[%s3610_s22 + $0x18] sm:$0xff] }
  0xda   : > { %v512_v12 = vpop.f32.mrf.mxu0 }
  0xdb   : > { %v3638_v14 = vadd.f32 %v2924_v11, %v512_v12 }
  0xdc   : > { %v576_v15 = vpop.f32.mrf.mxu1 }
  0xdd   : > { %v518_v16 = vadd.f32 %v3638_v14, %v468_v13  ;;  %v520_v5 = vadd.f32 %v3638_v14, %v470_v4 }
  0xdf   : > { %v582_v17 = vadd.f32 %v576_v15, %v518_v16 }
  0xe0   : > { %v515_v18 = vpop.f32.mrf.mxu3 }
  0xe1   : > { %v2693_v20 = vmul.f32 -1.442695, %v582_v17  ;;  %v3642_v21 = vadd.f32 %v2924_v11, %v515_v18 }
  0xe3   : > { %2927 = vpow2.f32 %v2693_v20  ;;  %v519_v22 = vadd.f32 %v3642_v21, %v469_v19  ;;  %v521_v11 = vadd.f32 %v3642_v21, %v471_v9 }
  0xe4   : > { %v579_v23 = vpop.f32.mrf.mxu1 }
  0xe5   : > { %v583_v24 = vadd.f32 %v579_v23, %v519_v22 }
  0xe7   : > { %v2694_v25 = vmul.f32 -1.442695, %v583_v24 }
  0xe9   : > { %v2928_v26 = vpop.eup %2927  ;;  %2929 = vpow2.f32 %v2694_v25 }
  0xea   : > { %v590_v27 = vadd.f32 1.0, %v2928_v26 }
  0xec   : > { %2931 = vrcp.f32 %v590_v27  ;;  %v601_v33 = vand.u32 2147483647, %v590_v27  ;;  %v603_v34 = vand.u32 2147483648, %v590_v27  ;;  %vm597_vm2 = vweird.f32 %v590_v27 }
  0xee   : > { %vm602_vm4 = vcmp.eq.f32.partialorder %v601_v33, 8.507059e+37  ;;  %v604_v39 = vor.u32 1.1754944e-38, %v603_v34 }
  0xef   : > { %v2930_v28 = vpop.eup %2929 }
  0xf0   : > { %v591_v29 = vadd.f32 1.0, %v2930_v28 }
  0xf2   : > { %v2932_v30 = vpop.eup %2931  ;;  %2933 = vrcp.f32 %v591_v29  ;;  %vm612_vm5 = vweird.f32 %v591_v29  ;;  %v618_v40 = vand.u32 2147483648, %v591_v29  ;;  %v616_v43 = vand.u32 2147483647, %v591_v29 }
  0xf3   : > { %v593_v31 = vmul.f32 %v2932_v30, %v590_v27  ;;  %vm598_vm1 = vweird.f32 %v2932_v30  ;;  %2935 = vtanh.f32 %v582_v17 }
  0xf4   : > { %vm599_vm3 = vmor %vm597_vm2, %vm598_vm1  ;;  %v619_v46 = vor.u32 1.1754944e-38, %v618_v40  ;;  %vm617_vm8 = vcmp.eq.f32.partialorder %v616_v43, 8.507059e+37  ;;  %2937 = vtanh.f32 %v583_v24 }
  0xf5   : > { %v594_v32 = vsub.f32 1.0, %v593_v31 }
  0xf7   : > { %v595_v35 = vmul.f32 %v2932_v30, %v594_v32 }
  0xf8   : > { %v2934_v36 = vpop.eup %2933 }
  0xf9   : > { %v596_v37 = vadd.f32 %v2932_v30, %v595_v35  ;;  %v608_v38 = vmul.f32 %v2934_v36, %v591_v29  ;;  %vm613_vm6 = vweird.f32 %v2934_v36  ;;  %v2936_v50 = vpop.eup %2935 }
  0xfa   : > { %vm614_vm7 = vmor %vm612_vm5, %vm613_vm6  ;;  %v2938_v51 = vpop.eup %2937 }
  0xfb   : > { %v600_v41 = vsel %vm599_vm3, %v2932_v30, %v596_v37  ;;  %v609_v42 = vsub.f32 1.0, %v608_v38 }
  0xfc   : > { %v605_v44 = vsel %vm602_vm4, %v604_v39, %v600_v41 }
  0xfd   : > { %632 = vrot.lane.b32.xlu2 %v605_v44, %s3403_s13  ;;  %624 = vrot.lane.b32.xlu0 %v605_v44, %s3404_s11  ;;  %v610_v45 = vmul.f32 %v2934_v36, %v609_v42 }
  0xff   : > { %v611_v47 = vadd.f32 %v2934_v36, %v610_v45 }
 0x101   : > { %v615_v48 = vsel %vm614_vm7, %v2934_v36, %v611_v47 }
 0x102   : > { %v620_v49 = vsel %vm617_vm8, %v619_v46, %v615_v48 }
 0x103   : > { %626 = vrot.lane.b32.xlu1 %v620_v49, %s3404_s11 }
 0x105   : > { %628 = vrot.lane.b32.xlu0 %v2936_v50, %s3405_s20  ;;  %634 = vrot.lane.b32.xlu2 %v620_v49, %s3403_s13 }
 0x10b   : > { %630 = vrot.lane.b32.xlu1 %v2938_v51, %s3405_s20 }
 0x157   : > { %v633_v60 = vpop.permute.xlu2 %632 }
 0x15f   : > { %v635_v1 = vpop.permute.xlu2 %634 }
 0x16f   : > { %v625_v52 = vpop.permute.xlu0 %624 }
 0x170   : > { %v636_v55 = vmul.f32 0.0, %v625_v52 }
 0x175   : > { %v627_v53 = vpop.permute.xlu1 %626 }
 0x176   : > { %v637_v58 = vmul.f32 0.0, %v627_v53 }
 0x177   : > { %v629_v54 = vpop.permute.xlu0 %628 }
 0x178   : > { %v638_v56 = vmul.f32 %v629_v54, %v605_v44 }
 0x17a   : > { %v3651_v57 = vadd.f32 %v638_v56, %v636_v55 }
 0x17c   : > { %2939 = vtanh.f32 %v3651_v57 }
 0x17d   : > { %v631_v59 = vpop.permute.xlu1 %630 }
 0x17e   : > { %v639_v61 = vmul.f32 %v631_v59, %v620_v49  ;;  %v472_v59 = vld [vmem:[%s3610_s22 + $0x20] sm:$0xff] }
 0x180   : > { %v3654_v62 = vadd.f32 %v639_v61, %v637_v58 }
 0x182   : > { %v2940_v63 = vpop.eup %2939  ;;  %2941 = vtanh.f32 %v3654_v62 }
 0x183   : > { %v644_v0 = vmul.f32 %v2940_v63, %v633_v60  ;;  %v522_v60 = vadd.f32 %v3638_v14, %v472_v59 }
 0x185   : > { %646 = vst.msk [vmem:[#allocation3] sm:$0xff] %vm488_vm0, %v644_v0  ;;  %2695 = vmatmul.msk.f32.vlgmr.msrb.gmra.mxu3 %vm488_vm0, %v644_v0  ;;  %v473_v0 = vld [vmem:[%s3610_s22 + $0x28] sm:$0xff] }
 0x188   : > { %v2942_v2 = vpop.eup %2941 }
 0x189   : > { %v645_v3 = vmul.f32 %v2942_v2, %v635_v1  ;;  %v523_v1 = vadd.f32 %v3642_v21, %v473_v0 }
 0x18b   : > { %647 = vst.msk [vmem:[#allocation3 + $0x8] sm:$0xff] %vm488_vm0, %v645_v3 }
 0x18d   : > { %2696 = vmatmul.msk.f32.gmra.mxu3 %vm488_vm0, %v645_v3 }
 0x208   : > { %v678_v6 = vpop.f32.mrf.mxu3 }
 0x209   : > { %v684_v7 = vadd.f32 %v678_v6, %v520_v5 }
 0x20b   : > { %v2697_v8 = vmul.f32 -1.442695, %v684_v7  ;;  %2943 = vtanh.f32 %v684_v7 }
 0x20d   : > { %2945 = vpow2.f32 %v2697_v8 }
 0x210   : > { %v681_v12 = vpop.f32.mrf.mxu3 }
 0x211   : > { %v2944_v13 = vpop.eup %2943  ;;  %v685_v15 = vadd.f32 %v681_v12, %v521_v11 }
 0x212   : > { %730 = vrot.lane.b32.xlu1 %v2944_v13, %s3405_s20 }
 0x213   : > { %v2946_v16 = vpop.eup %2945  ;;  %v2698_v17 = vmul.f32 -1.442695, %v685_v15 }
 0x214   : > { %v692_v18 = vadd.f32 1.0, %v2946_v16 }
 0x215   : > { %2947 = vpow2.f32 %v2698_v17 }
 0x216   : > { %2949 = vrcp.f32 %v692_v18  ;;  %v705_v25 = vand.u32 2147483648, %v692_v18  ;;  %v703_v27 = vand.u32 2147483647, %v692_v18  ;;  %vm699_vm10 = vweird.f32 %v692_v18 }
 0x218   : > { %v706_v30 = vor.u32 1.1754944e-38, %v705_v25  ;;  %vm704_vm12 = vcmp.eq.f32.partialorder %v703_v27, 8.507059e+37 }
 0x21b   : > { %v2948_v19 = vpop.eup %2947 }
 0x21c   : > { %v2950_v20 = vpop.eup %2949  ;;  %v693_v22 = vadd.f32 1.0, %v2948_v19 }
 0x21d   : > { %v695_v23 = vmul.f32 %v2950_v20, %v692_v18  ;;  %vm700_vm9 = vweird.f32 %v2950_v20 }
 0x21e   : > { %2951 = vrcp.f32 %v693_v22  ;;  %vm701_vm11 = vmor %vm699_vm10, %vm700_vm9  ;;  %v720_v35 = vand.u32 2147483648, %v693_v22  ;;  %v718_v37 = vand.u32 2147483647, %v693_v22  ;;  %vm714_vm14 = vweird.f32 %v693_v22 }
 0x21f   : > { %v696_v24 = vsub.f32 1.0, %v695_v23  ;;  %2953 = vtanh.f32 %v685_v15 }
 0x220   : > { %v721_v39 = vor.u32 1.1754944e-38, %v720_v35  ;;  %vm719_vm1 = vcmp.eq.f32.partialorder %v718_v37, 8.507059e+37 }
 0x221   : > { %v697_v26 = vmul.f32 %v2950_v20, %v696_v24 }
 0x223   : > { %v698_v28 = vadd.f32 %v2950_v20, %v697_v26 }
 0x224   : > { %v2952_v29 = vpop.eup %2951 }
 0x225   : > { %v702_v31 = vsel %vm701_vm11, %v2950_v20, %v698_v28  ;;  %v710_v32 = vmul.f32 %v2952_v29, %v693_v22  ;;  %vm715_vm13 = vweird.f32 %v2952_v29  ;;  %v2954_v41 = vpop.eup %2953 }
 0x226   : > { %v707_v33 = vsel %vm704_vm12, %v706_v30, %v702_v31  ;;  %vm716_vm15 = vmor %vm714_vm14, %vm715_vm13 }
 0x227   : > { %734 = vrot.lane.b32.xlu1 %v707_v33, %s3403_s13  ;;  %726 = vrot.lane.b32.xlu0 %v707_v33, %s3404_s11  ;;  %v711_v34 = vsub.f32 1.0, %v710_v32 }
 0x229   : > { %v712_v36 = vmul.f32 %v2952_v29, %v711_v34 }
 0x22b   : > { %v713_v38 = vadd.f32 %v2952_v29, %v712_v36 }
 0x22d   : > { %v717_v40 = vsel %vm716_vm15, %v2952_v29, %v713_v38 }
 0x22e   : > { %v722_v42 = vsel %vm719_vm1, %v721_v39, %v717_v40 }
 0x22f   : > { %732 = vrot.lane.b32.xlu0 %v2954_v41, %s3405_s20  ;;  %728 = vrot.lane.b32.xlu2 %v722_v42, %s3404_s11 }
 0x237   : > { %736 = vrot.lane.b32.xlu2 %v722_v42, %s3403_s13 }
 0x284   : > { %v731_v43 = vpop.permute.xlu1 %730 }
 0x285   : > { %v740_v45 = vmul.f32 %v731_v43, %v707_v33 }
 0x289   : > { %v729_v48 = vpop.permute.xlu2 %728 }
 0x28a   : > { %v739_v50 = vmul.f32 %v729_v48, %v3654_v62 }
 0x299   : > { %v727_v44 = vpop.permute.xlu0 %726  ;;  %v735_v53 = vpop.permute.xlu1 %734 }
 0x29a   : > { %v738_v46 = vmul.f32 %v727_v44, %v3651_v57  ;;  %v737_v57 = vpop.permute.xlu2 %736 }
 0x29c   : > { %v3672_v47 = vadd.f32 %v740_v45, %v738_v46 }
 0x29e   : > { %2955 = vtanh.f32 %v3672_v47 }
 0x2a1   : > { %v733_v49 = vpop.permute.xlu0 %732 }
 0x2a2   : > { %v741_v51 = vmul.f32 %v733_v49, %v722_v42 }
 0x2a4   : > { %v2956_v52 = vpop.eup %2955  ;;  %v3676_v54 = vadd.f32 %v741_v51, %v739_v50  ;;  %v474_v50 = vld [vmem:[%s3610_s22 + $0x30] sm:$0xff] }
 0x2a5   : > { %v746_v55 = vmul.f32 %v2956_v52, %v735_v53  ;;  %v524_v51 = vadd.f32 %v3638_v14, %v474_v50 }
 0x2a6   : > { %2957 = vtanh.f32 %v3676_v54 }
 0x2a7   : > { %749 = vst.msk [vmem:[#allocation3 + $0x10] sm:$0xff] %vm488_vm0, %v746_v55  ;;  %2699 = vmatmul.msk.f32.vlgmr.msra.gmra.mxu3 %vm488_vm0, %v746_v55  ;;  %v475_v55 = vld [vmem:[%s3610_s22 + $0x38] sm:$0xff] }
 0x2ac   : > { %v2958_v56 = vpop.eup %2957 }
 0x2ad   : > { %v747_v58 = vmul.f32 %v2958_v56, %v737_v57  ;;  %v525_v56 = vadd.f32 %v3642_v21, %v475_v55 }
 0x2af   : > { %750 = vst.msk [vmem:[#allocation3 + $0x18] sm:$0xff] %vm488_vm0, %v747_v58  ;;  %2700 = vmatmul.msk.f32.gmra.mxu3 %vm488_vm0, %v747_v58 }
 0x32a   : > { %v781_v61 = vpop.f32.mrf.mxu3 }
 0x32b   : > { %v787_v62 = vadd.f32 %v781_v61, %v522_v60 }
 0x32d   : > { %v2701_v63 = vmul.f32 -1.442695, %v787_v62  ;;  %2959 = vtanh.f32 %v787_v62 }
 0x32f   : > { %2961 = vpow2.f32 %v2701_v63 }
 0x332   : > { %v784_v2 = vpop.f32.mrf.mxu3 }
 0x333   : > { %v2960_v3 = vpop.eup %2959  ;;  %v788_v4 = vadd.f32 %v784_v2, %v523_v1 }
 0x334   : > { %833 = vrot.lane.b32.xlu1 %v2960_v3, %s3405_s20 }
 0x335   : > { %v2962_v5 = vpop.eup %2961  ;;  %v2702_v6 = vmul.f32 -1.442695, %v788_v4 }
 0x336   : > { %v795_v7 = vadd.f32 1.0, %v2962_v5 }
 0x337   : > { %2963 = vpow2.f32 %v2702_v6 }
 0x338   : > { %2965 = vrcp.f32 %v795_v7  ;;  %v808_v15 = vand.u32 2147483648, %v795_v7  ;;  %v806_v17 = vand.u32 2147483647, %v795_v7  ;;  %vm802_vm3 = vweird.f32 %v795_v7 }
 0x33a   : > { %v809_v20 = vor.u32 1.1754944e-38, %v808_v15  ;;  %vm807_vm5 = vcmp.eq.f32.partialorder %v806_v17, 8.507059e+37 }
 0x33d   : > { %v2964_v8 = vpop.eup %2963 }
 0x33e   : > { %v2966_v9 = vpop.eup %2965  ;;  %v796_v11 = vadd.f32 1.0, %v2964_v8 }
 0x33f   : > { %v798_v12 = vmul.f32 %v2966_v9, %v795_v7  ;;  %vm803_vm2 = vweird.f32 %v2966_v9 }
 0x340   : > { %2967 = vrcp.f32 %v796_v11  ;;  %vm804_vm4 = vmor %vm802_vm3, %vm803_vm2  ;;  %v823_v26 = vand.u32 2147483648, %v796_v11  ;;  %v821_v28 = vand.u32 2147483647, %v796_v11  ;;  %vm817_vm7 = vweird.f32 %v796_v11 }
 0x341   : > { %v799_v13 = vsub.f32 1.0, %v798_v12  ;;  %2969 = vtanh.f32 %v788_v4 }
 0x342   : > { %v824_v30 = vor.u32 1.1754944e-38, %v823_v26  ;;  %vm822_vm9 = vcmp.eq.f32.partialorder %v821_v28, 8.507059e+37  ;;  %v3717_v26 = vld [vmem:[#allocation10 + $0x10] sm:$0xff]  ;;  %v3723_v28 = vld [vmem:[#allocation10] sm:$0xff] }
 0x343   : > { %v800_v16 = vmul.f32 %v2966_v9, %v799_v13 }
 0x345   : > { %v801_v18 = vadd.f32 %v2966_v9, %v800_v16 }
 0x346   : > { %v2968_v19 = vpop.eup %2967 }
 0x347   : > { %v805_v22 = vsel %vm804_vm4, %v2966_v9, %v801_v18  ;;  %v813_v23 = vmul.f32 %v2968_v19, %v796_v11  ;;  %vm818_vm6 = vweird.f32 %v2968_v19  ;;  %v2970_v32 = vpop.eup %2969 }
 0x348   : > { %v810_v24 = vsel %vm807_vm5, %v809_v20, %v805_v22  ;;  %vm819_vm8 = vmor %vm817_vm7, %vm818_vm6 }
 0x349   : > { %837 = vrot.lane.b32.xlu1 %v810_v24, %s3403_s13  ;;  %829 = vrot.lane.b32.xlu0 %v810_v24, %s3404_s11  ;;  %v814_v25 = vsub.f32 1.0, %v813_v23 }
 0x34b   : > { %v815_v27 = vmul.f32 %v2968_v19, %v814_v25  ;;  %v3715_v25 = vld [vmem:[#allocation10 + $0x18] sm:$0xff] }
 0x34c   : > { %1449 = vmatpush.msra.mxu1 %v3715_v25 }
 0x34d   : > { %v816_v29 = vadd.f32 %v2968_v19, %v815_v27  ;;  %v3720_v27 = vld [vmem:[#allocation10 + $0x8] sm:$0xff] }
 0x34e   : > { %1450 = vmatpush.msra.mxu1 %v3717_v26 }
 0x34f   : > { %v820_v31 = vsel %vm819_vm8, %v2968_v19, %v816_v29 }
 0x350   : > { %v825_v33 = vsel %vm822_vm9, %v824_v30, %v820_v31  ;;  %1451 = vmatpush.msra.mxu1 %v3720_v27 }
 0x351   : > { %835 = vrot.lane.b32.xlu0 %v2970_v32, %s3405_s20  ;;  %831 = vrot.lane.b32.xlu2 %v825_v33, %s3404_s11 }
 0x352   : > { %1452 = vmatpush.msra.mxu1 %v3723_v28 }
 0x359   : > { %839 = vrot.lane.b32.xlu2 %v825_v33, %s3403_s13 }
 0x3a6   : > { %v834_v34 = vpop.permute.xlu1 %833 }
 0x3a7   : > { %v843_v36 = vmul.f32 %v834_v34, %v810_v24 }
 0x3ab   : > { %v832_v39 = vpop.permute.xlu2 %831 }
 0x3ac   : > { %v842_v41 = vmul.f32 %v832_v39, %v3676_v54 }
 0x3b3   : > { %v840_v48 = vpop.permute.xlu2 %839 }
 0x3bb   : > { %v830_v35 = vpop.permute.xlu0 %829  ;;  %v838_v44 = vpop.permute.xlu1 %837 }
 0x3bc   : > { %v841_v37 = vmul.f32 %v830_v35, %v3672_v47 }
 0x3be   : > { %v3694_v38 = vadd.f32 %v843_v36, %v841_v37 }
 0x3c0   : > { %2971 = vtanh.f32 %v3694_v38 }
 0x3c3   : > { %v836_v40 = vpop.permute.xlu0 %835 }
 0x3c4   : > { %v844_v42 = vmul.f32 %v836_v40, %v825_v33 }
 0x3c6   : > { %v2972_v43 = vpop.eup %2971  ;;  %v3698_v45 = vadd.f32 %v844_v42, %v842_v41 }
 0x3c7   : > { %v849_v46 = vmul.f32 %v2972_v43, %v838_v44 }
 0x3c8   : > { %2973 = vtanh.f32 %v3698_v45 }
 0x3c9   : > { %852 = vst.msk [vmem:[#allocation3 + $0x20] sm:$0xff] %vm488_vm0, %v849_v46  ;;  %2703 = vmatmul.msk.f32.vlgmr.msrb.gmra.mxu0 %vm488_vm0, %v849_v46  ;;  %v1370_v46 = vld [vmem:[#allocation3 + $0x8] sm:$0xff] }
 0x3ce   : > { %v2974_v47 = vpop.eup %2973 }
 0x3cf   : > { %v850_v49 = vmul.f32 %v2974_v47, %v840_v48  ;;  %v1371_v47 = vld [vmem:[#allocation3 + $0x10] sm:$0xff]  ;;  %v1372_v48 = vld [vmem:[#allocation3 + $0x18] sm:$0xff] }
 0x3d1   : > { %853 = vst.msk [vmem:[#allocation3 + $0x28] sm:$0xff] %vm488_vm0, %v850_v49  ;;  %2704 = vmatmul.msk.f32.gmra.mxu0 %vm488_vm0, %v850_v49  ;;  %v1373_v49 = vld [vmem:[#allocation3 + $0x20] sm:$0xff] }
 0x3d8   : > { %v1374_v50 = vld [vmem:[#allocation3 + $0x28] sm:$0xff] }
 0x446   : > { %v884_v52 = vpop.f32.mrf.mxu0 }
 0x447   : > { %v890_v53 = vadd.f32 %v884_v52, %v524_v51 }
 0x449   : > { %v2705_v54 = vmul.f32 -1.442695, %v890_v53  ;;  %2975 = vtanh.f32 %v890_v53  ;;  %v476_v53 = vld [vmem:[%s3610_s22 + $0x40] sm:$0xff] }
 0x44b   : > { %2977 = vpow2.f32 %v2705_v54  ;;  %v526_v54 = vadd.f32 %v3638_v14, %v476_v53 }
 0x44e   : > { %v887_v57 = vpop.f32.mrf.mxu0 }
 0x44f   : > { %v2976_v58 = vpop.eup %2975  ;;  %v891_v59 = vadd.f32 %v887_v57, %v525_v56 }
 0x450   : > { %936 = vrot.lane.b32.xlu1 %v2976_v58, %s3405_s20  ;;  %v477_v58 = vld [vmem:[%s3610_s22 + $0x48] sm:$0xff] }
 0x451   : > { %v2978_v60 = vpop.eup %2977  ;;  %v2706_v61 = vmul.f32 -1.442695, %v891_v59 }
 0x452   : > { %v898_v62 = vadd.f32 1.0, %v2978_v60 }
 0x453   : > { %2979 = vpow2.f32 %v2706_v61 }
 0x454   : > { %2981 = vrcp.f32 %v898_v62  ;;  %v911_v4 = vand.u32 2147483648, %v898_v62  ;;  %v909_v6 = vand.u32 2147483647, %v898_v62  ;;  %vm905_vm11 = vweird.f32 %v898_v62 }
 0x456   : > { %v912_v9 = vor.u32 1.1754944e-38, %v911_v4  ;;  %vm910_vm13 = vcmp.eq.f32.partialorder %v909_v6, 8.507059e+37 }
 0x459   : > { %v2980_v63 = vpop.eup %2979 }
 0x45a   : > { %v2982_v0 = vpop.eup %2981  ;;  %v899_v1 = vadd.f32 1.0, %v2980_v63 }
 0x45b   : > { %v901_v2 = vmul.f32 %v2982_v0, %v898_v62  ;;  %vm906_vm10 = vweird.f32 %v2982_v0 }
 0x45c   : > { %2983 = vrcp.f32 %v899_v1  ;;  %vm907_vm12 = vmor %vm905_vm11, %vm906_vm10  ;;  %v926_v16 = vand.u32 2147483648, %v899_v1  ;;  %v924_v18 = vand.u32 2147483647, %v899_v1  ;;  %vm920_vm15 = vweird.f32 %v899_v1 }
 0x45d   : > { %v902_v3 = vsub.f32 1.0, %v901_v2  ;;  %2985 = vtanh.f32 %v891_v59  ;;  %v527_v59 = vadd.f32 %v3642_v21, %v477_v58 }
 0x45e   : > { %v927_v20 = vor.u32 1.1754944e-38, %v926_v16  ;;  %vm925_vm2 = vcmp.eq.f32.partialorder %v924_v18, 8.507059e+37 }
 0x45f   : > { %v903_v5 = vmul.f32 %v2982_v0, %v902_v3 }
 0x461   : > { %v904_v7 = vadd.f32 %v2982_v0, %v903_v5 }
 0x462   : > { %v2984_v8 = vpop.eup %2983 }
 0x463   : > { %v908_v11 = vsel %vm907_vm12, %v2982_v0, %v904_v7  ;;  %v916_v12 = vmul.f32 %v2984_v8, %v899_v1  ;;  %vm921_vm14 = vweird.f32 %v2984_v8  ;;  %v2986_v23 = vpop.eup %2985 }
 0x464   : > { %v913_v13 = vsel %vm910_vm13, %v912_v9, %v908_v11  ;;  %vm922_vm1 = vmor %vm920_vm15, %vm921_vm14 }
 0x465   : > { %940 = vrot.lane.b32.xlu1 %v913_v13, %s3403_s13  ;;  %932 = vrot.lane.b32.xlu0 %v913_v13, %s3404_s11  ;;  %v917_v15 = vsub.f32 1.0, %v916_v12 }
 0x467   : > { %v918_v17 = vmul.f32 %v2984_v8, %v917_v15 }
 0x469   : > { %v919_v19 = vadd.f32 %v2984_v8, %v918_v17 }
 0x46b   : > { %v923_v22 = vsel %vm922_vm1, %v2984_v8, %v919_v19 }
 0x46c   : > { %v928_v24 = vsel %vm925_vm2, %v927_v20, %v923_v22 }
 0x46d   : > { %938 = vrot.lane.b32.xlu0 %v2986_v23, %s3405_s20  ;;  %934 = vrot.lane.b32.xlu2 %v928_v24, %s3404_s11 }
 0x475   : > { %942 = vrot.lane.b32.xlu2 %v928_v24, %s3403_s13 }
 0x4c2   : > { %v937_v29 = vpop.permute.xlu1 %936 }
 0x4c3   : > { %v946_v31 = vmul.f32 %v937_v29, %v913_v13 }
 0x4c7   : > { %v935_v34 = vpop.permute.xlu2 %934 }
 0x4c8   : > { %v945_v36 = vmul.f32 %v935_v34, %v3698_v45  ;;  %v1369_v45 = vld [vmem:[#allocation3] sm:$0xff]  ;;  %v3759_v34 = vld [vmem:[#allocation12 + $0x30] sm:$0xff] }
 0x4cf   : > { %v943_v43 = vpop.permute.xlu2 %942 }
 0x4d7   : > { %v933_v30 = vpop.permute.xlu0 %932  ;;  %v941_v40 = vpop.permute.xlu1 %940 }
 0x4d8   : > { %v944_v32 = vmul.f32 %v933_v30, %v3694_v38 }
 0x4da   : > { %v3728_v33 = vadd.f32 %v946_v31, %v944_v32  ;;  %v3757_v32 = vld [vmem:[#allocation12 + $0x38] sm:$0xff] }
 0x4db   : > { %1558 = vmatpush.msrb.mxu2 %v3757_v32 }
 0x4dc   : > { %2987 = vtanh.f32 %v3728_v33 }
 0x4dd   : > { %1559 = vmatpush.msrb.mxu2 %v3759_v34 }
 0x4df   : > { %v939_v35 = vpop.permute.xlu0 %938 }
 0x4e0   : > { %v947_v37 = vmul.f32 %v939_v35, %v928_v24  ;;  %v3762_v35 = vld [vmem:[#allocation12 + $0x28] sm:$0xff] }
 0x4e1   : > { %1560 = vmatpush.msrb.mxu2 %v3762_v35 }
 0x4e2   : > { %v2988_v39 = vpop.eup %2987  ;;  %v3732_v41 = vadd.f32 %v947_v37, %v945_v36  ;;  %v3765_v36 = vld [vmem:[#allocation12 + $0x20] sm:$0xff] }
 0x4e3   : > { %v952_v42 = vmul.f32 %v2988_v39, %v941_v40  ;;  %1561 = vmatpush.msrb.mxu2 %v3765_v36 }
 0x4e4   : > { %2989 = vtanh.f32 %v3732_v41 }
 0x4e5   : > { %955 = vst.msk [vmem:[#allocation3 + $0x30] sm:$0xff] %vm488_vm0, %v952_v42  ;;  %2707 = vmatmul.msk.f32.vlgmr.msrb.gmra.mxu1 %vm488_vm0, %v952_v42 }
 0x4ea   : > { %v2990_v38 = vpop.eup %2989 }
 0x4eb   : > { %v953_v44 = vmul.f32 %v2990_v38, %v943_v43 }
 0x4ec   : > { %v1375_v51 = vld [vmem:[#allocation3 + $0x30] sm:$0xff] }
 0x4ed   : > { %956 = vst.msk [vmem:[#allocation3 + $0x38] sm:$0xff] %vm488_vm0, %v953_v44  ;;  %2708 = vmatmul.msk.f32.gmra.mxu1 %vm488_vm0, %v953_v44 }
 0x4f4   : > { %v1376_v52 = vld [vmem:[#allocation3 + $0x38] sm:$0xff] }
 0x4f5   : > { %2723 = vmatmul.msk.f32.vlgmr.msra.gmra.mxu1 %vm488_vm0, %v1369_v45 }
 0x4fd   : > { %2724 = vmatmul.msk.f32.gmra.mxu1 %vm488_vm0, %v1370_v46 }
 0x505   : > { %2725 = vmatmul.msk.f32.gmra.mxu1 %vm488_vm0, %v1371_v47 }
 0x50d   : > { %2726 = vmatmul.msk.f32.gmra.mxu1 %vm488_vm0, %v1372_v48 }
 0x515   : > { %2727 = vmatmul.msk.f32.gmra.mxu1 %vm488_vm0, %v1373_v49 }
 0x51d   : > { %2728 = vmatmul.msk.f32.gmra.mxu1 %vm488_vm0, %v1374_v50 }
 0x525   : > { %2729 = vmatmul.msk.f32.gmra.mxu1 %vm488_vm0, %v1375_v51 }
 0x52d   : > { %2730 = vmatmul.msk.f32.gmra.mxu1 %vm488_vm0, %v1376_v52 }
 0x562   : > { %v987_v55 = vpop.f32.mrf.mxu1 }
 0x563   : > { %v993_v56 = vadd.f32 %v987_v55, %v526_v54  ;;  %v478_v54 = vld [vmem:[%s3610_s22 + $0x50] sm:$0xff] }
 0x564   : > { %v528_v55 = vadd.f32 %v3638_v14, %v478_v54 }
 0x565   : > { %v2709_v57 = vmul.f32 -1.442695, %v993_v56  ;;  %2991 = vtanh.f32 %v993_v56 }
 0x567   : > { %2993 = vpow2.f32 %v2709_v57 }
 0x56a   : > { %v990_v60 = vpop.f32.mrf.mxu1 }
 0x56b   : > { %v2992_v61 = vpop.eup %2991  ;;  %v994_v62 = vadd.f32 %v990_v60, %v527_v59  ;;  %v479_v59 = vld [vmem:[%s3610_s22 + $0x58] sm:$0xff] }
 0x56c   : > { %1039 = vrot.lane.b32.xlu1 %v2992_v61, %s3405_s20  ;;  %v529_v60 = vadd.f32 %v3642_v21, %v479_v59 }
 0x56d   : > { %v2994_v63 = vpop.eup %2993  ;;  %v2710_v0 = vmul.f32 -1.442695, %v994_v62 }
 0x56e   : > { %v1001_v1 = vadd.f32 1.0, %v2994_v63 }
 0x56f   : > { %2995 = vpow2.f32 %v2710_v0 }
 0x570   : > { %2997 = vrcp.f32 %v1001_v1  ;;  %v1014_v7 = vand.u32 2147483648, %v1001_v1  ;;  %v1012_v9 = vand.u32 2147483647, %v1001_v1  ;;  %vm1008_vm4 = vweird.f32 %v1001_v1 }
 0x572   : > { %v1015_v13 = vor.u32 1.1754944e-38, %v1014_v7  ;;  %vm1013_vm6 = vcmp.eq.f32.partialorder %v1012_v9, 8.507059e+37 }
 0x575   : > { %v2996_v2 = vpop.eup %2995 }
 0x576   : > { %v2998_v3 = vpop.eup %2997  ;;  %v1002_v4 = vadd.f32 1.0, %v2996_v2 }
 0x577   : > { %v1004_v5 = vmul.f32 %v2998_v3, %v1001_v1  ;;  %vm1009_vm3 = vweird.f32 %v2998_v3 }
 0x578   : > { %2999 = vrcp.f32 %v1002_v4  ;;  %vm1010_vm5 = vmor %vm1008_vm4, %vm1009_vm3  ;;  %v1029_v19 = vand.u32 2147483648, %v1002_v4  ;;  %v1027_v22 = vand.u32 2147483647, %v1002_v4  ;;  %vm1023_vm8 = vweird.f32 %v1002_v4 }
 0x579   : > { %v1005_v6 = vsub.f32 1.0, %v1004_v5  ;;  %3001 = vtanh.f32 %v994_v62 }
 0x57a   : > { %v1030_v24 = vor.u32 1.1754944e-38, %v1029_v19  ;;  %vm1028_vm10 = vcmp.eq.f32.partialorder %v1027_v22, 8.507059e+37 }
 0x57b   : > { %v1006_v8 = vmul.f32 %v2998_v3, %v1005_v6 }
 0x57d   : > { %v1007_v11 = vadd.f32 %v2998_v3, %v1006_v8 }
 0x57e   : > { %v3000_v12 = vpop.eup %2999 }
 0x57f   : > { %v1011_v15 = vsel %vm1010_vm5, %v2998_v3, %v1007_v11  ;;  %v1019_v16 = vmul.f32 %v3000_v12, %v1002_v4  ;;  %vm1024_vm7 = vweird.f32 %v3000_v12  ;;  %v3002_v30 = vpop.eup %3001 }
 0x580   : > { %v1016_v17 = vsel %vm1013_vm6, %v1015_v13, %v1011_v15  ;;  %vm1025_vm9 = vmor %vm1023_vm8, %vm1024_vm7 }
 0x581   : > { %1043 = vrot.lane.b32.xlu1 %v1016_v17, %s3403_s13  ;;  %1035 = vrot.lane.b32.xlu0 %v1016_v17, %s3404_s11  ;;  %v1020_v18 = vsub.f32 1.0, %v1019_v16 }
 0x583   : > { %v1021_v20 = vmul.f32 %v3000_v12, %v1020_v18 }
 0x585   : > { %v1022_v23 = vadd.f32 %v3000_v12, %v1021_v20 }
 0x587   : > { %v1026_v29 = vsel %vm1025_vm9, %v3000_v12, %v1022_v23 }
 0x588   : > { %v1031_v31 = vsel %vm1028_vm10, %v1030_v24, %v1026_v29 }
 0x589   : > { %1041 = vrot.lane.b32.xlu0 %v3002_v30, %s3405_s20  ;;  %1037 = vrot.lane.b32.xlu2 %v1031_v31, %s3404_s11 }
 0x591   : > { %1045 = vrot.lane.b32.xlu2 %v1031_v31, %s3403_s13 }
 0x5de   : > { %v1040_v37 = vpop.permute.xlu1 %1039 }
 0x5df   : > { %v1049_v40 = vmul.f32 %v1040_v37, %v1016_v17  ;;  %v1169_v37 = vld [vmem:[#allocation12 + $0x18] sm:$0xff] }
 0x5e0   : > { %1188 = vmatpush.msrb.mxu3 %v1169_v37  ;;  %1291 = vmatpush.msra.mxu0 %v1169_v37 }
 0x5e3   : > { %v1038_v43 = vpop.permute.xlu2 %1037 }
 0x5e4   : > { %v1048_v45 = vmul.f32 %v1038_v43, %v3732_v41 }
 0x5eb   : > { %v1046_v51 = vpop.permute.xlu2 %1045 }
 0x5f3   : > { %v1036_v39 = vpop.permute.xlu0 %1035  ;;  %v1044_v48 = vpop.permute.xlu1 %1043 }
 0x5f4   : > { %v1047_v42 = vmul.f32 %v1036_v39, %v3728_v33  ;;  %v1168_v39 = vld [vmem:[#allocation12 + $0x10] sm:$0xff] }
 0x5f5   : > { %1189 = vmatpush.msrb.mxu3 %v1168_v39  ;;  %1292 = vmatpush.msra.mxu0 %v1168_v39 }
 0x5f6   : > { %v3770_v38 = vadd.f32 %v1049_v40, %v1047_v42  ;;  %v1167_v40 = vld [vmem:[#allocation12 + $0x8] sm:$0xff]  ;;  %v1166_v42 = vld [vmem:[#allocation12] sm:$0xff] }
 0x5f7   : > { %1190 = vmatpush.msrb.mxu3 %v1167_v40  ;;  %1293 = vmatpush.msra.mxu0 %v1167_v40 }
 0x5f8   : > { %3003 = vtanh.f32 %v3770_v38 }
 0x5f9   : > { %1191 = vmatpush.msrb.mxu3 %v1166_v42  ;;  %1294 = vmatpush.msra.mxu0 %v1166_v42 }
 0x5fb   : > { %v1042_v44 = vpop.permute.xlu0 %1041  ;;  %2798 = vmatpush.msra.mxu3 %v3715_v25  ;;  %1760 = vmatpush.msrb.mxu0 %v3757_v32 }
 0x5fc   : > { %v1050_v46 = vmul.f32 %v1042_v44, %v1031_v31 }
 0x5fd   : > { %2799 = vmatpush.msra.mxu3 %v3717_v26  ;;  %1761 = vmatpush.msrb.mxu0 %v3759_v34 }
 0x5fe   : > { %v3004_v47 = vpop.eup %3003  ;;  %v3774_v49 = vadd.f32 %v1050_v46, %v1048_v45 }
 0x5ff   : > { %v1055_v50 = vmul.f32 %v3004_v47, %v1044_v48  ;;  %2800 = vmatpush.msra.mxu3 %v3720_v27  ;;  %1762 = vmatpush.msrb.mxu0 %v3762_v35 }
 0x600   : > { %3005 = vtanh.f32 %v3774_v49 }
 0x601   : > { %1058 = vst.msk [vmem:[#allocation3 + $0x40] sm:$0xff] %vm488_vm0, %v1055_v50  ;;  %2711 = vmatmul.msk.f32.vlgmr.msra.gmra.mxu2 %vm488_vm0, %v1055_v50  ;;  %2801 = vmatpush.msra.mxu3 %v3723_v28 }
 0x602   : > { %1861 = vmatpush.msra.mxu2 %v3757_v32  ;;  %1763 = vmatpush.msrb.mxu0 %v3765_v36 }
 0x604   : > { %1862 = vmatpush.msra.mxu2 %v3759_v34 }
 0x606   : > { %v3006_v33 = vpop.eup %3005  ;;  %1863 = vmatpush.msra.mxu2 %v3762_v35 }
 0x607   : > { %v1056_v41 = vmul.f32 %v3006_v33, %v1046_v51 }
 0x608   : > { %v1377_v52 = vld [vmem:[#allocation3 + $0x40] sm:$0xff]  ;;  %1864 = vmatpush.msra.mxu2 %v3765_v36 }
 0x609   : > { %1059 = vst.msk [vmem:[#allocation3 + $0x48] sm:$0xff] %vm488_vm0, %v1056_v41  ;;  %2712 = vmatmul.msk.f32.gmra.mxu2 %vm488_vm0, %v1056_v41  ;;  %2731 = vmatmul.msk.f32.gmra.mxu1 %vm488_vm0, %v1377_v52 }
 0x610   : > { %v1378_v53 = vld [vmem:[#allocation3 + $0x48] sm:$0xff] }
 0x611   : > { %2732 = vmatmul.msk.f32.gmra.mxu1 %vm488_vm0, %v1378_v53  ;;  %1562 = vmatmul.f32.vlgmr.msrb.gmra.mxu2 %v3402_v10 }
 0x619   : > { %1565 = vmatmul.f32.gmra.mxu2 %v3402_v10 }
 0x684   : > { %v1090_v56 = vpop.f32.mrf.mxu2 }
 0x685   : > { %v1096_v57 = vadd.f32 %v1090_v56, %v528_v55 }
 0x687   : > { %v2713_v58 = vmul.f32 -1.442695, %v1096_v57  ;;  %3007 = vtanh.f32 %v1096_v57 }
 0x689   : > { %3009 = vpow2.f32 %v2713_v58 }
 0x68c   : > { %v1093_v61 = vpop.f32.mrf.mxu2 }
 0x68d   : > { %v3008_v62 = vpop.eup %3007  ;;  %v1097_v63 = vadd.f32 %v1093_v61, %v529_v60 }
 0x68e   : > { %1142 = vrot.lane.b32.xlu1 %v3008_v62, %s3405_s20 }
 0x68f   : > { %v3010_v0 = vpop.eup %3009  ;;  %v2714_v1 = vmul.f32 -1.442695, %v1097_v63 }
 0x690   : > { %v1104_v2 = vadd.f32 1.0, %v3010_v0 }
 0x691   : > { %3011 = vpow2.f32 %v2714_v1 }
 0x692   : > { %3013 = vrcp.f32 %v1104_v2  ;;  %v1117_v7 = vand.u32 2147483648, %v1104_v2  ;;  %v1115_v9 = vand.u32 2147483647, %v1104_v2  ;;  %vm1111_vm12 = vweird.f32 %v1104_v2 }
 0x694   : > { %v1118_v13 = vor.u32 1.1754944e-38, %v1117_v7  ;;  %vm1116_vm14 = vcmp.eq.f32.partialorder %v1115_v9, 8.507059e+37 }
 0x697   : > { %v3012_v10 = vpop.eup %3011 }
 0x698   : > { %v3014_v3 = vpop.eup %3013  ;;  %v1105_v4 = vadd.f32 1.0, %v3012_v10 }
 0x699   : > { %v1107_v5 = vmul.f32 %v3014_v3, %v1104_v2  ;;  %vm1112_vm11 = vweird.f32 %v3014_v3 }
 0x69a   : > { %3015 = vrcp.f32 %v1105_v4  ;;  %vm1113_vm13 = vmor %vm1111_vm12, %vm1112_vm11  ;;  %v1132_v19 = vand.u32 2147483648, %v1105_v4  ;;  %v1130_v22 = vand.u32 2147483647, %v1105_v4  ;;  %vm1126_vm1 = vweird.f32 %v1105_v4 }
 0x69b   : > { %v1108_v6 = vsub.f32 1.0, %v1107_v5  ;;  %3017 = vtanh.f32 %v1097_v63 }
 0x69c   : > { %v1133_v24 = vor.u32 1.1754944e-38, %v1132_v19  ;;  %vm1131_vm3 = vcmp.eq.f32.partialorder %v1130_v22, 8.507059e+37 }
 0x69d   : > { %v1109_v8 = vmul.f32 %v3014_v3, %v1108_v6 }
 0x69f   : > { %v1110_v11 = vadd.f32 %v3014_v3, %v1109_v8 }
 0x6a0   : > { %v3016_v12 = vpop.eup %3015 }
 0x6a1   : > { %v1114_v15 = vsel %vm1113_vm13, %v3014_v3, %v1110_v11  ;;  %v1122_v16 = vmul.f32 %v3016_v12, %v1105_v4  ;;  %vm1127_vm15 = vweird.f32 %v3016_v12  ;;  %v3018_v30 = vpop.eup %3017 }
 0x6a2   : > { %v1119_v17 = vsel %vm1116_vm14, %v1118_v13, %v1114_v15  ;;  %vm1128_vm2 = vmor %vm1126_vm1, %vm1127_vm15 }
 0x6a3   : > { %1146 = vrot.lane.b32.xlu1 %v1119_v17, %s3403_s13  ;;  %1138 = vrot.lane.b32.xlu0 %v1119_v17, %s3404_s11  ;;  %v1123_v18 = vsub.f32 1.0, %v1122_v16 }
 0x6a5   : > { %v1124_v20 = vmul.f32 %v3016_v12, %v1123_v18 }
 0x6a7   : > { %v1125_v23 = vadd.f32 %v3016_v12, %v1124_v20 }
 0x6a9   : > { %v1129_v29 = vsel %vm1128_vm2, %v3016_v12, %v1125_v23 }
 0x6aa   : > { %v1134_v31 = vsel %vm1131_vm3, %v1133_v24, %v1129_v29 }
 0x6ab   : > { %1144 = vrot.lane.b32.xlu0 %v3018_v30, %s3405_s20  ;;  %1140 = vrot.lane.b32.xlu2 %v1134_v31, %s3404_s11 }
 0x6b3   : > { %1148 = vrot.lane.b32.xlu2 %v1134_v31, %s3403_s13 }
 0x700   : > { %v1143_v43 = vpop.permute.xlu1 %1142 }
 0x701   : > { %v1152_v45 = vmul.f32 %v1143_v43, %v1119_v17 }
 0x705   : > { %v1141_v26 = vpop.permute.xlu2 %1140 }
 0x706   : > { %v1151_v48 = vmul.f32 %v1141_v26, %v3774_v49 }
 0x70d   : > { %v1149_v41 = vpop.permute.xlu2 %1148 }
 0x715   : > { %v1139_v44 = vpop.permute.xlu0 %1138  ;;  %v1147_v33 = vpop.permute.xlu1 %1146 }
 0x716   : > { %v1150_v46 = vmul.f32 %v1139_v44, %v3770_v38 }
 0x718   : > { %v3808_v25 = vadd.f32 %v1152_v45, %v1150_v46 }
 0x71a   : > { %3019 = vtanh.f32 %v3808_v25 }
 0x71d   : > { %v1145_v47 = vpop.permute.xlu0 %1144 }
 0x71e   : > { %v1153_v27 = vmul.f32 %v1145_v47, %v1134_v31 }
 0x720   : > { %v3020_v50 = vpop.eup %3019  ;;  %v3812_v51 = vadd.f32 %v1153_v27, %v1151_v48 }
 0x721   : > { %v1158_v28 = vmul.f32 %v3020_v50, %v1147_v33  ;;  %v1454_v33 = vpop.f32.mrf.mxu1 }
 0x722   : > { %3021 = vtanh.f32 %v3812_v51 }
 0x723   : > { %1161 = vst.msk [vmem:[#allocation3 + $0x50] sm:$0xff] %vm488_vm0, %v1158_v28  ;;  %2715 = vmatmul.msk.f32.vlgmr.msrb.gmra.mxu3 %vm488_vm0, %v1158_v28  ;;  %v1563_v28 = vpop.f32.mrf.mxu2 }
 0x724   : > { %1659 = vmatpush.msrb.mxu3 %v3757_v32  ;;  %v480_v32 = vld [vmem:[%s3610_s22 + $0x60] sm:$0xff] }
 0x726   : > { %1660 = vmatpush.msrb.mxu3 %v3759_v34  ;;  %v530_v34 = vadd.f32 %v3638_v14, %v480_v32 }
 0x728   : > { %v3022_v38 = vpop.eup %3021  ;;  %1661 = vmatpush.msrb.mxu3 %v3762_v35  ;;  %v481_v35 = vld [vmem:[%s3610_s22 + $0x68] sm:$0xff] }
 0x729   : > { %v1159_v49 = vmul.f32 %v3022_v38, %v1149_v41 }
 0x72a   : > { %v1379_v52 = vld [vmem:[#allocation3 + $0x50] sm:$0xff]  ;;  %1662 = vmatpush.msrb.mxu3 %v3765_v36  ;;  %v531_v36 = vadd.f32 %v3642_v21, %v481_v35 }
 0x72b   : > { %1162 = vst.msk [vmem:[#allocation3 + $0x58] sm:$0xff] %vm488_vm0, %v1159_v49  ;;  %2716 = vmatmul.msk.f32.gmra.mxu3 %vm488_vm0, %v1159_v49  ;;  %2733 = vmatmul.msk.f32.gmra.mxu1 %vm488_vm0, %v1379_v52  ;;  %v482_v49 = vld [vmem:[%s3610_s22 + $0x70] sm:$0xff]  ;;  %v1457_v52 = vpop.f32.mrf.mxu1 }
 0x732   : > { %v1380_v53 = vld [vmem:[#allocation3 + $0x58] sm:$0xff] }
 0x733   : > { %2734 = vmatmul.msk.f32.gmra.mxu1 %vm488_vm0, %v1380_v53  ;;  %v532_v53 = vadd.f32 %v3638_v14, %v482_v49 }
 0x7a6   : > { %v1193_v54 = vpop.f32.mrf.mxu3 }
 0x7a7   : > { %v1199_v55 = vadd.f32 %v1193_v54, %v530_v34  ;;  %v1566_v54 = vpop.f32.mrf.mxu2 }
 0x7a9   : > { %v2717_v56 = vmul.f32 -1.442695, %v1199_v55  ;;  %3023 = vtanh.f32 %v1199_v55 }
 0x7ab   : > { %3025 = vpow2.f32 %v2717_v56 }
 0x7ae   : > { %v1196_v57 = vpop.f32.mrf.mxu3 }
 0x7af   : > { %v3024_v58 = vpop.eup %3023  ;;  %v1200_v59 = vadd.f32 %v1196_v57, %v531_v36  ;;  %v483_v57 = vld [vmem:[%s3610_s22 + $0x78] sm:$0xff] }
 0x7b0   : > { %1245 = vrot.lane.b32.xlu1 %v3024_v58, %s3405_s20  ;;  %v533_v58 = vadd.f32 %v3642_v21, %v483_v57 }
 0x7b1   : > { %v3026_v60 = vpop.eup %3025  ;;  %v2718_v61 = vmul.f32 -1.442695, %v1200_v59 }
 0x7b2   : > { %v1207_v62 = vadd.f32 1.0, %v3026_v60 }
 0x7b3   : > { %3027 = vpow2.f32 %v2718_v61 }
 0x7b4   : > { %3029 = vrcp.f32 %v1207_v62  ;;  %v1220_v3 = vand.u32 2147483648, %v1207_v62  ;;  %v1218_v5 = vand.u32 2147483647, %v1207_v62  ;;  %vm1214_vm5 = vweird.f32 %v1207_v62 }
 0x7b6   : > { %v1221_v8 = vor.u32 1.1754944e-38, %v1220_v3  ;;  %vm1219_vm7 = vcmp.eq.f32.partialorder %v1218_v5, 8.507059e+37 }
 0x7b9   : > { %v3028_v63 = vpop.eup %3027 }
 0x7ba   : > { %v3030_v0 = vpop.eup %3029  ;;  %v1208_v1 = vadd.f32 1.0, %v3028_v63 }
 0x7bb   : > { %v1210_v2 = vmul.f32 %v3030_v0, %v1207_v62  ;;  %vm1215_vm4 = vweird.f32 %v3030_v0 }
 0x7bc   : > { %3031 = vrcp.f32 %v1208_v1  ;;  %vm1216_vm6 = vmor %vm1214_vm5, %vm1215_vm4  ;;  %v1235_v15 = vand.u32 2147483648, %v1208_v1  ;;  %v1233_v17 = vand.u32 2147483647, %v1208_v1  ;;  %vm1229_vm9 = vweird.f32 %v1208_v1 }
 0x7bd   : > { %v1211_v10 = vsub.f32 1.0, %v1210_v2  ;;  %3033 = vtanh.f32 %v1200_v59 }
 0x7be   : > { %v1236_v19 = vor.u32 1.1754944e-38, %v1235_v15  ;;  %vm1234_vm11 = vcmp.eq.f32.partialorder %v1233_v17, 8.507059e+37 }
 0x7bf   : > { %v1212_v4 = vmul.f32 %v3030_v0, %v1211_v10 }
 0x7c1   : > { %v1213_v6 = vadd.f32 %v3030_v0, %v1212_v4 }
 0x7c2   : > { %v3032_v7 = vpop.eup %3031 }
 0x7c3   : > { %v1217_v9 = vsel %vm1216_vm6, %v3030_v0, %v1213_v6  ;;  %v1225_v11 = vmul.f32 %v3032_v7, %v1208_v1  ;;  %vm1230_vm8 = vweird.f32 %v3032_v7  ;;  %v3034_v22 = vpop.eup %3033 }
 0x7c4   : > { %v1222_v12 = vsel %vm1219_vm7, %v1221_v8, %v1217_v9  ;;  %vm1231_vm10 = vmor %vm1229_vm9, %vm1230_vm8 }
 0x7c5   : > { %1249 = vrot.lane.b32.xlu1 %v1222_v12, %s3403_s13  ;;  %1241 = vrot.lane.b32.xlu0 %v1222_v12, %s3404_s11  ;;  %v1226_v13 = vsub.f32 1.0, %v1225_v11 }
 0x7c7   : > { %v1227_v16 = vmul.f32 %v3032_v7, %v1226_v13 }
 0x7c9   : > { %v1228_v18 = vadd.f32 %v3032_v7, %v1227_v16 }
 0x7cb   : > { %v1232_v20 = vsel %vm1231_vm10, %v3032_v7, %v1228_v18 }
 0x7cc   : > { %v1237_v23 = vsel %vm1234_vm11, %v1236_v19, %v1232_v20 }
 0x7cd   : > { %1247 = vrot.lane.b32.xlu0 %v3034_v22, %s3405_s20  ;;  %1243 = vrot.lane.b32.xlu2 %v1237_v23, %s3404_s11 }
 0x7d5   : > { %1251 = vrot.lane.b32.xlu2 %v1237_v23, %s3403_s13 }
 0x822   : > { %v1246_v24 = vpop.permute.xlu1 %1245 }
 0x823   : > { %v1255_v30 = vmul.f32 %v1246_v24, %v1222_v12 }
 0x827   : > { %v1244_v39 = vpop.permute.xlu2 %1243 }
 0x828   : > { %v1254_v42 = vmul.f32 %v1244_v39, %v3812_v51  ;;  %v3852_v51 = vld [vmem:[%s4145_s5 + $0x1] ss:$0 sm:$0xff] }
 0x829   : > { %v1507_v38 = vadd.f32 %v3852_v51, %v1454_v33  ;;  %v1508_v56 = vadd.f32 %v3852_v51, %v1457_v52 }
 0x82b   : > { %v1569_v41 = vadd.f32 %v1563_v28, %v1507_v38  ;;  %v3858_v36 = vadd.f32 %v1566_v54, %v1508_v56 }
 0x82d   : > { %v2740_v32 = vmul.f32 -1.442695, %v1569_v41  ;;  %v2741_v59 = vmul.f32 -1.442695, %v3858_v36 }
 0x82f   : > { %v1252_v47 = vpop.permute.xlu2 %1251 }
 0x837   : > { %v1242_v29 = vpop.permute.xlu0 %1241  ;;  %v1250_v45 = vpop.permute.xlu1 %1249 }
 0x838   : > { %v1253_v31 = vmul.f32 %v1242_v29, %v3808_v25 }
 0x83a   : > { %v3836_v37 = vadd.f32 %v1255_v30, %v1253_v31 }
 0x83c   : > { %3035 = vtanh.f32 %v3836_v37 }
 0x83f   : > { %v1248_v40 = vpop.permute.xlu0 %1247 }
 0x840   : > { %v1256_v43 = vmul.f32 %v1248_v40, %v1237_v23 }
 0x842   : > { %v3036_v44 = vpop.eup %3035  ;;  %v3840_v46 = vadd.f32 %v1256_v43, %v1254_v42 }
 0x843   : > { %v1261_v26 = vmul.f32 %v3036_v44, %v1250_v45 }
 0x844   : > { %3037 = vtanh.f32 %v3840_v46 }
 0x845   : > { %1264 = vst.msk [vmem:[#allocation3 + $0x60] sm:$0xff] %vm488_vm0, %v1261_v26  ;;  %2719 = vmatmul.msk.f32.vlgmr.msra.gmra.mxu0 %vm488_vm0, %v1261_v26 }
 0x84a   : > { %v3038_v25 = vpop.eup %3037 }
 0x84b   : > { %v1262_v48 = vmul.f32 %v3038_v25, %v1252_v47 }
 0x84c   : > { %v1381_v27 = vld [vmem:[#allocation3 + $0x60] sm:$0xff] }
 0x84d   : > { %1265 = vst.msk [vmem:[#allocation3 + $0x68] sm:$0xff] %vm488_vm0, %v1262_v48  ;;  %2720 = vmatmul.msk.f32.gmra.mxu0 %vm488_vm0, %v1262_v48  ;;  %2735 = vmatmul.msk.f32.gmra.mxu1 %vm488_vm0, %v1381_v27 }
 0x854   : > { %v1382_v50 = vld [vmem:[#allocation3 + $0x68] sm:$0xff] }
 0x855   : > { %2736 = vmatmul.msk.f32.vlgmr.msra.gmra.mxu3 %vm488_vm0, %v1382_v50 }
 0x8c2   : > { %v1296_v34 = vpop.f32.mrf.mxu0 }
 0x8c3   : > { %v1302_v55 = vadd.f32 %v1296_v34, %v532_v53 }
 0x8c5   : > { %v2721_v35 = vmul.f32 -1.442695, %v1302_v55  ;;  %3039 = vtanh.f32 %v1302_v55 }
 0x8c6   : > { %3041 = vpow2.f32 %v2740_v32 }
 0x8c7   : > { %3043 = vpow2.f32 %v2721_v35 }
 0x8c8   : > { %3045 = vpow2.f32 %v2741_v59 }
 0x8ca   : > { %v1299_v60 = vpop.f32.mrf.mxu0 }
 0x8cb   : > { %v3040_v61 = vpop.eup %3039  ;;  %v1303_v14 = vadd.f32 %v1299_v60, %v533_v58 }
 0x8cc   : > { %v3042_v62 = vpop.eup %3041  ;;  %1348 = vrot.lane.b32.xlu1 %v3040_v61, %s3405_s20 }
 0x8cd   : > { %v3044_v63 = vpop.eup %3043  ;;  %v2722_v0 = vmul.f32 -1.442695, %v1303_v14  ;;  %v1577_v2 = vadd.f32 1.0, %v3042_v62 }
 0x8ce   : > { %v1310_v1 = vadd.f32 1.0, %v3044_v63  ;;  %v3046_v10 = vpop.eup %3045 }
 0x8cf   : > { %3047 = vpow2.f32 %v2722_v0  ;;  %v3864_v6 = vadd.f32 1.0, %v3046_v10  ;;  %v1590_v27 = vand.u32 2147483648, %v1577_v2  ;;  %vm1584_vm6 = vweird.f32 %v1577_v2 }
 0x8d0   : > { %3049 = vrcp.f32 %v1310_v1  ;;  %v1323_v9 = vand.u32 2147483648, %v1310_v1  ;;  %v1321_v12 = vand.u32 2147483647, %v1310_v1  ;;  %vm1317_vm13 = vweird.f32 %v1310_v1 }
 0x8d1   : > { %3051 = vrcp.f32 %v1577_v2  ;;  %v1588_v50 = vand.u32 2147483647, %v1577_v2  ;;  %v1591_v38 = vor.u32 1.1754944e-38, %v1590_v27  ;;  %v1605_v52 = vand.u32 2147483648, %v3864_v6 }
 0x8d2   : > { %v1324_v17 = vor.u32 1.1754944e-38, %v1323_v9  ;;  %vm1322_vm15 = vcmp.eq.f32.partialorder %v1321_v12, 8.507059e+37  ;;  %vm1599_vm10 = vweird.f32 %v3864_v6  ;;  %v1603_v53 = vand.u32 2147483647, %v3864_v6 }
 0x8d3   : > { %vm1589_vm8 = vcmp.eq.f32.partialorder %v1588_v50, 8.507059e+37  ;;  %v1606_v34 = vor.u32 1.1754944e-38, %v1605_v52 }
 0x8d5   : > { %v3048_v3 = vpop.eup %3047 }
 0x8d6   : > { %v3050_v4 = vpop.eup %3049  ;;  %v1311_v21 = vadd.f32 1.0, %v3048_v3 }
 0x8d7   : > { %v1313_v5 = vmul.f32 %v3050_v4, %v1310_v1  ;;  %v3052_v8 = vpop.eup %3051  ;;  %vm1318_vm12 = vweird.f32 %v3050_v4 }
 0x8d8   : > { %3053 = vrcp.f32 %v1311_v21  ;;  %v1580_v15 = vmul.f32 %v3052_v8, %v1577_v2  ;;  %vm1319_vm14 = vmor %vm1317_vm13, %vm1318_vm12  ;;  %v1338_v29 = vand.u32 2147483648, %v1311_v21  ;;  %v1336_v31 = vand.u32 2147483647, %v1311_v21 }
 0x8d9   : > { %v1314_v7 = vsub.f32 1.0, %v1313_v5  ;;  %3055 = vrcp.f32 %v3864_v6  ;;  %vm1332_vm2 = vweird.f32 %v1311_v21  ;;  %vm1585_vm5 = vweird.f32 %v3052_v8 }
 0x8da   : > { %v1581_v23 = vsub.f32 1.0, %v1580_v15  ;;  %3057 = vtanh.f32 %v1303_v14  ;;  %v1339_v43 = vor.u32 1.1754944e-38, %v1338_v29  ;;  %vm1337_vm4 = vcmp.eq.f32.partialorder %v1336_v31, 8.507059e+37  ;;  %vm1586_vm7 = vmor %vm1584_vm6, %vm1585_vm5  ;;  %v1460_v29 = vpop.f32.mrf.mxu1 }
 0x8db   : > { %v1315_v11 = vmul.f32 %v3050_v4, %v1314_v7  ;;  %3059 = vtanh.f32 %v1569_v41  ;;  %vm1604_vm12 = vcmp.eq.f32.partialorder %v1603_v53, 8.507059e+37 }
 0x8dc   : > { %v1582_v40 = vmul.f32 %v3052_v8, %v1581_v23  ;;  %3061 = vtanh.f32 %v3858_v36 }
 0x8dd   : > { %v1316_v13 = vadd.f32 %v3050_v4, %v1315_v11 }
 0x8de   : > { %v3054_v16 = vpop.eup %3053  ;;  %v1583_v47 = vadd.f32 %v3052_v8, %v1582_v40 }
 0x8df   : > { %v1320_v18 = vsel %vm1319_vm14, %v3050_v4, %v1316_v13  ;;  %v1328_v19 = vmul.f32 %v3054_v16, %v1311_v21  ;;  %v3056_v24 = vpop.eup %3055  ;;  %vm1333_vm1 = vweird.f32 %v3054_v16 }
 0x8e0   : > { %v1325_v20 = vsel %vm1322_vm15, %v1324_v17, %v1320_v18  ;;  %v1595_v42 = vmul.f32 %v3056_v24, %v3864_v6  ;;  %vm1334_vm3 = vmor %vm1332_vm2, %vm1333_vm1  ;;  %v3058_v45 = vpop.eup %3057  ;;  %v1587_v33 = vsel %vm1586_vm7, %v3052_v8, %v1583_v47  ;;  %vm1600_vm9 = vweird.f32 %v3056_v24 }
 0x8e1   : > { %1352 = vrot.lane.b32.xlu1 %v1325_v20, %s3403_s13  ;;  %1344 = vrot.lane.b32.xlu0 %v1325_v20, %s3404_s11  ;;  %v1329_v22 = vsub.f32 1.0, %v1328_v19  ;;  %v3060_v25 = vpop.eup %3059  ;;  %v1592_v41 = vsel %vm1589_vm8, %v1591_v38, %v1587_v33  ;;  %vm1601_vm11 = vmor %vm1599_vm10, %vm1600_vm9 }
 0x8e2   : > { %v1596_v48 = vsub.f32 1.0, %v1595_v42  ;;  %v3062_v54 = vpop.eup %3061  ;;  %v1463_v42 = vpop.f32.mrf.mxu1 }
 0x8e3   : > { %v1330_v30 = vmul.f32 %v3054_v16, %v1329_v22  ;;  %v3899_v22 = vpop.f32.mrf.mxu3 }
 0x8e4   : > { %v1597_v28 = vmul.f32 %v3056_v24, %v1596_v48 }
 0x8e5   : > { %v1331_v39 = vadd.f32 %v3054_v16, %v1330_v30  ;;  %v1509_v30 = vadd.f32 %v3852_v51, %v1460_v29 }
 0x8e6   : > { %v1598_v49 = vadd.f32 %v3056_v24, %v1597_v28 }
 0x8e7   : > { %v1335_v44 = vsel %vm1334_vm3, %v3054_v16, %v1331_v39 }
 0x8e8   : > { %v1340_v26 = vsel %vm1337_vm4, %v1339_v43, %v1335_v44  ;;  %v1602_v32 = vsel %vm1601_vm11, %v3056_v24, %v1598_v49  ;;  %v1510_v43 = vadd.f32 %v3852_v51, %v1463_v42 }
 0x8e9   : > { %1350 = vrot.lane.b32.xlu0 %v3058_v45, %s3405_s20  ;;  %1346 = vrot.lane.b32.xlu2 %v1340_v26, %s3404_s11  ;;  %v1607_v55 = vsel %vm1604_vm12, %v1606_v34, %v1602_v32 }
 0x8ea   : > { %1615 = vrot.lane.b32.xlu1 %v3060_v25, %s3405_s20 }
 0x8f1   : > { %1354 = vrot.lane.b32.xlu2 %v1340_v26, %s3403_s13  ;;  %1611 = vrot.lane.b32.xlu0 %v1592_v41, %s3404_s11 }
 0x8f2   : > { %1619 = vrot.lane.b32.xlu1 %v1592_v41, %s3403_s13 }
 0x8f9   : > { %1617 = vrot.lane.b32.xlu0 %v3062_v54, %s3405_s20  ;;  %1613 = vrot.lane.b32.xlu2 %v1607_v55, %s3404_s11 }
 0x901   : > { %1621 = vrot.lane.b32.xlu2 %v1607_v55, %s3403_s13 }
 0x93e   : > { %v1349_v56 = vpop.permute.xlu1 %1348 }
 0x93f   : > { %v1358_v36 = vmul.f32 %v1349_v56, %v1325_v20 }
 0x943   : > { %v1347_v58 = vpop.permute.xlu2 %1346 }
 0x944   : > { %v1357_v14 = vmul.f32 %v1347_v58, %v3840_v46 }
 0x94b   : > { %v1355_v1 = vpop.permute.xlu2 %1354 }
 0x953   : > { %v1345_v35 = vpop.permute.xlu0 %1344  ;;  %v1353_v60 = vpop.permute.xlu1 %1352 }
 0x954   : > { %v1356_v57 = vmul.f32 %v1345_v35, %v3836_v37  ;;  %v1614_v46 = vpop.permute.xlu2 %1613 }
 0x955   : > { %v1624_v9 = vmul.f32 0.0, %v1614_v46 }
 0x956   : > { %v1360_v59 = vadd.f32 %v1358_v36, %v1356_v57 }
 0x958   : > { %3063 = vtanh.f32 %v1360_v59 }
 0x95b   : > { %v1351_v61 = vpop.permute.xlu0 %1350 }
 0x95c   : > { %v1359_v62 = vmul.f32 %v1351_v61, %v1340_v26  ;;  %v1616_v10 = vpop.permute.xlu1 %1615  ;;  %v1622_v19 = vpop.permute.xlu2 %1621 }
 0x95d   : > { %v1625_v4 = vmul.f32 %v1616_v10, %v1592_v41 }
 0x95e   : > { %v3064_v63 = vpop.eup %3063  ;;  %v1361_v0 = vadd.f32 %v1359_v62, %v1357_v14 }
 0x95f   : > { %v1364_v2 = vmul.f32 %v3064_v63, %v1353_v60 }
 0x960   : > { %3065 = vtanh.f32 %v1361_v0 }
 0x961   : > { %1367 = vst.msk [vmem:[#allocation3 + $0x70] sm:$0xff] %vm488_vm0, %v1364_v2 }
 0x963   : > { %v1612_v3 = vpop.permute.xlu0 %1611 }
 0x964   : > { %v1623_v21 = vmul.f32 0.0, %v1612_v3  ;;  %v1620_v13 = vpop.permute.xlu1 %1619 }
 0x966   : > { %v3066_v37 = vpop.eup %3065  ;;  %v3886_v5 = vadd.f32 %v1625_v4, %v1623_v21 }
 0x967   : > { %v1365_v6 = vmul.f32 %v3066_v37, %v1355_v1 }
 0x968   : > { %3067 = vtanh.f32 %v3886_v5  ;;  %v1383_v7 = vld [vmem:[#allocation3 + $0x70] sm:$0xff] }
 0x969   : > { %1368 = vst.msk [vmem:[#allocation3 + $0x78] sm:$0xff] %vm488_vm0, %v1365_v6  ;;  %2737 = vmatmul.msk.f32.gmra.mxu3 %vm488_vm0, %v1383_v7 }
 0x96b   : > { %v1618_v8 = vpop.permute.xlu0 %1617 }
 0x96c   : > { %v1626_v11 = vmul.f32 %v1618_v8, %v1607_v55 }
 0x96e   : > { %v3068_v12 = vpop.eup %3067  ;;  %v3891_v15 = vadd.f32 %v1626_v11, %v1624_v9 }
 0x96f   : > { %v1631_v16 = vmul.f32 %v3068_v12, %v1620_v13  ;;  %v1466_v12 = vpop.f32.mrf.mxu1 }
 0x970   : > { %3069 = vtanh.f32 %v3891_v15  ;;  %v1384_v17 = vld [vmem:[#allocation3 + $0x78] sm:$0xff]  ;;  %v1511_v13 = vadd.f32 %v3852_v51, %v1466_v12 }
 0x971   : > { %1633 = vst.msk [vmem:[#allocation3] sm:$0xff] %vm488_vm0, %v1631_v16  ;;  %2738 = vmatmul.msk.f32.gmra.mxu3 %vm488_vm0, %v1384_v17 }
 0x976   : > { %v3070_v18 = vpop.eup %3069 }
 0x977   : > { %v1632_v20 = vmul.f32 %v3070_v18, %v1622_v19  ;;  %v1469_v18 = vpop.f32.mrf.mxu1 }
 0x978   : > { %v1512_v19 = vadd.f32 %v3852_v51, %v1469_v18 }
 0x979   : > { %2742 = vmatmul.msk.f32.vlgmr.msrb.gmra.mxu3 %vm488_vm0, %v1631_v16  ;;  %1634 = vst.msk [vmem:[#allocation3 + $0x8] sm:$0xff] %vm488_vm0, %v1632_v20 }
 0x981   : > { %2743 = vmatmul.msk.f32.gmra.mxu3 %vm488_vm0, %v1632_v20 }
 0x9ec   : > { %v3901_v23 = vpop.f32.mrf.mxu3 }
 0x9f4   : > { %v3903_v24 = vpop.f32.mrf.mxu3 }
 0x9fc   : > { %v1664_v31 = vpop.f32.mrf.mxu3 }
 0x9fd   : > { %v1670_v39 = vadd.f32 %v1664_v31, %v1509_v30 }
 0x9ff   : > { %v2744_v40 = vmul.f32 -1.442695, %v1670_v39  ;;  %3071 = vtanh.f32 %v1670_v39 }
 0xa01   : > { %3073 = vpow2.f32 %v2744_v40 }
 0xa04   : > { %v1667_v44 = vpop.f32.mrf.mxu3 }
 0xa05   : > { %v3072_v45 = vpop.eup %3071  ;;  %v1671_v26 = vadd.f32 %v1667_v44, %v1510_v43 }
 0xa06   : > { %1716 = vrot.lane.b32.xlu1 %v3072_v45, %s3405_s20 }
 0xa07   : > { %v3074_v25 = vpop.eup %3073  ;;  %v2745_v47 = vmul.f32 -1.442695, %v1671_v26 }
 0xa08   : > { %v1678_v48 = vadd.f32 1.0, %v3074_v25 }
 0xa09   : > { %3075 = vpow2.f32 %v2745_v47 }
 0xa0a   : > { %3077 = vrcp.f32 %v1678_v48  ;;  %v1691_v41 = vand.u32 2147483648, %v1678_v48  ;;  %v1689_v52 = vand.u32 2147483647, %v1678_v48  ;;  %vm1685_vm14 = vweird.f32 %v1678_v48 }
 0xa0c   : > { %v1692_v34 = vor.u32 1.1754944e-38, %v1691_v41  ;;  %vm1690_vm1 = vcmp.eq.f32.partialorder %v1689_v52, 8.507059e+37 }
 0xa0f   : > { %v3076_v27 = vpop.eup %3075 }
 0xa10   : > { %v3078_v50 = vpop.eup %3077  ;;  %v1679_v33 = vadd.f32 1.0, %v3076_v27 }
 0xa11   : > { %v1681_v28 = vmul.f32 %v3078_v50, %v1678_v48  ;;  %vm1686_vm13 = vweird.f32 %v3078_v50 }
 0xa12   : > { %3079 = vrcp.f32 %v1679_v33  ;;  %vm1687_vm15 = vmor %vm1685_vm14, %vm1686_vm13  ;;  %v1706_v36 = vand.u32 2147483648, %v1679_v33  ;;  %v1704_v58 = vand.u32 2147483647, %v1679_v33  ;;  %vm1700_vm3 = vweird.f32 %v1679_v33 }
 0xa13   : > { %v1682_v38 = vsub.f32 1.0, %v1681_v28  ;;  %3081 = vtanh.f32 %v1671_v26 }
 0xa14   : > { %v1707_v60 = vor.u32 1.1754944e-38, %v1706_v36  ;;  %vm1705_vm5 = vcmp.eq.f32.partialorder %v1704_v58, 8.507059e+37 }
 0xa15   : > { %v1683_v49 = vmul.f32 %v3078_v50, %v1682_v38 }
 0xa17   : > { %v1684_v53 = vadd.f32 %v3078_v50, %v1683_v49 }
 0xa18   : > { %v3080_v32 = vpop.eup %3079 }
 0xa19   : > { %v1688_v54 = vsel %vm1687_vm15, %v3078_v50, %v1684_v53  ;;  %v1696_v55 = vmul.f32 %v3080_v32, %v1679_v33  ;;  %vm1701_vm2 = vweird.f32 %v3080_v32  ;;  %v3082_v14 = vpop.eup %3081 }
 0xa1a   : > { %v1693_v56 = vsel %vm1690_vm1, %v1692_v34, %v1688_v54  ;;  %vm1702_vm4 = vmor %vm1700_vm3, %vm1701_vm2 }
 0xa1b   : > { %1720 = vrot.lane.b32.xlu1 %v1693_v56, %s3403_s13  ;;  %1712 = vrot.lane.b32.xlu0 %v1693_v56, %s3404_s11  ;;  %v1697_v35 = vsub.f32 1.0, %v1696_v55 }
 0xa1d   : > { %v1698_v57 = vmul.f32 %v3080_v32, %v1697_v35 }
 0xa1f   : > { %v1699_v59 = vadd.f32 %v3080_v32, %v1698_v57 }
 0xa21   : > { %v1703_v61 = vsel %vm1702_vm4, %v3080_v32, %v1699_v59 }
 0xa22   : > { %v1708_v62 = vsel %vm1705_vm5, %v1707_v60, %v1703_v61 }
 0xa23   : > { %1718 = vrot.lane.b32.xlu0 %v3082_v14, %s3405_s20  ;;  %1714 = vrot.lane.b32.xlu2 %v1708_v62, %s3404_s11 }
 0xa2b   : > { %1722 = vrot.lane.b32.xlu2 %v1708_v62, %s3403_s13 }
 0xa78   : > { %v1717_v63 = vpop.permute.xlu1 %1716 }
 0xa79   : > { %v1726_v1 = vmul.f32 %v1717_v63, %v1693_v56 }
 0xa7d   : > { %v1715_v3 = vpop.permute.xlu2 %1714 }
 0xa7e   : > { %v1725_v21 = vmul.f32 %v1715_v3, %v3891_v15 }
 0xa85   : > { %v1723_v9 = vpop.permute.xlu2 %1722 }
 0xa8d   : > { %v1713_v0 = vpop.permute.xlu0 %1712  ;;  %v1721_v7 = vpop.permute.xlu1 %1720 }
 0xa8e   : > { %v1724_v2 = vmul.f32 %v1713_v0, %v3886_v5 }
 0xa90   : > { %v3914_v10 = vadd.f32 %v1726_v1, %v1724_v2 }
 0xa92   : > { %3083 = vtanh.f32 %v3914_v10 }
 0xa95   : > { %v1719_v4 = vpop.permute.xlu0 %1718 }
 0xa96   : > { %v1727_v37 = vmul.f32 %v1719_v4, %v1708_v62 }
 0xa98   : > { %v3084_v6 = vpop.eup %3083  ;;  %v3918_v46 = vadd.f32 %v1727_v37, %v1725_v21  ;;  %v1472_v37 = vpop.f32.mrf.mxu1 }
 0xa99   : > { %v1732_v8 = vmul.f32 %v3084_v6, %v1721_v7  ;;  %v1513_v6 = vadd.f32 %v3852_v51, %v1472_v37 }
 0xa9a   : > { %3085 = vtanh.f32 %v3918_v46 }
 0xa9b   : > { %1734 = vst.msk [vmem:[#allocation3 + $0x10] sm:$0xff] %vm488_vm0, %v1732_v8  ;;  %2746 = vmatmul.msk.f32.vlgmr.msrb.gmra.mxu0 %vm488_vm0, %v1732_v8 }
 0xaa0   : > { %v3086_v5 = vpop.eup %3085 }
 0xaa1   : > { %v1733_v11 = vmul.f32 %v3086_v5, %v1723_v9  ;;  %v1475_v5 = vpop.f32.mrf.mxu1 }
 0xaa2   : > { %v1514_v9 = vadd.f32 %v3852_v51, %v1475_v5 }
 0xaa3   : > { %1735 = vst.msk [vmem:[#allocation3 + $0x18] sm:$0xff] %vm488_vm0, %v1733_v11  ;;  %2747 = vmatmul.msk.f32.gmra.mxu0 %vm488_vm0, %v1733_v11 }
 0xb18   : > { %v1765_v15 = vpop.f32.mrf.mxu0 }
 0xb19   : > { %v1771_v16 = vadd.f32 %v1765_v15, %v1511_v13 }
 0xb1b   : > { %v2748_v17 = vmul.f32 -1.442695, %v1771_v16  ;;  %3087 = vtanh.f32 %v1771_v16 }
 0xb1d   : > { %3089 = vpow2.f32 %v2748_v17 }
 0xb20   : > { %v1768_v20 = vpop.f32.mrf.mxu0 }
 0xb21   : > { %v3088_v29 = vpop.eup %3087  ;;  %v1772_v30 = vadd.f32 %v1768_v20, %v1512_v19 }
 0xb22   : > { %1817 = vrot.lane.b32.xlu1 %v3088_v29, %s3405_s20 }
 0xb23   : > { %v3090_v31 = vpop.eup %3089  ;;  %v2749_v39 = vmul.f32 -1.442695, %v1772_v30 }
 0xb24   : > { %v1779_v40 = vadd.f32 1.0, %v3090_v31 }
 0xb25   : > { %3091 = vpow2.f32 %v2749_v39 }
 0xb26   : > { %3093 = vrcp.f32 %v1779_v40  ;;  %v1792_v25 = vand.u32 2147483648, %v1779_v40  ;;  %v1790_v48 = vand.u32 2147483647, %v1779_v40  ;;  %vm1786_vm7 = vweird.f32 %v1779_v40 }
 0xb28   : > { %v1793_v33 = vor.u32 1.1754944e-38, %v1792_v25  ;;  %vm1791_vm9 = vcmp.eq.f32.partialorder %v1790_v48, 8.507059e+37 }
 0xb2b   : > { %v3092_v42 = vpop.eup %3091 }
 0xb2c   : > { %v3094_v43 = vpop.eup %3093  ;;  %v1780_v44 = vadd.f32 1.0, %v3092_v42 }
 0xb2d   : > { %v1782_v45 = vmul.f32 %v3094_v43, %v1779_v40  ;;  %vm1787_vm6 = vweird.f32 %v3094_v43 }
 0xb2e   : > { %3095 = vrcp.f32 %v1780_v44  ;;  %vm1788_vm8 = vmor %vm1786_vm7, %vm1787_vm6  ;;  %v1807_v52 = vand.u32 2147483648, %v1780_v44  ;;  %v1805_v32 = vand.u32 2147483647, %v1780_v44  ;;  %vm1801_vm11 = vweird.f32 %v1780_v44 }
 0xb2f   : > { %v1783_v26 = vsub.f32 1.0, %v1782_v45  ;;  %3097 = vtanh.f32 %v1772_v30 }
 0xb30   : > { %v1808_v54 = vor.u32 1.1754944e-38, %v1807_v52  ;;  %vm1806_vm13 = vcmp.eq.f32.partialorder %v1805_v32, 8.507059e+37  ;;  %v1943_v52 = vld [vmem:[#allocation12 + $0x38] sm:$0xff]  ;;  %v1941_v32 = vld [vmem:[#allocation12 + $0x28] sm:$0xff] }
 0xb31   : > { %v1784_v47 = vmul.f32 %v3094_v43, %v1783_v26  ;;  %1962 = vmatpush.msra.mxu3 %v1943_v52  ;;  %2063 = vmatpush.msra.mxu0 %v1943_v52 }
 0xb32   : > { %2164 = vmatpush.msrb.mxu2 %v1943_v52 }
 0xb33   : > { %v1785_v27 = vadd.f32 %v3094_v43, %v1784_v47 }
 0xb34   : > { %v3096_v50 = vpop.eup %3095 }
 0xb35   : > { %v1789_v28 = vsel %vm1788_vm8, %v3094_v43, %v1785_v27  ;;  %v1797_v38 = vmul.f32 %v3096_v50, %v1780_v44  ;;  %vm1802_vm10 = vweird.f32 %v3096_v50  ;;  %v3098_v56 = vpop.eup %3097 }
 0xb36   : > { %v1794_v41 = vsel %vm1791_vm9, %v1793_v33, %v1789_v28  ;;  %vm1803_vm12 = vmor %vm1801_vm11, %vm1802_vm10 }
 0xb37   : > { %1821 = vrot.lane.b32.xlu1 %v1794_v41, %s3403_s13  ;;  %1813 = vrot.lane.b32.xlu0 %v1794_v41, %s3404_s11  ;;  %v1798_v49 = vsub.f32 1.0, %v1797_v38 }
 0xb39   : > { %v1799_v53 = vmul.f32 %v3096_v50, %v1798_v49 }
 0xb3b   : > { %v1800_v34 = vadd.f32 %v3096_v50, %v1799_v53  ;;  %v1942_v53 = vld [vmem:[#allocation12 + $0x30] sm:$0xff] }
 0xb3c   : > { %1963 = vmatpush.msra.mxu3 %v1942_v53  ;;  %2064 = vmatpush.msra.mxu0 %v1942_v53 }
 0xb3d   : > { %v1804_v55 = vsel %vm1803_vm12, %v3096_v50, %v1800_v34  ;;  %2165 = vmatpush.msrb.mxu2 %v1942_v53  ;;  %v1940_v34 = vld [vmem:[#allocation12 + $0x20] sm:$0xff] }
 0xb3e   : > { %v1809_v35 = vsel %vm1806_vm13, %v1808_v54, %v1804_v55  ;;  %1964 = vmatpush.msra.mxu3 %v1941_v32  ;;  %2065 = vmatpush.msra.mxu0 %v1941_v32 }
 0xb3f   : > { %1819 = vrot.lane.b32.xlu0 %v3098_v56, %s3405_s20  ;;  %1815 = vrot.lane.b32.xlu2 %v1809_v35, %s3404_s11 }
 0xb40   : > { %2166 = vmatpush.msrb.mxu2 %v1941_v32  ;;  %1965 = vmatpush.msra.mxu3 %v1940_v34 }
 0xb41   : > { %2066 = vmatpush.msra.mxu0 %v1940_v34 }
 0xb42   : > { %2167 = vmatpush.msrb.mxu2 %v1940_v34  ;;  %2265 = vmatpush.msrb.mxu3 %v1943_v52 }
 0xb44   : > { %2266 = vmatpush.msrb.mxu3 %v1942_v53 }
 0xb46   : > { %2267 = vmatpush.msrb.mxu3 %v1941_v32 }
 0xb47   : > { %1823 = vrot.lane.b32.xlu2 %v1809_v35, %s3403_s13 }
 0xb48   : > { %2268 = vmatpush.msrb.mxu3 %v1940_v34 }
 0xb94   : > { %v1818_v36 = vpop.permute.xlu1 %1817 }
 0xb95   : > { %v1827_v58 = vmul.f32 %v1818_v36, %v1794_v41 }
 0xb99   : > { %v1816_v61 = vpop.permute.xlu2 %1815 }
 0xb9a   : > { %v1826_v62 = vmul.f32 %v1816_v61, %v3918_v46 }
 0xba1   : > { %v1824_v4 = vpop.permute.xlu2 %1823 }
 0xba9   : > { %v1814_v57 = vpop.permute.xlu0 %1813  ;;  %v1822_v1 = vpop.permute.xlu1 %1821 }
 0xbaa   : > { %v1825_v59 = vmul.f32 %v1814_v57, %v3914_v10 }
 0xbac   : > { %v3934_v60 = vadd.f32 %v1827_v58, %v1825_v59 }
 0xbae   : > { %3099 = vtanh.f32 %v3934_v60 }
 0xbb1   : > { %v1820_v14 = vpop.permute.xlu0 %1819 }
 0xbb2   : > { %v1828_v63 = vmul.f32 %v1820_v14, %v1809_v35 }
 0xbb4   : > { %v3100_v0 = vpop.eup %3099  ;;  %v3938_v2 = vadd.f32 %v1828_v63, %v1826_v62 }
 0xbb5   : > { %v1833_v3 = vmul.f32 %v3100_v0, %v1822_v1 }
 0xbb6   : > { %3101 = vtanh.f32 %v3938_v2 }
 0xbb7   : > { %1835 = vst.msk [vmem:[#allocation3 + $0x20] sm:$0xff] %vm488_vm0, %v1833_v3  ;;  %2750 = vmatmul.msk.f32.vlgmr.msra.gmra.mxu2 %vm488_vm0, %v1833_v3 }
 0xbbc   : > { %v3102_v10 = vpop.eup %3101 }
 0xbbd   : > { %v1834_v21 = vmul.f32 %v3102_v10, %v1824_v4 }
 0xbbf   : > { %1836 = vst.msk [vmem:[#allocation3 + $0x28] sm:$0xff] %vm488_vm0, %v1834_v21  ;;  %2751 = vmatmul.msk.f32.gmra.mxu2 %vm488_vm0, %v1834_v21 }
 0xc3a   : > { %v1866_v7 = vpop.f32.mrf.mxu2 }
 0xc3b   : > { %v1872_v46 = vadd.f32 %v1866_v7, %v1513_v6 }
 0xc3d   : > { %v2752_v8 = vmul.f32 -1.442695, %v1872_v46  ;;  %3103 = vtanh.f32 %v1872_v46 }
 0xc3f   : > { %3105 = vpow2.f32 %v2752_v8 }
 0xc42   : > { %v1869_v11 = vpop.f32.mrf.mxu2 }
 0xc43   : > { %v3104_v12 = vpop.eup %3103  ;;  %v1873_v13 = vadd.f32 %v1869_v11, %v1514_v9 }
 0xc44   : > { %1918 = vrot.lane.b32.xlu1 %v3104_v12, %s3405_s20 }
 0xc45   : > { %v3106_v15 = vpop.eup %3105  ;;  %v2753_v16 = vmul.f32 -1.442695, %v1873_v13 }
 0xc46   : > { %v1880_v17 = vadd.f32 1.0, %v3106_v15 }
 0xc47   : > { %3107 = vpow2.f32 %v2753_v16 }
 0xc48   : > { %3109 = vrcp.f32 %v1880_v17  ;;  %v1893_v31 = vand.u32 2147483648, %v1880_v17  ;;  %v1891_v40 = vand.u32 2147483647, %v1880_v17  ;;  %vm1887_vm15 = vweird.f32 %v1880_v17 }
 0xc4a   : > { %v1894_v44 = vor.u32 1.1754944e-38, %v1893_v31  ;;  %vm1892_vm2 = vcmp.eq.f32.partialorder %v1891_v40, 8.507059e+37 }
 0xc4d   : > { %v3108_v18 = vpop.eup %3107 }
 0xc4e   : > { %v3110_v19 = vpop.eup %3109  ;;  %v1881_v20 = vadd.f32 1.0, %v3108_v18 }
 0xc4f   : > { %v1883_v29 = vmul.f32 %v3110_v19, %v1880_v17  ;;  %vm1888_vm14 = vweird.f32 %v3110_v19 }
 0xc50   : > { %3111 = vrcp.f32 %v1881_v20  ;;  %vm1889_vm1 = vmor %vm1887_vm15, %vm1888_vm14  ;;  %v1908_v48 = vand.u32 2147483648, %v1881_v20  ;;  %v1906_v50 = vand.u32 2147483647, %v1881_v20  ;;  %vm1902_vm4 = vweird.f32 %v1881_v20 }
 0xc51   : > { %v1884_v30 = vsub.f32 1.0, %v1883_v29  ;;  %3113 = vtanh.f32 %v1873_v13 }
 0xc52   : > { %v1909_v28 = vor.u32 1.1754944e-38, %v1908_v48  ;;  %vm1907_vm6 = vcmp.eq.f32.partialorder %v1906_v50, 8.507059e+37 }
 0xc53   : > { %v1885_v39 = vmul.f32 %v3110_v19, %v1884_v30 }
 0xc55   : > { %v1886_v42 = vadd.f32 %v3110_v19, %v1885_v39 }
 0xc56   : > { %v3112_v43 = vpop.eup %3111 }
 0xc57   : > { %v1890_v45 = vsel %vm1889_vm1, %v3110_v19, %v1886_v42  ;;  %v1898_v26 = vmul.f32 %v3112_v43, %v1881_v20  ;;  %vm1903_vm3 = vweird.f32 %v3112_v43  ;;  %v3114_v41 = vpop.eup %3113 }
 0xc58   : > { %v1895_v25 = vsel %vm1892_vm2, %v1894_v44, %v1890_v45  ;;  %vm1904_vm5 = vmor %vm1902_vm4, %vm1903_vm3 }
 0xc59   : > { %1922 = vrot.lane.b32.xlu1 %v1895_v25, %s3403_s13  ;;  %1914 = vrot.lane.b32.xlu0 %v1895_v25, %s3404_s11  ;;  %v1899_v47 = vsub.f32 1.0, %v1898_v26 }
 0xc5b   : > { %v1900_v27 = vmul.f32 %v3112_v43, %v1899_v47 }
 0xc5d   : > { %v1901_v33 = vadd.f32 %v3112_v43, %v1900_v27 }
 0xc5f   : > { %v1905_v38 = vsel %vm1904_vm5, %v3112_v43, %v1901_v33  ;;  %v2361_v33 = vld [vmem:[#allocation13 + $0x18] sm:$0xff] }
 0xc60   : > { %v1910_v49 = vsel %vm1907_vm6, %v1909_v28, %v1905_v38  ;;  %v2360_v28 = vld [vmem:[#allocation13 + $0x10] sm:$0xff]  ;;  %2426 = vmatpush.msrb.mxu0 %v2361_v33  ;;  %2802 = vmatpush.msra.mxu2 %v2361_v33  ;;  %v2359_v38 = vld [vmem:[#allocation13 + $0x8] sm:$0xff] }
 0xc61   : > { %1920 = vrot.lane.b32.xlu0 %v3114_v41, %s3405_s20  ;;  %1916 = vrot.lane.b32.xlu2 %v1910_v49, %s3404_s11  ;;  %v2358_v41 = vld [vmem:[#allocation13] sm:$0xff] }
 0xc62   : > { %2427 = vmatpush.msrb.mxu0 %v2360_v28  ;;  %2803 = vmatpush.msra.mxu2 %v2360_v28 }
 0xc64   : > { %2428 = vmatpush.msrb.mxu0 %v2359_v38  ;;  %2804 = vmatpush.msra.mxu2 %v2359_v38 }
 0xc66   : > { %2429 = vmatpush.msrb.mxu0 %v2358_v41  ;;  %2805 = vmatpush.msra.mxu2 %v2358_v41 }
 0xc69   : > { %1924 = vrot.lane.b32.xlu2 %v1910_v49, %s3403_s13 }
 0xcb6   : > { %v1919_v54 = vpop.permute.xlu1 %1918 }
 0xcb7   : > { %v1928_v56 = vmul.f32 %v1919_v54, %v1895_v25 }
 0xcbb   : > { %v1917_v57 = vpop.permute.xlu2 %1916 }
 0xcbc   : > { %v1927_v59 = vmul.f32 %v1917_v57, %v3938_v2  ;;  %v1478_v2 = vpop.f32.mrf.mxu1 }
 0xcbd   : > { %v1515_v10 = vadd.f32 %v3852_v51, %v1478_v2  ;;  %v2347_v2 = vld [vmem:[#allocation3 + $0x28] sm:$0xff] }
 0xcc3   : > { %v1925_v1 = vpop.permute.xlu2 %1924 }
 0xcc4   : > { %v1481_v6 = vpop.f32.mrf.mxu1 }
 0xcc5   : > { %v1516_v7 = vadd.f32 %v3852_v51, %v1481_v6 }
 0xccb   : > { %v1915_v55 = vpop.permute.xlu0 %1914  ;;  %v1923_v62 = vpop.permute.xlu1 %1922 }
 0xccc   : > { %v1926_v35 = vmul.f32 %v1915_v55, %v3934_v60 }
 0xcce   : > { %v3954_v36 = vadd.f32 %v1928_v56, %v1926_v35 }
 0xcd0   : > { %3115 = vtanh.f32 %v3954_v36 }
 0xcd3   : > { %v1921_v58 = vpop.permute.xlu0 %1920 }
 0xcd4   : > { %v1929_v61 = vmul.f32 %v1921_v58, %v1910_v49 }
 0xcd6   : > { %v3116_v14 = vpop.eup %3115  ;;  %v3958_v63 = vadd.f32 %v1929_v61, %v1927_v59 }
 0xcd7   : > { %v1934_v0 = vmul.f32 %v3116_v14, %v1923_v62 }
 0xcd8   : > { %3117 = vtanh.f32 %v3958_v63 }
 0xcd9   : > { %1936 = vst.msk [vmem:[#allocation3 + $0x30] sm:$0xff] %vm488_vm0, %v1934_v0  ;;  %2754 = vmatmul.msk.f32.vlgmr.msra.gmra.mxu3 %vm488_vm0, %v1934_v0  ;;  %v2343_v0 = vld [vmem:[#allocation3 + $0x8] sm:$0xff] }
 0xcde   : > { %v3118_v60 = vpop.eup %3117 }
 0xcdf   : > { %v1935_v3 = vmul.f32 %v3118_v60, %v1925_v1  ;;  %v2344_v60 = vld [vmem:[#allocation3 + $0x10] sm:$0xff]  ;;  %v2345_v1 = vld [vmem:[#allocation3 + $0x18] sm:$0xff] }
 0xce1   : > { %1937 = vst.msk [vmem:[#allocation3 + $0x38] sm:$0xff] %vm488_vm0, %v1935_v3  ;;  %2755 = vmatmul.msk.f32.gmra.mxu3 %vm488_vm0, %v1935_v3  ;;  %v2346_v3 = vld [vmem:[#allocation3 + $0x20] sm:$0xff] }
 0xd5c   : > { %v1967_v4 = vpop.f32.mrf.mxu3 }
 0xd5d   : > { %v1973_v21 = vadd.f32 %v1967_v4, %v1515_v10  ;;  %v2348_v10 = vld [vmem:[#allocation3 + $0x30] sm:$0xff]  ;;  %v1484_v4 = vpop.f32.mrf.mxu1 }
 0xd5f   : > { %v2756_v37 = vmul.f32 -1.442695, %v1973_v21  ;;  %3119 = vtanh.f32 %v1973_v21  ;;  %v3995_v21 = vld [vmem:[%s4145_s5 + $0x1] ss:$0 sm:$0xff] }
 0xd61   : > { %3121 = vpow2.f32 %v2756_v37  ;;  %v1517_v37 = vadd.f32 %v3995_v21, %v1484_v4 }
 0xd64   : > { %v1970_v46 = vpop.f32.mrf.mxu3 }
 0xd65   : > { %v3120_v8 = vpop.eup %3119  ;;  %v1974_v5 = vadd.f32 %v1970_v46, %v1516_v7 }
 0xd66   : > { %2019 = vrot.lane.b32.xlu1 %v3120_v8, %s3405_s20  ;;  %v1487_v8 = vpop.f32.mrf.mxu1 }
 0xd67   : > { %v3122_v9 = vpop.eup %3121  ;;  %v2757_v11 = vmul.f32 -1.442695, %v1974_v5 }
 0xd68   : > { %v1981_v12 = vadd.f32 1.0, %v3122_v9 }
 0xd69   : > { %3123 = vpow2.f32 %v2757_v11 }
 0xd6a   : > { %3125 = vrcp.f32 %v1981_v12  ;;  %v1994_v19 = vand.u32 2147483648, %v1981_v12  ;;  %v1992_v51 = vand.u32 2147483647, %v1981_v12  ;;  %vm1988_vm8 = vweird.f32 %v1981_v12 }
 0xd6c   : > { %v1995_v31 = vor.u32 1.1754944e-38, %v1994_v19  ;;  %vm1993_vm10 = vcmp.eq.f32.partialorder %v1992_v51, 8.507059e+37 }
 0xd6f   : > { %v3124_v13 = vpop.eup %3123 }
 0xd70   : > { %v3126_v15 = vpop.eup %3125  ;;  %v1982_v16 = vadd.f32 1.0, %v3124_v13 }
 0xd71   : > { %v1984_v17 = vmul.f32 %v3126_v15, %v1981_v12  ;;  %vm1989_vm7 = vweird.f32 %v3126_v15 }
 0xd72   : > { %3127 = vrcp.f32 %v1982_v16  ;;  %vm1990_vm9 = vmor %vm1988_vm8, %vm1989_vm7  ;;  %v2009_v44 = vand.u32 2147483648, %v1982_v16  ;;  %v2007_v26 = vand.u32 2147483647, %v1982_v16  ;;  %vm2003_vm12 = vweird.f32 %v1982_v16 }
 0xd73   : > { %v1985_v18 = vsub.f32 1.0, %v1984_v17  ;;  %3129 = vtanh.f32 %v1974_v5  ;;  %v1518_v5 = vadd.f32 %v3995_v21, %v1487_v8  ;;  %v4003_v17 = vld [vmem:[%s4147_s7] ss:$0 sm:$0xff] }
 0xd74   : > { %v2010_v47 = vor.u32 1.1754944e-38, %v2009_v44  ;;  %vm2008_vm14 = vcmp.eq.f32.partialorder %v2007_v26, 8.507059e+37 }
 0xd75   : > { %v1986_v20 = vmul.f32 %v3126_v15, %v1985_v18 }
 0xd77   : > { %v1987_v29 = vadd.f32 %v3126_v15, %v1986_v20 }
 0xd78   : > { %v3128_v30 = vpop.eup %3127 }
 0xd79   : > { %v1991_v39 = vsel %vm1990_vm9, %v3126_v15, %v1987_v29  ;;  %v1999_v40 = vmul.f32 %v3128_v30, %v1982_v16  ;;  %vm2004_vm11 = vweird.f32 %v3128_v30  ;;  %v3130_v27 = vpop.eup %3129 }
 0xd7a   : > { %v1996_v42 = vsel %vm1993_vm10, %v1995_v31, %v1991_v39  ;;  %vm2005_vm13 = vmor %vm2003_vm12, %vm2004_vm11 }
 0xd7b   : > { %2023 = vrot.lane.b32.xlu1 %v1996_v42, %s3403_s13  ;;  %2015 = vrot.lane.b32.xlu0 %v1996_v42, %s3404_s11  ;;  %v2000_v43 = vsub.f32 1.0, %v1999_v40 }
 0xd7d   : > { %v2001_v45 = vmul.f32 %v3128_v30, %v2000_v43 }
 0xd7f   : > { %v2002_v25 = vadd.f32 %v3128_v30, %v2001_v45 }
 0xd81   : > { %v2006_v48 = vsel %vm2005_vm13, %v3128_v30, %v2002_v25 }
 0xd82   : > { %v2011_v50 = vsel %vm2008_vm14, %v2010_v47, %v2006_v48 }
 0xd83   : > { %2021 = vrot.lane.b32.xlu0 %v3130_v27, %s3405_s20  ;;  %2017 = vrot.lane.b32.xlu2 %v2011_v50, %s3404_s11 }
 0xd8b   : > { %2025 = vrot.lane.b32.xlu2 %v2011_v50, %s3403_s13 }
 0xdd8   : > { %v2020_v49 = vpop.permute.xlu1 %2019 }
 0xdd9   : > { %v2029_v53 = vmul.f32 %v2020_v49, %v1996_v42 }
 0xddd   : > { %v2018_v54 = vpop.permute.xlu2 %2017 }
 0xdde   : > { %v2028_v56 = vmul.f32 %v2018_v54, %v3958_v63  ;;  %v2342_v63 = vld [vmem:[#allocation3] sm:$0xff] }
 0xde5   : > { %v2026_v14 = vpop.permute.xlu2 %2025 }
 0xded   : > { %v2016_v52 = vpop.permute.xlu0 %2015  ;;  %v2024_v58 = vpop.permute.xlu1 %2023 }
 0xdee   : > { %v2027_v32 = vmul.f32 %v2016_v52, %v3954_v36 }
 0xdf0   : > { %v3974_v34 = vadd.f32 %v2029_v53, %v2027_v32 }
 0xdf2   : > { %3131 = vtanh.f32 %v3974_v34 }
 0xdf5   : > { %v2022_v55 = vpop.permute.xlu0 %2021 }
 0xdf6   : > { %v2030_v35 = vmul.f32 %v2022_v55, %v2011_v50 }
 0xdf8   : > { %v3132_v57 = vpop.eup %3131  ;;  %v3978_v59 = vadd.f32 %v2030_v35, %v2028_v56 }
 0xdf9   : > { %v2035_v61 = vmul.f32 %v3132_v57, %v2024_v58 }
 0xdfa   : > { %3133 = vtanh.f32 %v3978_v59 }
 0xdfb   : > { %2037 = vst.msk [vmem:[#allocation3 + $0x40] sm:$0xff] %vm488_vm0, %v2035_v61  ;;  %2758 = vmatmul.msk.f32.vlgmr.msra.gmra.mxu0 %vm488_vm0, %v2035_v61 }
 0xe00   : > { %v3134_v36 = vpop.eup %3133 }
 0xe01   : > { %v2036_v62 = vmul.f32 %v3134_v36, %v2026_v14 }
 0xe03   : > { %2038 = vst.msk [vmem:[#allocation3 + $0x48] sm:$0xff] %vm488_vm0, %v2036_v62  ;;  %2759 = vmatmul.msk.f32.gmra.mxu0 %vm488_vm0, %v2036_v62 }
 0xe0b   : > { %2770 = vmatmul.msk.f32.vlgmr.msrb.gmra.mxu0 %vm488_vm0, %v2342_v63 }
 0xe13   : > { %2771 = vmatmul.msk.f32.gmra.mxu0 %vm488_vm0, %v2343_v0 }
 0xe1b   : > { %2772 = vmatmul.msk.f32.gmra.mxu0 %vm488_vm0, %v2344_v60 }
 0xe23   : > { %2773 = vmatmul.msk.f32.gmra.mxu0 %vm488_vm0, %v2345_v1 }
 0xe2b   : > { %2774 = vmatmul.msk.f32.gmra.mxu0 %vm488_vm0, %v2346_v3 }
 0xe33   : > { %2775 = vmatmul.msk.f32.gmra.mxu0 %vm488_vm0, %v2347_v2 }
 0xe3b   : > { %2776 = vmatmul.msk.f32.gmra.mxu0 %vm488_vm0, %v2348_v10 }
 0xe78   : > { %v2068_v6 = vpop.f32.mrf.mxu0 }
 0xe79   : > { %v2074_v7 = vadd.f32 %v2068_v6, %v1517_v37 }
 0xe7b   : > { %v2760_v46 = vmul.f32 -1.442695, %v2074_v7  ;;  %3135 = vtanh.f32 %v2074_v7 }
 0xe7d   : > { %3137 = vpow2.f32 %v2760_v46 }
 0xe80   : > { %v2071_v9 = vpop.f32.mrf.mxu0 }
 0xe81   : > { %v3136_v11 = vpop.eup %3135  ;;  %v2075_v12 = vadd.f32 %v2071_v9, %v1518_v5 }
 0xe82   : > { %2120 = vrot.lane.b32.xlu1 %v3136_v11, %s3405_s20  ;;  %v2350_v11 = vld [vmem:[#allocation3 + $0x40] sm:$0xff] }
 0xe83   : > { %v3138_v13 = vpop.eup %3137  ;;  %v2761_v15 = vmul.f32 -1.442695, %v2075_v12 }
 0xe84   : > { %v2082_v16 = vadd.f32 1.0, %v3138_v13 }
 0xe85   : > { %3139 = vpow2.f32 %v2761_v15 }
 0xe86   : > { %3141 = vrcp.f32 %v2082_v16  ;;  %v2095_v40 = vand.u32 2147483648, %v2082_v16  ;;  %v2093_v44 = vand.u32 2147483647, %v2082_v16  ;;  %vm2089_vm1 = vweird.f32 %v2082_v16 }
 0xe88   : > { %v2431_v18 = vpop.f32.mrf.mxu0  ;;  %v2096_v25 = vor.u32 1.1754944e-38, %v2095_v40  ;;  %vm2094_vm3 = vcmp.eq.f32.partialorder %v2093_v44, 8.507059e+37 }
 0xe89   : > { %v2432_v19 = vadd.f32 %v4003_v17, %v2431_v18 }
 0xe8b   : > { %v3140_v20 = vpop.eup %3139  ;;  %2479 = vst [vmem:[%s4008_s24] sm:$0xff] %v2432_v19 }
 0xe8c   : > { %v3142_v51 = vpop.eup %3141  ;;  %v2083_v29 = vadd.f32 1.0, %v3140_v20 }
 0xe8d   : > { %v2085_v30 = vmul.f32 %v3142_v51, %v2082_v16  ;;  %vm2090_vm15 = vweird.f32 %v3142_v51  ;;  %v1490_v16 = vpop.f32.mrf.mxu1 }
 0xe8e   : > { %3143 = vrcp.f32 %v2083_v29  ;;  %vm2091_vm2 = vmor %vm2089_vm1, %vm2090_vm15  ;;  %v2110_v28 = vand.u32 2147483648, %v2083_v29  ;;  %v2108_v49 = vand.u32 2147483647, %v2083_v29  ;;  %vm2104_vm5 = vweird.f32 %v2083_v29 }
 0xe8f   : > { %v2086_v31 = vsub.f32 1.0, %v2085_v30  ;;  %3145 = vtanh.f32 %v2075_v12  ;;  %v2351_v12 = vld [vmem:[#allocation3 + $0x48] sm:$0xff]  ;;  %v1519_v18 = vadd.f32 %v3995_v21, %v1490_v16 }
 0xe90   : > { %v2434_v39 = vpop.f32.mrf.mxu0  ;;  %v2111_v53 = vor.u32 1.1754944e-38, %v2110_v28  ;;  %vm2109_vm7 = vcmp.eq.f32.partialorder %v2108_v49, 8.507059e+37 }
 0xe91   : > { %v2435_v42 = vadd.f32 %v4003_v17, %v2434_v39  ;;  %v2087_v43 = vmul.f32 %v3142_v51, %v2086_v31 }
 0xe93   : > { %2480 = vst [vmem:[%s4008_s24 + $0x8] sm:$0xff] %v2435_v42  ;;  %v2088_v45 = vadd.f32 %v3142_v51, %v2087_v43 }
 0xe94   : > { %v3144_v26 = vpop.eup %3143 }
 0xe95   : > { %v2092_v47 = vsel %vm2091_vm2, %v3142_v51, %v2088_v45  ;;  %v2100_v48 = vmul.f32 %v3144_v26, %v2083_v29  ;;  %vm2105_vm4 = vweird.f32 %v3144_v26  ;;  %v3146_v54 = vpop.eup %3145  ;;  %v1520_v29 = vadd.f32 %v3995_v21, %v3899_v22 }
 0xe96   : > { %v2097_v27 = vsel %vm2094_vm3, %v2096_v25, %v2092_v47  ;;  %vm2106_vm6 = vmor %vm2104_vm5, %vm2105_vm4 }
 0xe97   : > { %2124 = vrot.lane.b32.xlu1 %v2097_v27, %s3403_s13  ;;  %2116 = vrot.lane.b32.xlu0 %v2097_v27, %s3404_s11  ;;  %v2101_v50 = vsub.f32 1.0, %v2100_v48 }
 0xe98   : > { %v2437_v33 = vpop.f32.mrf.mxu0 }
 0xe99   : > { %v2438_v38 = vadd.f32 %v4003_v17, %v2437_v33  ;;  %v2102_v41 = vmul.f32 %v3144_v26, %v2101_v50 }
 0xe9b   : > { %2481 = vst [vmem:[%s4008_s24 + $0x10] sm:$0xff] %v2438_v38  ;;  %v2103_v52 = vadd.f32 %v3144_v26, %v2102_v41 }
 0xe9d   : > { %v2107_v32 = vsel %vm2106_vm6, %v3144_v26, %v2103_v52 }
 0xe9e   : > { %v2112_v55 = vsel %vm2109_vm7, %v2111_v53, %v2107_v32 }
 0xe9f   : > { %2122 = vrot.lane.b32.xlu0 %v3146_v54, %s3405_s20  ;;  %2118 = vrot.lane.b32.xlu2 %v2112_v55, %s3404_s11 }
 0xea0   : > { %v2440_v56 = vpop.f32.mrf.mxu0 }
 0xea1   : > { %v2441_v35 = vadd.f32 %v4003_v17, %v2440_v56 }
 0xea3   : > { %2482 = vst [vmem:[%s4008_s24 + $0x18] sm:$0xff] %v2441_v35 }
 0xea7   : > { %2126 = vrot.lane.b32.xlu2 %v2112_v55, %s3403_s13 }
 0xea8   : > { %v2443_v57 = vpop.f32.mrf.mxu0 }
 0xea9   : > { %v2444_v58 = vadd.f32 %v4003_v17, %v2443_v57 }
 0xeab   : > { %2483 = vst [vmem:[%s4008_s24 + $0x20] sm:$0xff] %v2444_v58 }
 0xeb0   : > { %v2446_v61 = vpop.f32.mrf.mxu0 }
 0xeb1   : > { %v2447_v36 = vadd.f32 %v4003_v17, %v2446_v61 }
 0xeb3   : > { %2484 = vst [vmem:[%s4008_s24 + $0x28] sm:$0xff] %v2447_v36 }
 0xeb8   : > { %v2449_v14 = vpop.f32.mrf.mxu0 }
 0xeb9   : > { %v2450_v62 = vadd.f32 %v4003_v17, %v2449_v14 }
 0xebb   : > { %2485 = vst [vmem:[%s4008_s24 + $0x30] sm:$0xff] %v2450_v62 }
 0xef4   : > { %v2121_v63 = vpop.permute.xlu1 %2120 }
 0xef5   : > { %v2130_v60 = vmul.f32 %v2121_v63, %v2097_v27 }
 0xef9   : > { %v2119_v2 = vpop.permute.xlu2 %2118 }
 0xefa   : > { %v2129_v4 = vmul.f32 %v2119_v2, %v3978_v59  ;;  %v2349_v59 = vld [vmem:[#allocation3 + $0x38] sm:$0xff] }
 0xf01   : > { %v2127_v5 = vpop.permute.xlu2 %2126 }
 0xf09   : > { %v2117_v0 = vpop.permute.xlu0 %2116  ;;  %v2125_v7 = vpop.permute.xlu1 %2124 }
 0xf0a   : > { %v2128_v1 = vmul.f32 %v2117_v0, %v3974_v34 }
 0xf0c   : > { %v4029_v3 = vadd.f32 %v2130_v60, %v2128_v1 }
 0xf0e   : > { %3147 = vtanh.f32 %v4029_v3 }
 0xf11   : > { %v2123_v10 = vpop.permute.xlu0 %2122 }
 0xf12   : > { %v2131_v37 = vmul.f32 %v2123_v10, %v2112_v55 }
 0xf14   : > { %v3148_v6 = vpop.eup %3147  ;;  %v4033_v46 = vadd.f32 %v2131_v37, %v2129_v4 }
 0xf15   : > { %v2136_v8 = vmul.f32 %v3148_v6, %v2125_v7 }
 0xf16   : > { %3149 = vtanh.f32 %v4033_v46 }
 0xf17   : > { %2138 = vst.msk [vmem:[#allocation3 + $0x50] sm:$0xff] %vm488_vm0, %v2136_v8  ;;  %2762 = vmatmul.msk.f32.vlgmr.msrb.gmra.mxu2 %vm488_vm0, %v2136_v8 }
 0xf1c   : > { %v3150_v34 = vpop.eup %3149 }
 0xf1d   : > { %v2137_v9 = vmul.f32 %v3150_v34, %v2127_v5 }
 0xf1e   : > { %v2352_v13 = vld [vmem:[#allocation3 + $0x50] sm:$0xff] }
 0xf1f   : > { %2139 = vst.msk [vmem:[#allocation3 + $0x58] sm:$0xff] %vm488_vm0, %v2137_v9  ;;  %2763 = vmatmul.msk.f32.gmra.mxu2 %vm488_vm0, %v2137_v9 }
 0xf26   : > { %v2353_v15 = vld [vmem:[#allocation3 + $0x58] sm:$0xff] }
 0xf27   : > { %2777 = vmatmul.msk.f32.vlgmr.msra.gmra.mxu2 %vm488_vm0, %v2349_v59 }
 0xf2f   : > { %2778 = vmatmul.msk.f32.gmra.mxu2 %vm488_vm0, %v2350_v11 }
 0xf37   : > { %2779 = vmatmul.msk.f32.gmra.mxu2 %vm488_vm0, %v2351_v12 }
 0xf3f   : > { %2780 = vmatmul.msk.f32.gmra.mxu2 %vm488_vm0, %v2352_v13 }
 0xf47   : > { %2781 = vmatmul.msk.f32.gmra.mxu2 %vm488_vm0, %v2353_v15 }
 0xf9a   : > { %v2169_v19 = vpop.f32.mrf.mxu2 }
 0xf9b   : > { %v2175_v20 = vadd.f32 %v2169_v19, %v1519_v18 }
 0xf9d   : > { %v2764_v51 = vmul.f32 -1.442695, %v2175_v20  ;;  %3151 = vtanh.f32 %v2175_v20  ;;  %v1521_v20 = vadd.f32 %v3995_v21, %v3901_v23 }
 0xf9f   : > { %3153 = vpow2.f32 %v2764_v51 }
 0xfa2   : > { %v2172_v30 = vpop.f32.mrf.mxu2 }
 0xfa3   : > { %v3152_v31 = vpop.eup %3151  ;;  %v2176_v39 = vadd.f32 %v2172_v30, %v1520_v29 }
 0xfa4   : > { %2221 = vrot.lane.b32.xlu1 %v3152_v31, %s3405_s20  ;;  %v1522_v31 = vadd.f32 %v3995_v21, %v3903_v24 }
 0xfa5   : > { %v3154_v40 = vpop.eup %3153  ;;  %v2765_v42 = vmul.f32 -1.442695, %v2176_v39 }
 0xfa6   : > { %v2183_v43 = vadd.f32 1.0, %v3154_v40 }
 0xfa7   : > { %3155 = vpow2.f32 %v2765_v42 }
 0xfa8   : > { %3157 = vrcp.f32 %v2183_v43  ;;  %v2196_v50 = vand.u32 2147483648, %v2183_v43  ;;  %v2194_v38 = vand.u32 2147483647, %v2183_v43  ;;  %vm2190_vm9 = vweird.f32 %v2183_v43 }
 0xfaa   : > { %v2452_v44 = vpop.f32.mrf.mxu2  ;;  %v2197_v52 = vor.u32 1.1754944e-38, %v2196_v50  ;;  %vm2195_vm11 = vcmp.eq.f32.partialorder %v2194_v38, 8.507059e+37 }
 0xfab   : > { %v2453_v45 = vadd.f32 %v4003_v17, %v2452_v44 }
 0xfad   : > { %v3156_v26 = vpop.eup %3155  ;;  %2486 = vst [vmem:[%s4008_s24 + $0x38] sm:$0xff] %v2453_v45 }
 0xfae   : > { %v3158_v25 = vpop.eup %3157  ;;  %v2184_v47 = vadd.f32 1.0, %v3156_v26 }
 0xfaf   : > { %v2186_v48 = vmul.f32 %v3158_v25, %v2183_v43  ;;  %vm2191_vm8 = vweird.f32 %v3158_v25 }
 0xfb0   : > { %3159 = vrcp.f32 %v2184_v47  ;;  %vm2192_vm10 = vmor %vm2190_vm9, %vm2191_vm8  ;;  %v2211_v35 = vand.u32 2147483648, %v2184_v47  ;;  %v2209_v61 = vand.u32 2147483647, %v2184_v47  ;;  %vm2205_vm13 = vweird.f32 %v2184_v47 }
 0xfb1   : > { %v2187_v22 = vsub.f32 1.0, %v2186_v48  ;;  %3161 = vtanh.f32 %v2176_v39 }
 0xfb2   : > { %v2455_v27 = vpop.f32.mrf.mxu2  ;;  %v2212_v14 = vor.u32 1.1754944e-38, %v2211_v35  ;;  %vm2210_vm15 = vcmp.eq.f32.partialorder %v2209_v61, 8.507059e+37 }
 0xfb3   : > { %v2456_v33 = vadd.f32 %v4003_v17, %v2455_v27  ;;  %v2188_v28 = vmul.f32 %v3158_v25, %v2187_v22 }
 0xfb5   : > { %2487 = vst [vmem:[%s4008_s24 + $0x40] sm:$0xff] %v2456_v33  ;;  %v2189_v41 = vadd.f32 %v3158_v25, %v2188_v28 }
 0xfb6   : > { %v3160_v49 = vpop.eup %3159 }
 0xfb7   : > { %v2193_v53 = vsel %vm2192_vm10, %v3158_v25, %v2189_v41  ;;  %v2201_v32 = vmul.f32 %v3160_v49, %v2184_v47  ;;  %vm2206_vm12 = vweird.f32 %v3160_v49  ;;  %v3162_v63 = vpop.eup %3161 }
 0xfb8   : > { %v2198_v54 = vsel %vm2195_vm11, %v2197_v52, %v2193_v53  ;;  %vm2207_vm14 = vmor %vm2205_vm13, %vm2206_vm12 }
 0xfb9   : > { %2225 = vrot.lane.b32.xlu1 %v2198_v54, %s3403_s13  ;;  %2217 = vrot.lane.b32.xlu0 %v2198_v54, %s3404_s11  ;;  %v2202_v55 = vsub.f32 1.0, %v2201_v32 }
 0xfba   : > { %v2458_v56 = vpop.f32.mrf.mxu2 }
 0xfbb   : > { %v2459_v57 = vadd.f32 %v4003_v17, %v2458_v56  ;;  %v2203_v58 = vmul.f32 %v3160_v49, %v2202_v55 }
 0xfbd   : > { %2488 = vst [vmem:[%s4008_s24 + $0x48] sm:$0xff] %v2459_v57  ;;  %v2204_v36 = vadd.f32 %v3160_v49, %v2203_v58 }
 0xfbf   : > { %v2208_v62 = vsel %vm2207_vm14, %v3160_v49, %v2204_v36 }
 0xfc0   : > { %v2213_v0 = vsel %vm2210_vm15, %v2212_v14, %v2208_v62 }
 0xfc1   : > { %2219 = vrot.lane.b32.xlu2 %v2213_v0, %s3404_s11  ;;  %2223 = vrot.lane.b32.xlu0 %v3162_v63, %s3405_s20 }
 0xfc2   : > { %v2461_v60 = vpop.f32.mrf.mxu2 }
 0xfc3   : > { %v2462_v1 = vadd.f32 %v4003_v17, %v2461_v60 }
 0xfc5   : > { %2489 = vst [vmem:[%s4008_s24 + $0x50] sm:$0xff] %v2462_v1 }
 0xfc9   : > { %2227 = vrot.lane.b32.xlu2 %v2213_v0, %s3403_s13 }
 0xfca   : > { %v2464_v2 = vpop.f32.mrf.mxu2 }
 0xfcb   : > { %v2465_v10 = vadd.f32 %v4003_v17, %v2464_v2 }
 0xfcd   : > { %2490 = vst [vmem:[%s4008_s24 + $0x58] sm:$0xff] %v2465_v10 }
0x1016   : > { %v2222_v4 = vpop.permute.xlu1 %2221 }
0x1017   : > { %v2231_v6 = vmul.f32 %v2222_v4, %v2198_v54 }
0x101b   : > { %v2220_v34 = vpop.permute.xlu2 %2219 }
0x101c   : > { %v2230_v9 = vmul.f32 %v2220_v34, %v4033_v46 }
0x1023   : > { %v2228_v16 = vpop.permute.xlu2 %2227 }
0x102b   : > { %v2218_v37 = vpop.permute.xlu0 %2217  ;;  %v2226_v12 = vpop.permute.xlu1 %2225 }
0x102c   : > { %v2229_v7 = vmul.f32 %v2218_v37, %v4029_v3 }
0x102e   : > { %v4065_v8 = vadd.f32 %v2231_v6, %v2229_v7 }
0x1030   : > { %3163 = vtanh.f32 %v4065_v8 }
0x1033   : > { %v2224_v5 = vpop.permute.xlu0 %2223 }
0x1034   : > { %v2232_v59 = vmul.f32 %v2224_v5, %v2213_v0 }
0x1036   : > { %v3164_v11 = vpop.eup %3163  ;;  %v4069_v13 = vadd.f32 %v2232_v59, %v2230_v9 }
0x1037   : > { %v2237_v15 = vmul.f32 %v3164_v11, %v2226_v12 }
0x1038   : > { %3165 = vtanh.f32 %v4069_v13 }
0x1039   : > { %2239 = vst.msk [vmem:[#allocation3 + $0x60] sm:$0xff] %vm488_vm0, %v2237_v15  ;;  %2766 = vmatmul.msk.f32.vlgmr.msrb.gmra.mxu3 %vm488_vm0, %v2237_v15 }
0x103e   : > { %v3166_v3 = vpop.eup %3165 }
0x103f   : > { %v2238_v18 = vmul.f32 %v3166_v3, %v2228_v16 }
0x1040   : > { %v2354_v19 = vld [vmem:[#allocation3 + $0x60] sm:$0xff] }
0x1041   : > { %2240 = vst.msk [vmem:[#allocation3 + $0x68] sm:$0xff] %vm488_vm0, %v2238_v18  ;;  %2767 = vmatmul.msk.f32.gmra.mxu3 %vm488_vm0, %v2238_v18  ;;  %2782 = vmatmul.msk.f32.gmra.mxu2 %vm488_vm0, %v2354_v19 }
0x1048   : > { %v2355_v46 = vld [vmem:[#allocation3 + $0x68] sm:$0xff] }
0x1049   : > { %2783 = vmatmul.msk.f32.gmra.mxu2 %vm488_vm0, %v2355_v46 }
0x10bc   : > { %v2270_v51 = vpop.f32.mrf.mxu3 }
0x10bd   : > { %v2276_v29 = vadd.f32 %v2270_v51, %v1521_v20 }
0x10bf   : > { %v2768_v30 = vmul.f32 -1.442695, %v2276_v29  ;;  %3167 = vtanh.f32 %v2276_v29 }
0x10c1   : > { %3169 = vpow2.f32 %v2768_v30 }
0x10c4   : > { %v2273_v39 = vpop.f32.mrf.mxu3  ;;  %v2467_v40 = vpop.f32.mrf.mxu2 }
0x10c5   : > { %v3168_v42 = vpop.eup %3167  ;;  %v2277_v43 = vadd.f32 %v2273_v39, %v1522_v31  ;;  %v2468_v44 = vadd.f32 %v4003_v17, %v2467_v40 }
0x10c6   : > { %2322 = vrot.lane.b32.xlu1 %v3168_v42, %s3405_s20 }
0x10c7   : > { %v3170_v45 = vpop.eup %3169  ;;  %v2769_v26 = vmul.f32 -1.442695, %v2277_v43  ;;  %2491 = vst [vmem:[%s4008_s24 + $0x60] sm:$0xff] %v2468_v44 }
0x10c8   : > { %v2284_v23 = vadd.f32 1.0, %v3170_v45 }
0x10c9   : > { %3171 = vpow2.f32 %v2769_v26 }
0x10ca   : > { %3173 = vrcp.f32 %v2284_v23  ;;  %v2297_v50 = vand.u32 2147483648, %v2284_v23  ;;  %v2295_v28 = vand.u32 2147483647, %v2284_v23  ;;  %vm2291_vm2 = vweird.f32 %v2284_v23 }
0x10cc   : > { %v2470_v25 = vpop.f32.mrf.mxu2  ;;  %v2298_v49 = vor.u32 1.1754944e-38, %v2297_v50  ;;  %vm2296_vm4 = vcmp.eq.f32.partialorder %v2295_v28, 8.507059e+37 }
0x10cd   : > { %v2471_v47 = vadd.f32 %v4003_v17, %v2470_v25 }
0x10cf   : > { %v3172_v48 = vpop.eup %3171  ;;  %2492 = vst [vmem:[%s4008_s24 + $0x68] sm:$0xff] %v2471_v47 }
0x10d0   : > { %v3174_v24 = vpop.eup %3173  ;;  %v2285_v21 = vadd.f32 1.0, %v3172_v48 }
0x10d1   : > { %v2287_v22 = vmul.f32 %v3174_v24, %v2284_v23  ;;  %vm2292_vm1 = vweird.f32 %v3174_v24 }
0x10d2   : > { %3175 = vrcp.f32 %v2285_v21  ;;  %vm2293_vm3 = vmor %vm2291_vm2, %vm2292_vm1  ;;  %v2312_v55 = vand.u32 2147483648, %v2285_v21  ;;  %v2310_v35 = vand.u32 2147483647, %v2285_v21  ;;  %vm2306_vm6 = vweird.f32 %v2285_v21 }
0x10d3   : > { %v2288_v27 = vsub.f32 1.0, %v2287_v22  ;;  %3177 = vtanh.f32 %v2277_v43 }
0x10d4   : > { %v2313_v58 = vor.u32 1.1754944e-38, %v2312_v55  ;;  %vm2311_vm8 = vcmp.eq.f32.partialorder %v2310_v35, 8.507059e+37 }
0x10d5   : > { %v2289_v33 = vmul.f32 %v3174_v24, %v2288_v27 }
0x10d7   : > { %v2290_v38 = vadd.f32 %v3174_v24, %v2289_v33 }
0x10d8   : > { %v3176_v41 = vpop.eup %3175 }
0x10d9   : > { %v2294_v52 = vsel %vm2293_vm3, %v3174_v24, %v2290_v38  ;;  %v2302_v53 = vmul.f32 %v3176_v41, %v2285_v21  ;;  %vm2307_vm5 = vweird.f32 %v3176_v41  ;;  %v3178_v36 = vpop.eup %3177 }
0x10da   : > { %v2299_v32 = vsel %vm2296_vm4, %v2298_v49, %v2294_v52  ;;  %vm2308_vm7 = vmor %vm2306_vm6, %vm2307_vm5 }
0x10db   : > { %2326 = vrot.lane.b32.xlu1 %v2299_v32, %s3403_s13  ;;  %2318 = vrot.lane.b32.xlu0 %v2299_v32, %s3404_s11  ;;  %v2303_v54 = vsub.f32 1.0, %v2302_v53 }
0x10dd   : > { %v2304_v56 = vmul.f32 %v3176_v41, %v2303_v54 }
0x10df   : > { %v2305_v57 = vadd.f32 %v3176_v41, %v2304_v56 }
0x10e1   : > { %v2309_v61 = vsel %vm2308_vm7, %v3176_v41, %v2305_v57 }
0x10e2   : > { %v2314_v14 = vsel %vm2311_vm8, %v2313_v58, %v2309_v61 }
0x10e3   : > { %2324 = vrot.lane.b32.xlu0 %v3178_v36, %s3405_s20  ;;  %2320 = vrot.lane.b32.xlu2 %v2314_v14, %s3404_s11 }
0x10eb   : > { %2328 = vrot.lane.b32.xlu2 %v2314_v14, %s3403_s13 }
0x1138   : > { %v2323_v62 = vpop.permute.xlu1 %2322 }
0x1139   : > { %v2332_v0 = vmul.f32 %v2323_v62, %v2299_v32 }
0x113d   : > { %v2321_v2 = vpop.permute.xlu2 %2320 }
0x113e   : > { %v2331_v4 = vmul.f32 %v2321_v2, %v4069_v13 }
0x1145   : > { %v2329_v59 = vpop.permute.xlu2 %2328 }
0x114d   : > { %v2319_v63 = vpop.permute.xlu0 %2318  ;;  %v2327_v7 = vpop.permute.xlu1 %2326 }
0x114e   : > { %v2330_v60 = vmul.f32 %v2319_v63, %v4065_v8 }
0x1150   : > { %v2334_v1 = vadd.f32 %v2332_v0, %v2330_v60 }
0x1152   : > { %3179 = vtanh.f32 %v2334_v1 }
0x1155   : > { %v2325_v10 = vpop.permute.xlu0 %2324 }
0x1156   : > { %v2333_v37 = vmul.f32 %v2325_v10, %v2314_v14 }
0x1158   : > { %v3180_v6 = vpop.eup %3179  ;;  %v2335_v34 = vadd.f32 %v2333_v37, %v2331_v4 }
0x1159   : > { %v2338_v5 = vmul.f32 %v3180_v6, %v2327_v7 }
0x115a   : > { %3181 = vtanh.f32 %v2335_v34 }
0x115b   : > { %2340 = vst.msk [vmem:[#allocation3 + $0x70] sm:$0xff] %vm488_vm0, %v2338_v5 }
0x1160   : > { %v3182_v9 = vpop.eup %3181 }
0x1161   : > { %v2339_v8 = vmul.f32 %v3182_v9, %v2329_v59 }
0x1162   : > { %v2356_v11 = vld [vmem:[#allocation3 + $0x70] sm:$0xff] }
0x1163   : > { %2341 = vst.msk [vmem:[#allocation3 + $0x78] sm:$0xff] %vm488_vm0, %v2339_v8  ;;  %2784 = vmatmul.msk.f32.gmra.mxu2 %vm488_vm0, %v2356_v11 }
0x116a   : > { %v2357_v12 = vld [vmem:[#allocation3 + $0x78] sm:$0xff] }
0x116b   : > { %2785 = vmatmul.msk.f32.gmra.mxu2 %vm488_vm0, %v2357_v12 }
0x11e6   : > { %v2473_v13 = vpop.f32.mrf.mxu2 }
0x11e7   : > { %v2474_v15 = vadd.f32 %v4003_v17, %v2473_v13 }
0x11e9   : > { %2493 = vst [vmem:[%s4008_s24 + $0x70] sm:$0xff] %v2474_v15 }
0x11ee   : > { %v2476_v3 = vpop.f32.mrf.mxu2 }
0x11ef   : > { %v2477_v16 = vadd.f32 %v4003_v17, %v2476_v3 }
0x11f1   : > { %2494 = vst [vmem:[%s4008_s24 + $0x78] sm:$0xff] %v2477_v16 }
0x11f2   : > { %s2793_s23 = sshll.u32 %s3479_s9, 4  ;;  %s2518_s15 = sshll.u32 %s4008_s24, 4  ;;  %s2519_s15 = int_to_ptr.vmem [resolvable:$true] %s2518_s15 }
0x11f3   : > { %s2507_s22 = scalar_lea.hbm %s4148_s8, %s2793_s23  ;;  %s3406_s18 = smov 256  }
0x11f4   : > { %s2520_s16 = sshll.u32 %s2507_s22, 4  ;;  %2833 = sst [smem:[#allocation19]] (%p3510_p11), %s3406_s18  ;;  %s2521_s16 = int_to_ptr.hbm [resolvable:$true] %s2520_s16 }
0x11f5   : > { %s3407_s21 = smov 512   ;;  %s3408_s13 = smov 2  }
0x11f6   : > { %2834 = sst [smem:[#allocation19 + $0x1]] (%p3510_p11), %s3407_s21  ;;  %s3409_s9 = smov 128  }
0x11f7   : > { %2835 = sst [smem:[#allocation19 + $0x2]] (%p3510_p11), %s3408_s13  ;;  %s3410_s11 = smov 8  }
0x11f8   : > { %2836 = sst [smem:[#allocation19 + $0x3]] (%p3510_p11), %s3409_s9  ;;  %s3411_s20 = smov [#allocation18]  }
0x11f9   : > { %2837 = sst [smem:[#allocation19 + $0x4]] (%p3510_p11), %s3409_s9  ;;  %s3412_s2 = smov 0  }
0x11fa   : > { %2838 = sst [smem:[#allocation19 + $0x5]] (%p3510_p11), %s3410_s11 }
0x11fb   : > { %2839 = dma.general (%p3510_p11), %s2519_s15, 2048, %s2521_s16, %s2496_s3, %s3411_s20, [#allocation19], %s3412_s2, 0  }
0x11fc PF: > { %s4167_s14 = sld [smem:[#allocation27_spill]]  ;;  %p2855_p4 = pnand %p2674_p2, %p3514_p12 }
0x11fe   : > { %p2856_p5 = pneg %p2855_p4 }
0x1202   : > { %s2548_s27 = sand.u32 1, %s4167_s14  }
0x1203   : > { %s2549_s26 = scalar_lea.sflag [#allocation6], %s2548_s27 }
0x1204   : > { %3369 = dma.done.wait (%p2856_p5), %s2549_s26, 2048  }
0x1205   : > { %3371 = vsyncadd (%p2856_p5), %s2549_s26, 4294965248  ;;  %s4169_s30 = sld [smem:[#allocation28_spill]]  ;;  %s4171_s27 = smov %s3378_s28 }
0x1206   : > { %s4170_s10 = sld [smem:[#allocation29_spill]]  ;;  %s4172_s28 = smov %s3382_s29 }
0x120b   : > { %p26_p6 = scmp.ge.s32.totalorder %s4169_s30, 4  }
0x120c   : > { %s4173_s29 = smov %s4170_s10 }
0x120d   :  { %28 = sbr.rel (!%p26_p6) target bundleno = 12 (0xc), region = 152 }
0x1212   :  { %2555 = vsyncpa [#allocation5], 1 }
0x1213   :  { %2557 = vsyncpa [#allocation5 + $0x1], 1 }
0x1214   :  { %2558 = vsyncpa [#allocation8], 1 }
0x1215   :  { %2560 = vsyncpa [#allocation8 + $0x1], 1 }
0x1216   :  { %2561 = vsyncpa [#allocation11], 1 }
0x1217   :  { %2562 = vsyncpa [#allocation14], 1 }
0x1218   :  { %2563 = vsyncpa [#allocation6], 1 }
0x1219   :  { %2565 = vsyncpa [#allocation6 + $0x1], 1 }

</bundles_post_ra>
